<compile_context>
chip_gen: v6e
topology: v6e:2x2x1
jax: 0.10.0
libtpu: 0.0.40
codegen_flags: <defaults>
</compile_context>

<pallas_src>
import jax
import jax.numpy as jnp
from jax.experimental import pallas as pl
from jax.experimental.pallas import tpu as pltpu

LANE = 128
EPS = 1e-5


def _round_up(x, m):
    return ((x + m - 1) // m) * m


# ----------------------------------------------------------------------------
# Pallas kernels
# ----------------------------------------------------------------------------

def _conv3x3_stats_kernel(xp_ref, w_ref, y_ref, st_ref):
    """3x3 conv (9 shifted MXU matmuls) + per-channel sum / sumsq.

    xp_ref : (1, H+2, W+2, Cin_p) f32   spatially pre-padded input image
    w_ref  : (9, Cin_p, Cout_p)   bf16  flattened 3x3 weights, index = kh*3+kw
    y_ref  : (1, H, W, Cout_p)    f32   raw conv output (pre-BN)
    st_ref : (1, 2, Cout_p)       f32   row 0: sum over H*W, row 1: sum of sq
    """
    _, hp2, wp2, cin_p = xp_ref.shape
    h, w = hp2 - 2, wp2 - 2
    cout_p = y_ref.shape[-1]

    acc = jnp.zeros((h * w, cout_p), jnp.float32)
    for kh in range(3):
        for kw in range(3):
            patch = xp_ref[0, kh:kh + h, kw:kw + w, :].reshape(h * w, cin_p)
            acc = acc + jnp.dot(patch.astype(jnp.bfloat16),
                                w_ref[kh * 3 + kw],
                                preferred_element_type=jnp.float32)

    y_ref[0] = acc.reshape(h, w, cout_p)
    s = jnp.sum(acc, axis=0, keepdims=True)
    ss = jnp.sum(acc * acc, axis=0, keepdims=True)
    st_ref[0] = jnp.concatenate([s, ss], axis=0)


def _bnrelu_conv3x3_stats_kernel(y1_ref, aff_ref, w_ref, y2_ref, st_ref,
                                 apad_ref):
    """Fused BN1 (folded scale/shift) + ReLU + 3x3 conv2 + per-channel stats.

    y1_ref  : (1, H, W, Cmid_p)   f32   raw conv1 output
    aff_ref : (2, Cmid_p)         f32   row 0: scale, row 1: shift
    w_ref   : (9, Cmid_p, Cout_p) bf16
    y2_ref  : (1, H, W, Cout_p)   f32
    st_ref  : (1, 2, Cout_p)      f32
    apad_ref: VMEM scratch (H+2, W+2, Cmid_p) f32 — zero-padded mid activation
    """
    _, h, w, cmid_p = y1_ref.shape
    cout_p = y2_ref.shape[-1]

    scale = aff_ref[0:1, :].reshape(1, 1, cmid_p)
    shift = aff_ref[1:2, :].reshape(1, 1, cmid_p)
    a1 = jnp.maximum(y1_ref[0] * scale + shift, 0.0)

    # conv2's zero padding must be applied AFTER BN1+ReLU, so pad in VMEM here.
    apad_ref[...] = jnp.zeros_like(apad_ref)
    apad_ref[1:h + 1, 1:w + 1, :] = a1

    acc = jnp.zeros((h * w, cout_p), jnp.float32)
    for kh in range(3):
        for kw in range(3):
            patch = apad_ref[kh:kh + h, kw:kw + w, :].reshape(h * w, cmid_p)
            acc = acc + jnp.dot(patch.astype(jnp.bfloat16),
                                w_ref[kh * 3 + kw],
                                preferred_element_type=jnp.float32)

    y2_ref[0] = acc.reshape(h, w, cout_p)
    s = jnp.sum(acc, axis=0, keepdims=True)
    ss = jnp.sum(acc * acc, axis=0, keepdims=True)
    st_ref[0] = jnp.concatenate([s, ss], axis=0)


def _bnrelu_kernel(y_ref, aff_ref, o_ref):
    """Elementwise BN scale/shift FMA + ReLU epilogue."""
    _, h, w, c = y_ref.shape
    scale = aff_ref[0:1, :].reshape(1, 1, c)
    shift = aff_ref[1:2, :].reshape(1, 1, c)
    o_ref[0] = jnp.maximum(y_ref[0] * scale + shift, 0.0)


# ----------------------------------------------------------------------------
# pallas_call wrappers
# ----------------------------------------------------------------------------

_PARALLEL = pltpu.CompilerParams(dimension_semantics=("parallel",))


def _conv3x3_stats(xp, w):
    n, hp2, wp2, cin_p = xp.shape
    h, wd = hp2 - 2, wp2 - 2
    cout_p = w.shape[-1]
    return pl.pallas_call(
        _conv3x3_stats_kernel,
        out_shape=(jax.ShapeDtypeStruct((n, h, wd, cout_p), jnp.float32),
                   jax.ShapeDtypeStruct((n, 2, cout_p), jnp.float32)),
        grid=(n,),
        in_specs=[
            pl.BlockSpec((1, hp2, wp2, cin_p), lambda i: (i, 0, 0, 0)),
            pl.BlockSpec((9, cin_p, cout_p), lambda i: (0, 0, 0)),
        ],
        out_specs=(
            pl.BlockSpec((1, h, wd, cout_p), lambda i: (i, 0, 0, 0)),
            pl.BlockSpec((1, 2, cout_p), lambda i: (i, 0, 0)),
        ),
        compiler_params=_PARALLEL,
    )(xp, w)


def _bnrelu_conv3x3_stats(y1, aff, w):
    n, h, wd, cmid_p = y1.shape
    cout_p = w.shape[-1]
    return pl.pallas_call(
        _bnrelu_conv3x3_stats_kernel,
        out_shape=(jax.ShapeDtypeStruct((n, h, wd, cout_p), jnp.float32),
                   jax.ShapeDtypeStruct((n, 2, cout_p), jnp.float32)),
        grid=(n,),
        in_specs=[
            pl.BlockSpec((1, h, wd, cmid_p), lambda i: (i, 0, 0, 0)),
            pl.BlockSpec((2, cmid_p), lambda i: (0, 0)),
            pl.BlockSpec((9, cmid_p, cout_p), lambda i: (0, 0, 0)),
        ],
        out_specs=(
            pl.BlockSpec((1, h, wd, cout_p), lambda i: (i, 0, 0, 0)),
            pl.BlockSpec((1, 2, cout_p), lambda i: (i, 0, 0)),
        ),
        scratch_shapes=[pltpu.VMEM((h + 2, wd + 2, cmid_p), jnp.float32)],
        compiler_params=_PARALLEL,
    )(y1, aff, w)


def _bnrelu(y, aff):
    n, h, wd, c = y.shape
    return pl.pallas_call(
        _bnrelu_kernel,
        out_shape=jax.ShapeDtypeStruct((n, h, wd, c), jnp.float32),
        grid=(n,),
        in_specs=[
            pl.BlockSpec((1, h, wd, c), lambda i: (i, 0, 0, 0)),
            pl.BlockSpec((2, c), lambda i: (0, 0)),
        ],
        out_specs=pl.BlockSpec((1, h, wd, c), lambda i: (i, 0, 0, 0)),
        compiler_params=_PARALLEL,
    )(y, aff)


# ----------------------------------------------------------------------------
# Glue + forward pass
# ----------------------------------------------------------------------------

def _affine_from_stats(stats, gamma_p, beta_p, m_count):
    """stats: (N, 2, Cp) per-image [sum, sumsq] -> (2, Cp) [scale, shift]."""
    tot = jnp.sum(stats, axis=0)                                  # (2, Cp)
    mean = tot[0] / m_count
    var = jnp.maximum(tot[1] / m_count - mean * mean, 0.0)        # biased var
    scale = gamma_p * jax.lax.rsqrt(var + EPS)
    shift = beta_p - mean * scale
    return jnp.stack([scale, shift], axis=0).astype(jnp.float32)


def vgg_block_forward(x_nchw, params):
    """relu(bn2(conv2(relu(bn1(conv1(x)))))) with training-mode batch stats.

    Conv biases are folded out: BN's per-channel mean subtraction cancels any
    per-channel constant exactly, so the bias add is a mathematical no-op.
    """
    x = jnp.transpose(x_nchw, (0, 2, 3, 1)).astype(jnp.float32)   # NHWC
    n, h, w, cin = x.shape
    w1, w2 = params["w1"], params["w2"]
    cmid, cout = w1.shape[-1], w2.shape[-1]

    cin_p = _round_up(cin, LANE)
    cmid_p = _round_up(cmid, LANE)
    cout_p = _round_up(cout, LANE)

    # Lane-pad channels, add the 1-pixel spatial halo; weights go bf16 for MXU.
    xp = jnp.pad(x, ((0, 0), (1, 1), (1, 1), (0, cin_p - cin)))
    w1p = jnp.pad(w1, ((0, 0), (0, 0), (0, cin_p - cin), (0, cmid_p - cmid)))
    w1p = w1p.reshape(9, cin_p, cmid_p).astype(jnp.bfloat16)
    w2p = jnp.pad(w2, ((0, 0), (0, 0), (0, cmid_p - cmid), (0, cout_p - cout)))
    w2p = w2p.reshape(9, cmid_p, cout_p).astype(jnp.bfloat16)
    g1p = jnp.pad(params["g1"], (0, cmid_p - cmid))
    be1p = jnp.pad(params["be1"], (0, cmid_p - cmid))
    g2p = jnp.pad(params["g2"], (0, cout_p - cout))
    be2p = jnp.pad(params["be2"], (0, cout_p - cout))

    m_count = float(n * h * w)

    y1, st1 = _conv3x3_stats(xp, w1p)
    aff1 = _affine_from_stats(st1, g1p, be1p, m_count)
    y2, st2 = _bnrelu_conv3x3_stats(y1, aff1, w2p)
    aff2 = _affine_from_stats(st2, g2p, be2p, m_count)
    out = _bnrelu(y2, aff2)

    out = out[..., :cout]                        # drop channel lane padding
    return jnp.transpose(out, (0, 3, 1, 2))      # back to NCHW


# ----------------------------------------------------------------------------
# Params + pure-JAX reference (for a loose numerical check)
# ----------------------------------------------------------------------------

def init_vgg_block_params(key, cin, cmid, cout):
    ks = jax.random.split(key, 8)
    w1 = jax.random.normal(ks[0], (3, 3, cin, cmid), jnp.float32) * (2.0 / (9 * cin)) ** 0.5
    b1 = jax.random.normal(ks[1], (cmid,), jnp.float32) * 0.05
    w2 = jax.random.normal(ks[2], (3, 3, cmid, cout), jnp.float32) * (2.0 / (9 * cmid)) ** 0.5
    b2 = jax.random.normal(ks[3], (cout,), jnp.float32) * 0.05
    g1 = 1.0 + 0.1 * jax.random.normal(ks[4], (cmid,), jnp.float32)
    be1 = 0.1 * jax.random.normal(ks[5], (cmid,), jnp.float32)
    g2 = 1.0 + 0.1 * jax.random.normal(ks[6], (cout,), jnp.float32)
    be2 = 0.1 * jax.random.normal(ks[7], (cout,), jnp.float32)
    return {"w1": w1, "b1": b1, "g1": g1, "be1": be1,
            "w2": w2, "b2": b2, "g2": g2, "be2": be2}


def reference_vgg_block(x_nchw, params):
    """f32 reference matching the PyTorch module (biases included; training BN)."""
    def conv_bn_relu(x, w, b, g, be):
        y = jax.lax.conv_general_dilated(
            x, w, window_strides=(1, 1), padding=((1, 1), (1, 1)),
            dimension_numbers=("NCHW", "HWIO", "NCHW"))
        y = y + b[None, :, None, None]
        mean = jnp.mean(y, axis=(0, 2, 3), keepdims=True)
        var = jnp.mean(jnp.square(y - mean), axis=(0, 2, 3), keepdims=True)
        y = (y - mean) * jax.lax.rsqrt(var + EPS)
        y = y * g[None, :, None, None] + be[None, :, None, None]
        return jnp.maximum(y, 0.0)

    x = x_nchw.astype(jnp.float32)
    x = conv_bn_relu(x, params["w1"], params["b1"], params["g1"], params["be1"])
    x = conv_bn_relu(x, params["w2"], params["b2"], params["g2"], params["be2"])
    return x


# ----------------------------------------------------------------------------
# Main
# ----------------------------------------------------------------------------

if __name__ == "__main__":
    in_channels, mid_channels, out_channels = 3, 32, 32
    n, h, w = 2, 16, 16

    key = jax.random.PRNGKey(0)
    k_params, k_x = jax.random.split(key)
    params = init_vgg_block_params(k_params, in_channels, mid_channels,
                                   out_channels)
    x = jax.random.normal(k_x, (n, in_channels, h, w), jnp.float32)

    fwd = jax.jit(vgg_block_forward)
    out = jax.block_until_ready(fwd(x, params))

    assert out.shape == (n, out_channels, h, w), out.shape
    assert bool(jnp.all(jnp.isfinite(out)))

    # Loose tolerance: the Pallas path uses bf16 MXU matmuls; reference is f32.
    ref = jax.block_until_ready(jax.jit(reference_vgg_block)(x, params))
    max_diff = float(jnp.max(jnp.abs(out - ref)))
    assert max_diff < 2e-1, f"max |pallas - reference| too large: {max_diff}"

    print("KERNEL_OK")
</pallas_src>

<mosaic_0001>
module attributes {stable_mosaic.version = 11 : i64} {
  func.func @_conv3x3_stats_kernel(%arg0: i32, %arg1: memref<1x18x18x128xf32, #tpu.memory_space<vmem>>, %arg2: memref<9x128x128xbf16, #tpu.memory_space<vmem>>, %arg3: memref<1x16x16x128xf32, #tpu.memory_space<vmem>>, %arg4: memref<1x2x128xf32, #tpu.memory_space<vmem>>) attributes {dimension_semantics = [#tpu.dimension_semantics<parallel>], iteration_bounds = array<i64: 2>, scalar_prefetch = 0 : i64, scratch_operands = 0 : i64, tpu.core_type = #tpu.core_type<tc>, window_params = [{transform_indices = @transform_0, window_bounds = array<i64: 1, 18, 18, 128>}, {pipeline_mode = #tpu.pipeline_mode<synchronous>, transform_indices = @transform_1, window_bounds = array<i64: 9, 128, 128>}, {transform_indices = @transform_2, window_bounds = array<i64: 1, 16, 16, 128>}, {transform_indices = @transform_3, window_bounds = array<i64: 1, 2, 128>}]} {
    %cst = arith.constant 0.000000e+00 : f32
    %0 = vector.broadcast %cst : f32 to vector<256x128xf32>
    %c0 = arith.constant 0 : index
    %c0_0 = arith.constant 0 : index
    %c0_1 = arith.constant 0 : index
    %c0_2 = arith.constant 0 : index
    %1 = vector.load %arg1[%c0, %c0_0, %c0_1, %c0_2] : memref<1x18x18x128xf32, #tpu.memory_space<vmem>>, vector<1x16x16x128xf32>
    %2 = vector.shape_cast %1 : vector<1x16x16x128xf32> to vector<16x16x128xf32>
    %3 = vector.shape_cast %2 : vector<16x16x128xf32> to vector<256x128xf32>
    %4 = arith.truncf %3 : vector<256x128xf32> to vector<256x128xbf16>
    %c0_3 = arith.constant 0 : index
    %c0_4 = arith.constant 0 : index
    %c0_5 = arith.constant 0 : index
    %5 = vector.load %arg2[%c0_3, %c0_4, %c0_5] : memref<9x128x128xbf16, #tpu.memory_space<vmem>>, vector<1x128x128xbf16>
    %6 = vector.shape_cast %5 : vector<1x128x128xbf16> to vector<128x128xbf16>
    %cst_6 = arith.constant dense<0.000000e+00> : vector<256x128xf32>
    %7 = tpu.matmul %4, %6, %cst_6 {dimension_numbers = #tpu.dot_dimension_numbers<[1], [0], [0], [1], [0, 0, 1, 1], [], []>} : vector<256x128xbf16>, vector<128x128xbf16>, vector<256x128xf32> -> vector<256x128xf32>
    %8 = arith.addf %0, %7 : vector<256x128xf32>
    %c0_7 = arith.constant 0 : index
    %c0_8 = arith.constant 0 : index
    %c1 = arith.constant 1 : index
    %c0_9 = arith.constant 0 : index
    %9 = vector.load %arg1[%c0_7, %c0_8, %c1, %c0_9] : memref<1x18x18x128xf32, #tpu.memory_space<vmem>>, vector<1x16x16x128xf32>
    %10 = vector.shape_cast %9 : vector<1x16x16x128xf32> to vector<16x16x128xf32>
    %11 = vector.shape_cast %10 : vector<16x16x128xf32> to vector<256x128xf32>
    %12 = arith.truncf %11 : vector<256x128xf32> to vector<256x128xbf16>
    %c1_10 = arith.constant 1 : index
    %c0_11 = arith.constant 0 : index
    %c0_12 = arith.constant 0 : index
    %13 = vector.load %arg2[%c1_10, %c0_11, %c0_12] : memref<9x128x128xbf16, #tpu.memory_space<vmem>>, vector<1x128x128xbf16>
    %14 = vector.shape_cast %13 : vector<1x128x128xbf16> to vector<128x128xbf16>
    %cst_13 = arith.constant dense<0.000000e+00> : vector<256x128xf32>
    %15 = tpu.matmul %12, %14, %cst_13 {dimension_numbers = #tpu.dot_dimension_numbers<[1], [0], [0], [1], [0, 0, 1, 1], [], []>} : vector<256x128xbf16>, vector<128x128xbf16>, vector<256x128xf32> -> vector<256x128xf32>
    %16 = arith.addf %8, %15 : vector<256x128xf32>
    %c0_14 = arith.constant 0 : index
    %c0_15 = arith.constant 0 : index
    %c2 = arith.constant 2 : index
    %c0_16 = arith.constant 0 : index
    %17 = vector.load %arg1[%c0_14, %c0_15, %c2, %c0_16] : memref<1x18x18x128xf32, #tpu.memory_space<vmem>>, vector<1x16x16x128xf32>
    %18 = vector.shape_cast %17 : vector<1x16x16x128xf32> to vector<16x16x128xf32>
    %19 = vector.shape_cast %18 : vector<16x16x128xf32> to vector<256x128xf32>
    %20 = arith.truncf %19 : vector<256x128xf32> to vector<256x128xbf16>
    %c2_17 = arith.constant 2 : index
    %c0_18 = arith.constant 0 : index
    %c0_19 = arith.constant 0 : index
    %21 = vector.load %arg2[%c2_17, %c0_18, %c0_19] : memref<9x128x128xbf16, #tpu.memory_space<vmem>>, vector<1x128x128xbf16>
    %22 = vector.shape_cast %21 : vector<1x128x128xbf16> to vector<128x128xbf16>
    %cst_20 = arith.constant dense<0.000000e+00> : vector<256x128xf32>
    %23 = tpu.matmul %20, %22, %cst_20 {dimension_numbers = #tpu.dot_dimension_numbers<[1], [0], [0], [1], [0, 0, 1, 1], [], []>} : vector<256x128xbf16>, vector<128x128xbf16>, vector<256x128xf32> -> vector<256x128xf32>
    %24 = arith.addf %16, %23 : vector<256x128xf32>
    %c0_21 = arith.constant 0 : index
    %c1_22 = arith.constant 1 : index
    %c0_23 = arith.constant 0 : index
    %c0_24 = arith.constant 0 : index
    %25 = vector.load %arg1[%c0_21, %c1_22, %c0_23, %c0_24] : memref<1x18x18x128xf32, #tpu.memory_space<vmem>>, vector<1x16x16x128xf32>
    %26 = vector.shape_cast %25 : vector<1x16x16x128xf32> to vector<16x16x128xf32>
    %27 = vector.shape_cast %26 : vector<16x16x128xf32> to vector<256x128xf32>
    %28 = arith.truncf %27 : vector<256x128xf32> to vector<256x128xbf16>
    %c3 = arith.constant 3 : index
    %c0_25 = arith.constant 0 : index
    %c0_26 = arith.constant 0 : index
    %29 = vector.load %arg2[%c3, %c0_25, %c0_26] : memref<9x128x128xbf16, #tpu.memory_space<vmem>>, vector<1x128x128xbf16>
    %30 = vector.shape_cast %29 : vector<1x128x128xbf16> to vector<128x128xbf16>
    %cst_27 = arith.constant dense<0.000000e+00> : vector<256x128xf32>
    %31 = tpu.matmul %28, %30, %cst_27 {dimension_numbers = #tpu.dot_dimension_numbers<[1], [0], [0], [1], [0, 0, 1, 1], [], []>} : vector<256x128xbf16>, vector<128x128xbf16>, vector<256x128xf32> -> vector<256x128xf32>
    %32 = arith.addf %24, %31 : vector<256x128xf32>
    %c0_28 = arith.constant 0 : index
    %c1_29 = arith.constant 1 : index
    %c1_30 = arith.constant 1 : index
    %c0_31 = arith.constant 0 : index
    %33 = vector.load %arg1[%c0_28, %c1_29, %c1_30, %c0_31] : memref<1x18x18x128xf32, #tpu.memory_space<vmem>>, vector<1x16x16x128xf32>
    %34 = vector.shape_cast %33 : vector<1x16x16x128xf32> to vector<16x16x128xf32>
    %35 = vector.shape_cast %34 : vector<16x16x128xf32> to vector<256x128xf32>
    %36 = arith.truncf %35 : vector<256x128xf32> to vector<256x128xbf16>
    %c4 = arith.constant 4 : index
    %c0_32 = arith.constant 0 : index
    %c0_33 = arith.constant 0 : index
    %37 = vector.load %arg2[%c4, %c0_32, %c0_33] : memref<9x128x128xbf16, #tpu.memory_space<vmem>>, vector<1x128x128xbf16>
    %38 = vector.shape_cast %37 : vector<1x128x128xbf16> to vector<128x128xbf16>
    %cst_34 = arith.constant dense<0.000000e+00> : vector<256x128xf32>
    %39 = tpu.matmul %36, %38, %cst_34 {dimension_numbers = #tpu.dot_dimension_numbers<[1], [0], [0], [1], [0, 0, 1, 1], [], []>} : vector<256x128xbf16>, vector<128x128xbf16>, vector<256x128xf32> -> vector<256x128xf32>
    %40 = arith.addf %32, %39 : vector<256x128xf32>
    %c0_35 = arith.constant 0 : index
    %c1_36 = arith.constant 1 : index
    %c2_37 = arith.constant 2 : index
    %c0_38 = arith.constant 0 : index
    %41 = vector.load %arg1[%c0_35, %c1_36, %c2_37, %c0_38] : memref<1x18x18x128xf32, #tpu.memory_space<vmem>>, vector<1x16x16x128xf32>
    %42 = vector.shape_cast %41 : vector<1x16x16x128xf32> to vector<16x16x128xf32>
    %43 = vector.shape_cast %42 : vector<16x16x128xf32> to vector<256x128xf32>
    %44 = arith.truncf %43 : vector<256x128xf32> to vector<256x128xbf16>
    %c5 = arith.constant 5 : index
    %c0_39 = arith.constant 0 : index
    %c0_40 = arith.constant 0 : index
    %45 = vector.load %arg2[%c5, %c0_39, %c0_40] : memref<9x128x128xbf16, #tpu.memory_space<vmem>>, vector<1x128x128xbf16>
    %46 = vector.shape_cast %45 : vector<1x128x128xbf16> to vector<128x128xbf16>
    %cst_41 = arith.constant dense<0.000000e+00> : vector<256x128xf32>
    %47 = tpu.matmul %44, %46, %cst_41 {dimension_numbers = #tpu.dot_dimension_numbers<[1], [0], [0], [1], [0, 0, 1, 1], [], []>} : vector<256x128xbf16>, vector<128x128xbf16>, vector<256x128xf32> -> vector<256x128xf32>
    %48 = arith.addf %40, %47 : vector<256x128xf32>
    %c0_42 = arith.constant 0 : index
    %c2_43 = arith.constant 2 : index
    %c0_44 = arith.constant 0 : index
    %c0_45 = arith.constant 0 : index
    %49 = vector.load %arg1[%c0_42, %c2_43, %c0_44, %c0_45] : memref<1x18x18x128xf32, #tpu.memory_space<vmem>>, vector<1x16x16x128xf32>
    %50 = vector.shape_cast %49 : vector<1x16x16x128xf32> to vector<16x16x128xf32>
    %51 = vector.shape_cast %50 : vector<16x16x128xf32> to vector<256x128xf32>
    %52 = arith.truncf %51 : vector<256x128xf32> to vector<256x128xbf16>
    %c6 = arith.constant 6 : index
    %c0_46 = arith.constant 0 : index
    %c0_47 = arith.constant 0 : index
    %53 = vector.load %arg2[%c6, %c0_46, %c0_47] : memref<9x128x128xbf16, #tpu.memory_space<vmem>>, vector<1x128x128xbf16>
    %54 = vector.shape_cast %53 : vector<1x128x128xbf16> to vector<128x128xbf16>
    %cst_48 = arith.constant dense<0.000000e+00> : vector<256x128xf32>
    %55 = tpu.matmul %52, %54, %cst_48 {dimension_numbers = #tpu.dot_dimension_numbers<[1], [0], [0], [1], [0, 0, 1, 1], [], []>} : vector<256x128xbf16>, vector<128x128xbf16>, vector<256x128xf32> -> vector<256x128xf32>
    %56 = arith.addf %48, %55 : vector<256x128xf32>
    %c0_49 = arith.constant 0 : index
    %c2_50 = arith.constant 2 : index
    %c1_51 = arith.constant 1 : index
    %c0_52 = arith.constant 0 : index
    %57 = vector.load %arg1[%c0_49, %c2_50, %c1_51, %c0_52] : memref<1x18x18x128xf32, #tpu.memory_space<vmem>>, vector<1x16x16x128xf32>
    %58 = vector.shape_cast %57 : vector<1x16x16x128xf32> to vector<16x16x128xf32>
    %59 = vector.shape_cast %58 : vector<16x16x128xf32> to vector<256x128xf32>
    %60 = arith.truncf %59 : vector<256x128xf32> to vector<256x128xbf16>
    %c7 = arith.constant 7 : index
    %c0_53 = arith.constant 0 : index
    %c0_54 = arith.constant 0 : index
    %61 = vector.load %arg2[%c7, %c0_53, %c0_54] : memref<9x128x128xbf16, #tpu.memory_space<vmem>>, vector<1x128x128xbf16>
    %62 = vector.shape_cast %61 : vector<1x128x128xbf16> to vector<128x128xbf16>
    %cst_55 = arith.constant dense<0.000000e+00> : vector<256x128xf32>
    %63 = tpu.matmul %60, %62, %cst_55 {dimension_numbers = #tpu.dot_dimension_numbers<[1], [0], [0], [1], [0, 0, 1, 1], [], []>} : vector<256x128xbf16>, vector<128x128xbf16>, vector<256x128xf32> -> vector<256x128xf32>
    %64 = arith.addf %56, %63 : vector<256x128xf32>
    %c0_56 = arith.constant 0 : index
    %c2_57 = arith.constant 2 : index
    %c2_58 = arith.constant 2 : index
    %c0_59 = arith.constant 0 : index
    %65 = vector.load %arg1[%c0_56, %c2_57, %c2_58, %c0_59] : memref<1x18x18x128xf32, #tpu.memory_space<vmem>>, vector<1x16x16x128xf32>
    %66 = vector.shape_cast %65 : vector<1x16x16x128xf32> to vector<16x16x128xf32>
    %67 = vector.shape_cast %66 : vector<16x16x128xf32> to vector<256x128xf32>
    %68 = arith.truncf %67 : vector<256x128xf32> to vector<256x128xbf16>
    %c8 = arith.constant 8 : index
    %c0_60 = arith.constant 0 : index
    %c0_61 = arith.constant 0 : index
    %69 = vector.load %arg2[%c8, %c0_60, %c0_61] : memref<9x128x128xbf16, #tpu.memory_space<vmem>>, vector<1x128x128xbf16>
    %70 = vector.shape_cast %69 : vector<1x128x128xbf16> to vector<128x128xbf16>
    %cst_62 = arith.constant dense<0.000000e+00> : vector<256x128xf32>
    %71 = tpu.matmul %68, %70, %cst_62 {dimension_numbers = #tpu.dot_dimension_numbers<[1], [0], [0], [1], [0, 0, 1, 1], [], []>} : vector<256x128xbf16>, vector<128x128xbf16>, vector<256x128xf32> -> vector<256x128xf32>
    %72 = arith.addf %64, %71 : vector<256x128xf32>
    %73 = vector.shape_cast %72 : vector<256x128xf32> to vector<16x16x128xf32>
    %c0_63 = arith.constant 0 : index
    %c0_64 = arith.constant 0 : index
    %c0_65 = arith.constant 0 : index
    %c0_66 = arith.constant 0 : index
    %74 = vector.load %arg3[%c0_63, %c0_64, %c0_65, %c0_66] : memref<1x16x16x128xf32, #tpu.memory_space<vmem>>, vector<1x16x16x128xf32>
    %75 = vector.shape_cast %74 : vector<1x16x16x128xf32> to vector<16x16x128xf32>
    %76 = vector.shape_cast %73 : vector<16x16x128xf32> to vector<1x16x16x128xf32>
    tpu.vector_store %arg3[%c0_63, %c0_64, %c0_65, %c0_66], %76 {strides = array<i32>} : memref<1x16x16x128xf32, #tpu.memory_space<vmem>>, vector<1x16x16x128xf32>,
    %cst_67 = arith.constant dense<0.000000e+00> : vector<128xf32>
    %77 = vector.multi_reduction <add>, %72, %cst_67 [0] : vector<256x128xf32> to vector<128xf32>
    %78 = vector.shape_cast %77 : vector<128xf32> to vector<1x128xf32>
    %79 = arith.mulf %72, %72 : vector<256x128xf32>
    %cst_68 = arith.constant dense<0.000000e+00> : vector<128xf32>
    %80 = vector.multi_reduction <add>, %79, %cst_68 [0] : vector<256x128xf32> to vector<128xf32>
    %81 = vector.shape_cast %80 : vector<128xf32> to vector<1x128xf32>
    %82 = tpu.concatenate %78, %81 in 0 : vector<1x128xf32>, vector<1x128xf32> -> vector<2x128xf32>
    %c0_69 = arith.constant 0 : index
    %c0_70 = arith.constant 0 : index
    %c0_71 = arith.constant 0 : index
    %83 = vector.load %arg4[%c0_69, %c0_70, %c0_71] : memref<1x2x128xf32, #tpu.memory_space<vmem>>, vector<1x2x128xf32>
    %84 = vector.shape_cast %83 : vector<1x2x128xf32> to vector<2x128xf32>
    %85 = vector.shape_cast %82 : vector<2x128xf32> to vector<1x2x128xf32>
    tpu.vector_store %arg4[%c0_69, %c0_70, %c0_71], %85 {strides = array<i32>} : memref<1x2x128xf32, #tpu.memory_space<vmem>>, vector<1x2x128xf32>,
    return
  }
  func.func @transform_0(%arg0: i32) -> (i32, i32, i32, i32) {
    %c0_i32 = arith.constant 0 : i32
    %c0_i32_0 = arith.constant 0 : i32
    %c0_i32_1 = arith.constant 0 : i32
    %c0_i32_2 = arith.constant 0 : i32
    return %arg0, %c0_i32, %c0_i32_0, %c0_i32_1 : i32, i32, i32, i32
  }
  func.func @transform_1(%arg0: i32) -> (i32, i32, i32) {
    %c0_i32 = arith.constant 0 : i32
    %c0_i32_0 = arith.constant 0 : i32
    %c0_i32_1 = arith.constant 0 : i32
    %c0_i32_2 = arith.constant 0 : i32
    return %c0_i32, %c0_i32_0, %c0_i32_1 : i32, i32, i32
  }
  func.func @transform_2(%arg0: i32) -> (i32, i32, i32, i32) {
    %c0_i32 = arith.constant 0 : i32
    %c0_i32_0 = arith.constant 0 : i32
    %c0_i32_1 = arith.constant 0 : i32
    %c0_i32_2 = arith.constant 0 : i32
    return %arg0, %c0_i32, %c0_i32_0, %c0_i32_1 : i32, i32, i32, i32
  }
  func.func @transform_3(%arg0: i32) -> (i32, i32, i32) {
    %c0_i32 = arith.constant 0 : i32
    %c0_i32_0 = arith.constant 0 : i32
    %c0_i32_1 = arith.constant 0 : i32
    return %arg0, %c0_i32, %c0_i32_0 : i32, i32, i32
  }
}

module attributes {stable_mosaic.version = 11 : i64} {
  func.func @_bnrelu_conv3x3_stats_kernel(%arg0: i32, %arg1: memref<1x16x16x128xf32, #tpu.memory_space<vmem>>, %arg2: memref<2x128xf32, #tpu.memory_space<vmem>>, %arg3: memref<9x128x128xbf16, #tpu.memory_space<vmem>>, %arg4: memref<1x16x16x128xf32, #tpu.memory_space<vmem>>, %arg5: memref<1x2x128xf32, #tpu.memory_space<vmem>>, %arg6: memref<18x18x128xf32, #tpu.memory_space<vmem>>) attributes {dimension_semantics = [#tpu.dimension_semantics<parallel>], iteration_bounds = array<i64: 2>, scalar_prefetch = 0 : i64, scratch_operands = 1 : i64, tpu.core_type = #tpu.core_type<tc>, window_params = [{transform_indices = @transform_0, window_bounds = array<i64: 1, 16, 16, 128>}, {pipeline_mode = #tpu.pipeline_mode<synchronous>, transform_indices = @transform_1, window_bounds = array<i64: 2, 128>}, {pipeline_mode = #tpu.pipeline_mode<synchronous>, transform_indices = @transform_2, window_bounds = array<i64: 9, 128, 128>}, {transform_indices = @transform_3, window_bounds = array<i64: 1, 16, 16, 128>}, {transform_indices = @transform_4, window_bounds = array<i64: 1, 2, 128>}]} {
    %c0 = arith.constant 0 : index
    %c0_0 = arith.constant 0 : index
    %0 = vector.load %arg2[%c0, %c0_0] : memref<2x128xf32, #tpu.memory_space<vmem>>, vector<1x128xf32>
    %1 = vector.shape_cast %0 : vector<1x128xf32> to vector<1x1x128xf32>
    %c1 = arith.constant 1 : index
    %c0_1 = arith.constant 0 : index
    %2 = vector.load %arg2[%c1, %c0_1] : memref<2x128xf32, #tpu.memory_space<vmem>>, vector<1x128xf32>
    %3 = vector.shape_cast %2 : vector<1x128xf32> to vector<1x1x128xf32>
    %c0_2 = arith.constant 0 : index
    %c0_3 = arith.constant 0 : index
    %c0_4 = arith.constant 0 : index
    %c0_5 = arith.constant 0 : index
    %4 = vector.load %arg1[%c0_2, %c0_3, %c0_4, %c0_5] : memref<1x16x16x128xf32, #tpu.memory_space<vmem>>, vector<1x16x16x128xf32>
    %5 = vector.shape_cast %4 : vector<1x16x16x128xf32> to vector<16x16x128xf32>
    %6 = vector.broadcast %1 : vector<1x1x128xf32> to vector<16x16x128xf32>
    %7 = arith.mulf %5, %6 : vector<16x16x128xf32>
    %8 = vector.broadcast %3 : vector<1x1x128xf32> to vector<16x16x128xf32>
    %9 = arith.addf %7, %8 : vector<16x16x128xf32>
    %cst = arith.constant 0.000000e+00 : f32
    %10 = vector.broadcast %cst : f32 to vector<16x16x128xf32>
    %11 = arith.maximumf %9, %10 : vector<16x16x128xf32>
    %cst_6 = arith.constant 0.000000e+00 : f32
    %12 = vector.broadcast %cst_6 : f32 to vector<18x18x128xf32>
    %c0_7 = arith.constant 0 : index
    %c0_8 = arith.constant 0 : index
    %c0_9 = arith.constant 0 : index
    %13 = vector.load %arg6[%c0_7, %c0_8, %c0_9] : memref<18x18x128xf32, #tpu.memory_space<vmem>>, vector<18x18x128xf32>
    tpu.vector_store %arg6[%c0_7, %c0_8, %c0_9], %12 {strides = array<i32>} : memref<18x18x128xf32, #tpu.memory_space<vmem>>, vector<18x18x128xf32>,
    %c1_10 = arith.constant 1 : index
    %c1_11 = arith.constant 1 : index
    %c0_12 = arith.constant 0 : index
    %14 = vector.load %arg6[%c1_10, %c1_11, %c0_12] : memref<18x18x128xf32, #tpu.memory_space<vmem>>, vector<16x16x128xf32>
    tpu.vector_store %arg6[%c1_10, %c1_11, %c0_12], %11 {strides = array<i32>} : memref<18x18x128xf32, #tpu.memory_space<vmem>>, vector<16x16x128xf32>,
    %cst_13 = arith.constant 0.000000e+00 : f32
    %15 = vector.broadcast %cst_13 : f32 to vector<256x128xf32>
    %c0_14 = arith.constant 0 : index
    %c0_15 = arith.constant 0 : index
    %c0_16 = arith.constant 0 : index
    %16 = vector.load %arg6[%c0_14, %c0_15, %c0_16] : memref<18x18x128xf32, #tpu.memory_space<vmem>>, vector<16x16x128xf32>
    %17 = vector.shape_cast %16 : vector<16x16x128xf32> to vector<256x128xf32>
    %18 = arith.truncf %17 : vector<256x128xf32> to vector<256x128xbf16>
    %c0_17 = arith.constant 0 : index
    %c0_18 = arith.constant 0 : index
    %c0_19 = arith.constant 0 : index
    %19 = vector.load %arg3[%c0_17, %c0_18, %c0_19] : memref<9x128x128xbf16, #tpu.memory_space<vmem>>, vector<1x128x128xbf16>
    %20 = vector.shape_cast %19 : vector<1x128x128xbf16> to vector<128x128xbf16>
    %cst_20 = arith.constant dense<0.000000e+00> : vector<256x128xf32>
    %21 = tpu.matmul %18, %20, %cst_20 {dimension_numbers = #tpu.dot_dimension_numbers<[1], [0], [0], [1], [0, 0, 1, 1], [], []>} : vector<256x128xbf16>, vector<128x128xbf16>, vector<256x128xf32> -> vector<256x128xf32>
    %22 = arith.addf %15, %21 : vector<256x128xf32>
    %c0_21 = arith.constant 0 : index
    %c1_22 = arith.constant 1 : index
    %c0_23 = arith.constant 0 : index
    %23 = vector.load %arg6[%c0_21, %c1_22, %c0_23] : memref<18x18x128xf32, #tpu.memory_space<vmem>>, vector<16x16x128xf32>
    %24 = vector.shape_cast %23 : vector<16x16x128xf32> to vector<256x128xf32>
    %25 = arith.truncf %24 : vector<256x128xf32> to vector<256x128xbf16>
    %c1_24 = arith.constant 1 : index
    %c0_25 = arith.constant 0 : index
    %c0_26 = arith.constant 0 : index
    %26 = vector.load %arg3[%c1_24, %c0_25, %c0_26] : memref<9x128x128xbf16, #tpu.memory_space<vmem>>, vector<1x128x128xbf16>
    %27 = vector.shape_cast %26 : vector<1x128x128xbf16> to vector<128x128xbf16>
    %cst_27 = arith.constant dense<0.000000e+00> : vector<256x128xf32>
    %28 = tpu.matmul %25, %27, %cst_27 {dimension_numbers = #tpu.dot_dimension_numbers<[1], [0], [0], [1], [0, 0, 1, 1], [], []>} : vector<256x128xbf16>, vector<128x128xbf16>, vector<256x128xf32> -> vector<256x128xf32>
    %29 = arith.addf %22, %28 : vector<256x128xf32>
    %c0_28 = arith.constant 0 : index
    %c2 = arith.constant 2 : index
    %c0_29 = arith.constant 0 : index
    %30 = vector.load %arg6[%c0_28, %c2, %c0_29] : memref<18x18x128xf32, #tpu.memory_space<vmem>>, vector<16x16x128xf32>
    %31 = vector.shape_cast %30 : vector<16x16x128xf32> to vector<256x128xf32>
    %32 = arith.truncf %31 : vector<256x128xf32> to vector<256x128xbf16>
    %c2_30 = arith.constant 2 : index
    %c0_31 = arith.constant 0 : index
    %c0_32 = arith.constant 0 : index
    %33 = vector.load %arg3[%c2_30, %c0_31, %c0_32] : memref<9x128x128xbf16, #tpu.memory_space<vmem>>, vector<1x128x128xbf16>
    %34 = vector.shape_cast %33 : vector<1x128x128xbf16> to vector<128x128xbf16>
    %cst_33 = arith.constant dense<0.000000e+00> : vector<256x128xf32>
    %35 = tpu.matmul %32, %34, %cst_33 {dimension_numbers = #tpu.dot_dimension_numbers<[1], [0], [0], [1], [0, 0, 1, 1], [], []>} : vector<256x128xbf16>, vector<128x128xbf16>, vector<256x128xf32> -> vector<256x128xf32>
    %36 = arith.addf %29, %35 : vector<256x128xf32>
    %c1_34 = arith.constant 1 : index
    %c0_35 = arith.constant 0 : index
    %c0_36 = arith.constant 0 : index
    %37 = vector.load %arg6[%c1_34, %c0_35, %c0_36] : memref<18x18x128xf32, #tpu.memory_space<vmem>>, vector<16x16x128xf32>
    %38 = vector.shape_cast %37 : vector<16x16x128xf32> to vector<256x128xf32>
    %39 = arith.truncf %38 : vector<256x128xf32> to vector<256x128xbf16>
    %c3 = arith.constant 3 : index
    %c0_37 = arith.constant 0 : index
    %c0_38 = arith.constant 0 : index
    %40 = vector.load %arg3[%c3, %c0_37, %c0_38] : memref<9x128x128xbf16, #tpu.memory_space<vmem>>, vector<1x128x128xbf16>
    %41 = vector.shape_cast %40 : vector<1x128x128xbf16> to vector<128x128xbf16>
    %cst_39 = arith.constant dense<0.000000e+00> : vector<256x128xf32>
    %42 = tpu.matmul %39, %41, %cst_39 {dimension_numbers = #tpu.dot_dimension_numbers<[1], [0], [0], [1], [0, 0, 1, 1], [], []>} : vector<256x128xbf16>, vector<128x128xbf16>, vector<256x128xf32> -> vector<256x128xf32>
    %43 = arith.addf %36, %42 : vector<256x128xf32>
    %c1_40 = arith.constant 1 : index
    %c1_41 = arith.constant 1 : index
    %c0_42 = arith.constant 0 : index
    %44 = vector.load %arg6[%c1_40, %c1_41, %c0_42] : memref<18x18x128xf32, #tpu.memory_space<vmem>>, vector<16x16x128xf32>
    %45 = vector.shape_cast %44 : vector<16x16x128xf32> to vector<256x128xf32>
    %46 = arith.truncf %45 : vector<256x128xf32> to vector<256x128xbf16>
    %c4 = arith.constant 4 : index
    %c0_43 = arith.constant 0 : index
    %c0_44 = arith.constant 0 : index
    %47 = vector.load %arg3[%c4, %c0_43, %c0_44] : memref<9x128x128xbf16, #tpu.memory_space<vmem>>, vector<1x128x128xbf16>
    %48 = vector.shape_cast %47 : vector<1x128x128xbf16> to vector<128x128xbf16>
    %cst_45 = arith.constant dense<0.000000e+00> : vector<256x128xf32>
    %49 = tpu.matmul %46, %48, %cst_45 {dimension_numbers = #tpu.dot_dimension_numbers<[1], [0], [0], [1], [0, 0, 1, 1], [], []>} : vector<256x128xbf16>, vector<128x128xbf16>, vector<256x128xf32> -> vector<256x128xf32>
    %50 = arith.addf %43, %49 : vector<256x128xf32>
    %c1_46 = arith.constant 1 : index
    %c2_47 = arith.constant 2 : index
    %c0_48 = arith.constant 0 : index
    %51 = vector.load %arg6[%c1_46, %c2_47, %c0_48] : memref<18x18x128xf32, #tpu.memory_space<vmem>>, vector<16x16x128xf32>
    %52 = vector.shape_cast %51 : vector<16x16x128xf32> to vector<256x128xf32>
    %53 = arith.truncf %52 : vector<256x128xf32> to vector<256x128xbf16>
    %c5 = arith.constant 5 : index
    %c0_49 = arith.constant 0 : index
    %c0_50 = arith.constant 0 : index
    %54 = vector.load %arg3[%c5, %c0_49, %c0_50] : memref<9x128x128xbf16, #tpu.memory_space<vmem>>, vector<1x128x128xbf16>
    %55 = vector.shape_cast %54 : vector<1x128x128xbf16> to vector<128x128xbf16>
    %cst_51 = arith.constant dense<0.000000e+00> : vector<256x128xf32>
    %56 = tpu.matmul %53, %55, %cst_51 {dimension_numbers = #tpu.dot_dimension_numbers<[1], [0], [0], [1], [0, 0, 1, 1], [], []>} : vector<256x128xbf16>, vector<128x128xbf16>, vector<256x128xf32> -> vector<256x128xf32>
    %57 = arith.addf %50, %56 : vector<256x128xf32>
    %c2_52 = arith.constant 2 : index
    %c0_53 = arith.constant 0 : index
    %c0_54 = arith.constant 0 : index
    %58 = vector.load %arg6[%c2_52, %c0_53, %c0_54] : memref<18x18x128xf32, #tpu.memory_space<vmem>>, vector<16x16x128xf32>
    %59 = vector.shape_cast %58 : vector<16x16x128xf32> to vector<256x128xf32>
    %60 = arith.truncf %59 : vector<256x128xf32> to vector<256x128xbf16>
    %c6 = arith.constant 6 : index
    %c0_55 = arith.constant 0 : index
    %c0_56 = arith.constant 0 : index
    %61 = vector.load %arg3[%c6, %c0_55, %c0_56] : memref<9x128x128xbf16, #tpu.memory_space<vmem>>, vector<1x128x128xbf16>
    %62 = vector.shape_cast %61 : vector<1x128x128xbf16> to vector<128x128xbf16>
    %cst_57 = arith.constant dense<0.000000e+00> : vector<256x128xf32>
    %63 = tpu.matmul %60, %62, %cst_57 {dimension_numbers = #tpu.dot_dimension_numbers<[1], [0], [0], [1], [0, 0, 1, 1], [], []>} : vector<256x128xbf16>, vector<128x128xbf16>, vector<256x128xf32> -> vector<256x128xf32>
    %64 = arith.addf %57, %63 : vector<256x128xf32>
    %c2_58 = arith.constant 2 : index
    %c1_59 = arith.constant 1 : index
    %c0_60 = arith.constant 0 : index
    %65 = vector.load %arg6[%c2_58, %c1_59, %c0_60] : memref<18x18x128xf32, #tpu.memory_space<vmem>>, vector<16x16x128xf32>
    %66 = vector.shape_cast %65 : vector<16x16x128xf32> to vector<256x128xf32>
    %67 = arith.truncf %66 : vector<256x128xf32> to vector<256x128xbf16>
    %c7 = arith.constant 7 : index
    %c0_61 = arith.constant 0 : index
    %c0_62 = arith.constant 0 : index
    %68 = vector.load %arg3[%c7, %c0_61, %c0_62] : memref<9x128x128xbf16, #tpu.memory_space<vmem>>, vector<1x128x128xbf16>
    %69 = vector.shape_cast %68 : vector<1x128x128xbf16> to vector<128x128xbf16>
    %cst_63 = arith.constant dense<0.000000e+00> : vector<256x128xf32>
    %70 = tpu.matmul %67, %69, %cst_63 {dimension_numbers = #tpu.dot_dimension_numbers<[1], [0], [0], [1], [0, 0, 1, 1], [], []>} : vector<256x128xbf16>, vector<128x128xbf16>, vector<256x128xf32> -> vector<256x128xf32>
    %71 = arith.addf %64, %70 : vector<256x128xf32>
    %c2_64 = arith.constant 2 : index
    %c2_65 = arith.constant 2 : index
    %c0_66 = arith.constant 0 : index
    %72 = vector.load %arg6[%c2_64, %c2_65, %c0_66] : memref<18x18x128xf32, #tpu.memory_space<vmem>>, vector<16x16x128xf32>
    %73 = vector.shape_cast %72 : vector<16x16x128xf32> to vector<256x128xf32>
    %74 = arith.truncf %73 : vector<256x128xf32> to vector<256x128xbf16>
    %c8 = arith.constant 8 : index
    %c0_67 = arith.constant 0 : index
    %c0_68 = arith.constant 0 : index
    %75 = vector.load %arg3[%c8, %c0_67, %c0_68] : memref<9x128x128xbf16, #tpu.memory_space<vmem>>, vector<1x128x128xbf16>
    %76 = vector.shape_cast %75 : vector<1x128x128xbf16> to vector<128x128xbf16>
    %cst_69 = arith.constant dense<0.000000e+00> : vector<256x128xf32>
    %77 = tpu.matmul %74, %76, %cst_69 {dimension_numbers = #tpu.dot_dimension_numbers<[1], [0], [0], [1], [0, 0, 1, 1], [], []>} : vector<256x128xbf16>, vector<128x128xbf16>, vector<256x128xf32> -> vector<256x128xf32>
    %78 = arith.addf %71, %77 : vector<256x128xf32>
    %79 = vector.shape_cast %78 : vector<256x128xf32> to vector<16x16x128xf32>
    %c0_70 = arith.constant 0 : index
    %c0_71 = arith.constant 0 : index
    %c0_72 = arith.constant 0 : index
    %c0_73 = arith.constant 0 : index
    %80 = vector.load %arg4[%c0_70, %c0_71, %c0_72, %c0_73] : memref<1x16x16x128xf32, #tpu.memory_space<vmem>>, vector<1x16x16x128xf32>
    %81 = vector.shape_cast %80 : vector<1x16x16x128xf32> to vector<16x16x128xf32>
    %82 = vector.shape_cast %79 : vector<16x16x128xf32> to vector<1x16x16x128xf32>
    tpu.vector_store %arg4[%c0_70, %c0_71, %c0_72, %c0_73], %82 {strides = array<i32>} : memref<1x16x16x128xf32, #tpu.memory_space<vmem>>, vector<1x16x16x128xf32>,
    %cst_74 = arith.constant dense<0.000000e+00> : vector<128xf32>
    %83 = vector.multi_reduction <add>, %78, %cst_74 [0] : vector<256x128xf32> to vector<128xf32>
    %84 = vector.shape_cast %83 : vector<128xf32> to vector<1x128xf32>
    %85 = arith.mulf %78, %78 : vector<256x128xf32>
    %cst_75 = arith.constant dense<0.000000e+00> : vector<128xf32>
    %86 = vector.multi_reduction <add>, %85, %cst_75 [0] : vector<256x128xf32> to vector<128xf32>
    %87 = vector.shape_cast %86 : vector<128xf32> to vector<1x128xf32>
    %88 = tpu.concatenate %84, %87 in 0 : vector<1x128xf32>, vector<1x128xf32> -> vector<2x128xf32>
    %c0_76 = arith.constant 0 : index
    %c0_77 = arith.constant 0 : index
    %c0_78 = arith.constant 0 : index
    %89 = vector.load %arg5[%c0_76, %c0_77, %c0_78] : memref<1x2x128xf32, #tpu.memory_space<vmem>>, vector<1x2x128xf32>
    %90 = vector.shape_cast %89 : vector<1x2x128xf32> to vector<2x128xf32>
    %91 = vector.shape_cast %88 : vector<2x128xf32> to vector<1x2x128xf32>
    tpu.vector_store %arg5[%c0_76, %c0_77, %c0_78], %91 {strides = array<i32>} : memref<1x2x128xf32, #tpu.memory_space<vmem>>, vector<1x2x128xf32>,
    return
  }
  func.func @transform_0(%arg0: i32) -> (i32, i32, i32, i32) {
    %c0_i32 = arith.constant 0 : i32
    %c0_i32_0 = arith.constant 0 : i32
    %c0_i32_1 = arith.constant 0 : i32
    %c0_i32_2 = arith.constant 0 : i32
    return %arg0, %c0_i32, %c0_i32_0, %c0_i32_1 : i32, i32, i32, i32
  }
  func.func @transform_1(%arg0: i32) -> (i32, i32) {
    %c0_i32 = arith.constant 0 : i32
    %c0_i32_0 = arith.constant 0 : i32
    %c0_i32_1 = arith.constant 0 : i32
    return %c0_i32, %c0_i32_0 : i32, i32
  }
  func.func @transform_2(%arg0: i32) -> (i32, i32, i32) {
    %c0_i32 = arith.constant 0 : i32
    %c0_i32_0 = arith.constant 0 : i32
    %c0_i32_1 = arith.constant 0 : i32
    %c0_i32_2 = arith.constant 0 : i32
    return %c0_i32, %c0_i32_0, %c0_i32_1 : i32, i32, i32
  }
  func.func @transform_3(%arg0: i32) -> (i32, i32, i32, i32) {
    %c0_i32 = arith.constant 0 : i32
    %c0_i32_0 = arith.constant 0 : i32
    %c0_i32_1 = arith.constant 0 : i32
    %c0_i32_2 = arith.constant 0 : i32
    return %arg0, %c0_i32, %c0_i32_0, %c0_i32_1 : i32, i32, i32, i32
  }
  func.func @transform_4(%arg0: i32) -> (i32, i32, i32) {
    %c0_i32 = arith.constant 0 : i32
    %c0_i32_0 = arith.constant 0 : i32
    %c0_i32_1 = arith.constant 0 : i32
    return %arg0, %c0_i32, %c0_i32_0 : i32, i32, i32
  }
}

module attributes {stable_mosaic.version = 11 : i64} {
  func.func @_bnrelu_kernel(%arg0: i32, %arg1: memref<1x16x16x128xf32, #tpu.memory_space<vmem>>, %arg2: memref<2x128xf32, #tpu.memory_space<vmem>>, %arg3: memref<1x16x16x128xf32, #tpu.memory_space<vmem>>) attributes {dimension_semantics = [#tpu.dimension_semantics<parallel>], iteration_bounds = array<i64: 2>, scalar_prefetch = 0 : i64, scratch_operands = 0 : i64, tpu.core_type = #tpu.core_type<tc>, window_params = [{transform_indices = @transform_0, window_bounds = array<i64: 1, 16, 16, 128>}, {pipeline_mode = #tpu.pipeline_mode<synchronous>, transform_indices = @transform_1, window_bounds = array<i64: 2, 128>}, {transform_indices = @transform_2, window_bounds = array<i64: 1, 16, 16, 128>}]} {
    %c0 = arith.constant 0 : index
    %c0_0 = arith.constant 0 : index
    %0 = vector.load %arg2[%c0, %c0_0] : memref<2x128xf32, #tpu.memory_space<vmem>>, vector<1x128xf32>
    %1 = vector.shape_cast %0 : vector<1x128xf32> to vector<1x1x128xf32>
    %c1 = arith.constant 1 : index
    %c0_1 = arith.constant 0 : index
    %2 = vector.load %arg2[%c1, %c0_1] : memref<2x128xf32, #tpu.memory_space<vmem>>, vector<1x128xf32>
    %3 = vector.shape_cast %2 : vector<1x128xf32> to vector<1x1x128xf32>
    %c0_2 = arith.constant 0 : index
    %c0_3 = arith.constant 0 : index
    %c0_4 = arith.constant 0 : index
    %c0_5 = arith.constant 0 : index
    %4 = vector.load %arg1[%c0_2, %c0_3, %c0_4, %c0_5] : memref<1x16x16x128xf32, #tpu.memory_space<vmem>>, vector<1x16x16x128xf32>
    %5 = vector.shape_cast %4 : vector<1x16x16x128xf32> to vector<16x16x128xf32>
    %6 = vector.broadcast %1 : vector<1x1x128xf32> to vector<16x16x128xf32>
    %7 = arith.mulf %5, %6 : vector<16x16x128xf32>
    %8 = vector.broadcast %3 : vector<1x1x128xf32> to vector<16x16x128xf32>
    %9 = arith.addf %7, %8 : vector<16x16x128xf32>
    %cst = arith.constant 0.000000e+00 : f32
    %10 = vector.broadcast %cst : f32 to vector<16x16x128xf32>
    %11 = arith.maximumf %9, %10 : vector<16x16x128xf32>
    %c0_6 = arith.constant 0 : index
    %c0_7 = arith.constant 0 : index
    %c0_8 = arith.constant 0 : index
    %c0_9 = arith.constant 0 : index
    %12 = vector.load %arg3[%c0_6, %c0_7, %c0_8, %c0_9] : memref<1x16x16x128xf32, #tpu.memory_space<vmem>>, vector<1x16x16x128xf32>
    %13 = vector.shape_cast %12 : vector<1x16x16x128xf32> to vector<16x16x128xf32>
    %14 = vector.shape_cast %11 : vector<16x16x128xf32> to vector<1x16x16x128xf32>
    tpu.vector_store %arg3[%c0_6, %c0_7, %c0_8, %c0_9], %14 {strides = array<i32>} : memref<1x16x16x128xf32, #tpu.memory_space<vmem>>, vector<1x16x16x128xf32>,
    return
  }
  func.func @transform_0(%arg0: i32) -> (i32, i32, i32, i32) {
    %c0_i32 = arith.constant 0 : i32
    %c0_i32_0 = arith.constant 0 : i32
    %c0_i32_1 = arith.constant 0 : i32
    %c0_i32_2 = arith.constant 0 : i32
    return %arg0, %c0_i32, %c0_i32_0, %c0_i32_1 : i32, i32, i32, i32
  }
  func.func @transform_1(%arg0: i32) -> (i32, i32) {
    %c0_i32 = arith.constant 0 : i32
    %c0_i32_0 = arith.constant 0 : i32
    %c0_i32_1 = arith.constant 0 : i32
    return %c0_i32, %c0_i32_0 : i32, i32
  }
  func.func @transform_2(%arg0: i32) -> (i32, i32, i32, i32) {
    %c0_i32 = arith.constant 0 : i32
    %c0_i32_0 = arith.constant 0 : i32
    %c0_i32_1 = arith.constant 0 : i32
    %c0_i32_2 = arith.constant 0 : i32
    return %arg0, %c0_i32, %c0_i32_0, %c0_i32_1 : i32, i32, i32, i32
  }
}

</mosaic_0001>

<bundles_post_ra>
// kernel: vgg_block_forward.5
= control target key start
LH: loop header
LB: loop body
LE: loop exit
PB: predicated region body
PF: predicated region fallthrough
CT: control target
= control target key end

     0   :  { %s415_s9 = smov 0   ;;  %s574_s0 = inlined_call_operand.vmem [shape: f32[2,16,16,128], index: 0, kind: input, shape index: {}]   ;;  %s575_s1 = inlined_call_operand.vmem [shape: f32[2,128], index: 1, kind: input, shape index: {}]   ;;  %s576_s2 = inlined_call_operand.vmem [shape: f32[2,16,16,128], index: 2, kind: output, shape index: {}]  }
   0x1 LB: > { %s369_s10 = sadd.s32 4294967295, %s398_s9   ;;  %p373_p0 = scmp.ge.s32.totalorder %s398_s9, 1  ;;  %s398_s9 = sphi %s415_s9, %s12_s9  }
   0x2   : > { %p112_p1 = scmp.lt.s32.totalorder %s398_s9, 3 }
   0x4   : > { %p113_p2 = pnand %p373_p0, %p112_p1 }
   0x5   : > { %p134_p3 = scmp.lt.s32.totalorder (!%p113_p2), %s369_s10, 1 }
   0x6   : > { %116 = sbr.rel (%p113_p2) target bundleno = 44 (0x2c), region = 28 }
   0xb   : > { %s578_s10 = smov (!%p134_p3, %s369_s10), 1  ;;  %v426_v0 = vld [vmem:[%s575_s1] ss:$0 sm:$0xff]  ;;  %v436_v1 = vld [vmem:[%s575_s1 + $0x1] ss:$0 sm:$0xff] }
   0xc   : > { %s382_s11 = sshll.u32 %s578_s10, 8 }
   0xd   : > { %s431_s16 = scalar_lea.vmem %s574_s0, %s382_s11  ;;  %s459_s21 = scalar_lea.vmem %s576_s2, %s382_s11 }
   0xe   : > { %v146_v2 = vld [vmem:[%s431_s16] sm:$0xff]  ;;  %v147_v3 = vld [vmem:[%s431_s16 + $0x8] sm:$0xff]  ;;  %v148_v4 = vld [vmem:[%s431_s16 + $0x10] sm:$0xff] }
   0xf   : > { %v182_v5 = vmul.f32 %v426_v0, %v146_v2  ;;  %v183_v6 = vmul.f32 %v426_v0, %v147_v3  ;;  %v184_v7 = vmul.f32 %v426_v0, %v148_v4  ;;  %v149_v8 = vld [vmem:[%s431_s16 + $0x18] sm:$0xff]  ;;  %v150_v9 = vld [vmem:[%s431_s16 + $0x20] sm:$0xff]  ;;  %v151_v10 = vld [vmem:[%s431_s16 + $0x28] sm:$0xff] }
  0x10   : > { %v185_v11 = vmul.f32 %v426_v0, %v149_v8  ;;  %v186_v12 = vmul.f32 %v426_v0, %v150_v9  ;;  %v187_v13 = vmul.f32 %v426_v0, %v151_v10  ;;  %v152_v14 = vld [vmem:[%s431_s16 + $0x30] sm:$0xff]  ;;  %v153_v15 = vld [vmem:[%s431_s16 + $0x38] sm:$0xff]  ;;  %v154_v24 = vld [vmem:[%s431_s16 + $0x40] sm:$0xff] }
  0x11   : > { %v218_v16 = vadd.f32 %v436_v1, %v182_v5  ;;  %v219_v17 = vadd.f32 %v436_v1, %v183_v6  ;;  %v220_v18 = vadd.f32 %v436_v1, %v184_v7  ;;  %v188_v19 = vmul.f32 %v426_v0, %v152_v14  ;;  %v155_v25 = vld [vmem:[%s431_s16 + $0x48] sm:$0xff]  ;;  %v156_v26 = vld [vmem:[%s431_s16 + $0x50] sm:$0xff]  ;;  %v157_v31 = vld [vmem:[%s431_s16 + $0x58] sm:$0xff] }
  0x12   : > { %v221_v20 = vadd.f32 %v436_v1, %v185_v11  ;;  %v222_v21 = vadd.f32 %v436_v1, %v186_v12  ;;  %v223_v22 = vadd.f32 %v436_v1, %v187_v13  ;;  %v189_v23 = vmul.f32 %v426_v0, %v153_v15  ;;  %v158_v32 = vld [vmem:[%s431_s16 + $0x60] sm:$0xff]  ;;  %v159_v33 = vld [vmem:[%s431_s16 + $0x68] sm:$0xff]  ;;  %v160_v38 = vld [vmem:[%s431_s16 + $0x70] sm:$0xff] }
  0x13   : > { %v250_v27 = vmax.f32 %v218_v16, 0.0  ;;  %v251_v28 = vmax.f32 %v219_v17, 0.0  ;;  %v252_v29 = vmax.f32 %v220_v18, 0.0  ;;  %v224_v30 = vadd.f32 %v436_v1, %v188_v19  ;;  %v161_v43 = vld [vmem:[%s431_s16 + $0x78] sm:$0xff]  ;;  %v162_v56 = vld [vmem:[%s431_s16 + $0x80] sm:$0xff]  ;;  %v163_v57 = vld [vmem:[%s431_s16 + $0x88] sm:$0xff] }
  0x14   : > { %v253_v34 = vmax.f32 %v221_v20, 0.0  ;;  %v254_v35 = vmax.f32 %v222_v21, 0.0  ;;  %v255_v36 = vmax.f32 %v223_v22, 0.0  ;;  %v225_v37 = vadd.f32 %v436_v1, %v189_v23  ;;  %v164_v58 = vld [vmem:[%s431_s16 + $0x90] sm:$0xff]  ;;  %v165_v63 = vld [vmem:[%s431_s16 + $0x98] sm:$0xff]  ;;  %v166_v2 = vld [vmem:[%s431_s16 + $0xa0] sm:$0xff] }
  0x15   : > { %282 = vst [vmem:[%s459_s21] sm:$0xff] %v250_v27  ;;  %283 = vst [vmem:[%s459_s21 + $0x8] sm:$0xff] %v251_v28  ;;  %v256_v39 = vmax.f32 %v224_v30, 0.0  ;;  %v190_v40 = vmul.f32 %v426_v0, %v154_v24  ;;  %v191_v41 = vmul.f32 %v426_v0, %v155_v25  ;;  %v192_v42 = vmul.f32 %v426_v0, %v156_v26  ;;  %v167_v3 = vld [vmem:[%s431_s16 + $0xa8] sm:$0xff]  ;;  %v168_v8 = vld [vmem:[%s431_s16 + $0xb0] sm:$0xff] }
  0x16   : > { %284 = vst [vmem:[%s459_s21 + $0x10] sm:$0xff] %v252_v29  ;;  %285 = vst [vmem:[%s459_s21 + $0x18] sm:$0xff] %v253_v34  ;;  %v257_v44 = vmax.f32 %v225_v37, 0.0  ;;  %v193_v45 = vmul.f32 %v426_v0, %v157_v31  ;;  %v194_v46 = vmul.f32 %v426_v0, %v158_v32  ;;  %v195_v47 = vmul.f32 %v426_v0, %v159_v33  ;;  %v169_v13 = vld [vmem:[%s431_s16 + $0xb8] sm:$0xff]  ;;  %v170_v26 = vld [vmem:[%s431_s16 + $0xc0] sm:$0xff] }
  0x17   : > { %286 = vst [vmem:[%s459_s21 + $0x20] sm:$0xff] %v254_v35  ;;  %287 = vst [vmem:[%s459_s21 + $0x28] sm:$0xff] %v255_v36  ;;  %v226_v48 = vadd.f32 %v436_v1, %v190_v40  ;;  %v227_v49 = vadd.f32 %v436_v1, %v191_v41  ;;  %v228_v50 = vadd.f32 %v436_v1, %v192_v42  ;;  %v171_v27 = vld [vmem:[%s431_s16 + $0xc8] sm:$0xff]  ;;  %v172_v28 = vld [vmem:[%s431_s16 + $0xd0] sm:$0xff] }
  0x18   : > { %288 = vst [vmem:[%s459_s21 + $0x30] sm:$0xff] %v256_v39  ;;  %v196_v51 = vmul.f32 %v426_v0, %v160_v38  ;;  %289 = vst [vmem:[%s459_s21 + $0x38] sm:$0xff] %v257_v44  ;;  %v229_v52 = vadd.f32 %v436_v1, %v193_v45  ;;  %v230_v53 = vadd.f32 %v436_v1, %v194_v46  ;;  %v173_v33 = vld [vmem:[%s431_s16 + $0xd8] sm:$0xff]  ;;  %v174_v34 = vld [vmem:[%s431_s16 + $0xe0] sm:$0xff] }
  0x19   : > { %v231_v54 = vadd.f32 %v436_v1, %v195_v47  ;;  %v197_v55 = vmul.f32 %v426_v0, %v161_v43  ;;  %v258_v59 = vmax.f32 %v226_v48, 0.0  ;;  %v259_v60 = vmax.f32 %v227_v49, 0.0  ;;  %v175_v35 = vld [vmem:[%s431_s16 + $0xe8] sm:$0xff]  ;;  %v176_v40 = vld [vmem:[%s431_s16 + $0xf0] sm:$0xff]  ;;  %v177_v45 = vld [vmem:[%s431_s16 + $0xf8] sm:$0xff] }
  0x1a   : > { %v260_v61 = vmax.f32 %v228_v50, 0.0  ;;  %v232_v62 = vadd.f32 %v436_v1, %v196_v51  ;;  %v261_v4 = vmax.f32 %v229_v52, 0.0  ;;  %v262_v5 = vmax.f32 %v230_v53, 0.0 }
  0x1b   : > { %v263_v6 = vmax.f32 %v231_v54, 0.0  ;;  %v233_v7 = vadd.f32 %v436_v1, %v197_v55  ;;  %290 = vst [vmem:[%s459_s21 + $0x40] sm:$0xff] %v258_v59  ;;  %291 = vst [vmem:[%s459_s21 + $0x48] sm:$0xff] %v259_v60  ;;  %v198_v10 = vmul.f32 %v426_v0, %v162_v56  ;;  %v199_v11 = vmul.f32 %v426_v0, %v163_v57 }
  0x1c   : > { %292 = vst [vmem:[%s459_s21 + $0x50] sm:$0xff] %v260_v61  ;;  %v264_v9 = vmax.f32 %v232_v62, 0.0  ;;  %v200_v12 = vmul.f32 %v426_v0, %v164_v58  ;;  %293 = vst [vmem:[%s459_s21 + $0x58] sm:$0xff] %v261_v4  ;;  %v201_v15 = vmul.f32 %v426_v0, %v165_v63  ;;  %v202_v16 = vmul.f32 %v426_v0, %v166_v2 }
  0x1d   : > { %294 = vst [vmem:[%s459_s21 + $0x60] sm:$0xff] %v262_v5  ;;  %295 = vst [vmem:[%s459_s21 + $0x68] sm:$0xff] %v263_v6  ;;  %v265_v14 = vmax.f32 %v233_v7, 0.0  ;;  %v203_v17 = vmul.f32 %v426_v0, %v167_v3  ;;  %v234_v18 = vadd.f32 %v436_v1, %v198_v10  ;;  %v235_v19 = vadd.f32 %v436_v1, %v199_v11 }
  0x1e   : > { %296 = vst [vmem:[%s459_s21 + $0x70] sm:$0xff] %v264_v9  ;;  %v236_v20 = vadd.f32 %v436_v1, %v200_v12  ;;  %v204_v21 = vmul.f32 %v426_v0, %v168_v8  ;;  %v237_v22 = vadd.f32 %v436_v1, %v201_v15  ;;  %v238_v23 = vadd.f32 %v436_v1, %v202_v16 }
  0x1f   : > { %297 = vst [vmem:[%s459_s21 + $0x78] sm:$0xff] %v265_v14  ;;  %v239_v24 = vadd.f32 %v436_v1, %v203_v17  ;;  %v205_v25 = vmul.f32 %v426_v0, %v169_v13  ;;  %v266_v29 = vmax.f32 %v234_v18, 0.0  ;;  %v267_v30 = vmax.f32 %v235_v19, 0.0 }
  0x20   : > { %v268_v31 = vmax.f32 %v236_v20, 0.0  ;;  %v240_v32 = vadd.f32 %v436_v1, %v204_v21  ;;  %v269_v36 = vmax.f32 %v237_v22, 0.0  ;;  %v270_v37 = vmax.f32 %v238_v23, 0.0 }
  0x21   : > { %v271_v38 = vmax.f32 %v239_v24, 0.0  ;;  %v241_v39 = vadd.f32 %v436_v1, %v205_v25  ;;  %298 = vst [vmem:[%s459_s21 + $0x80] sm:$0xff] %v266_v29  ;;  %299 = vst [vmem:[%s459_s21 + $0x88] sm:$0xff] %v267_v30  ;;  %v206_v42 = vmul.f32 %v426_v0, %v170_v26  ;;  %v207_v43 = vmul.f32 %v426_v0, %v171_v27 }
  0x22   : > { %300 = vst [vmem:[%s459_s21 + $0x90] sm:$0xff] %v268_v31  ;;  %v272_v41 = vmax.f32 %v240_v32, 0.0  ;;  %v208_v44 = vmul.f32 %v426_v0, %v172_v28  ;;  %301 = vst [vmem:[%s459_s21 + $0x98] sm:$0xff] %v269_v36  ;;  %v209_v47 = vmul.f32 %v426_v0, %v173_v33  ;;  %v210_v48 = vmul.f32 %v426_v0, %v174_v34 }
  0x23   : > { %302 = vst [vmem:[%s459_s21 + $0xa0] sm:$0xff] %v270_v37  ;;  %303 = vst [vmem:[%s459_s21 + $0xa8] sm:$0xff] %v271_v38  ;;  %v273_v46 = vmax.f32 %v241_v39, 0.0  ;;  %v211_v49 = vmul.f32 %v426_v0, %v175_v35  ;;  %v242_v50 = vadd.f32 %v436_v1, %v206_v42  ;;  %v243_v51 = vadd.f32 %v436_v1, %v207_v43 }
  0x24   : > { %304 = vst [vmem:[%s459_s21 + $0xb0] sm:$0xff] %v272_v41  ;;  %v244_v52 = vadd.f32 %v436_v1, %v208_v44  ;;  %v212_v53 = vmul.f32 %v426_v0, %v176_v40  ;;  %v245_v54 = vadd.f32 %v436_v1, %v209_v47  ;;  %v246_v55 = vadd.f32 %v436_v1, %v210_v48 }
  0x25   : > { %305 = vst [vmem:[%s459_s21 + $0xb8] sm:$0xff] %v273_v46  ;;  %v247_v56 = vadd.f32 %v436_v1, %v211_v49  ;;  %v213_v57 = vmul.f32 %v426_v0, %v177_v45  ;;  %v274_v58 = vmax.f32 %v242_v50, 0.0  ;;  %v275_v59 = vmax.f32 %v243_v51, 0.0 }
  0x26   : > { %v276_v60 = vmax.f32 %v244_v52, 0.0  ;;  %v248_v61 = vadd.f32 %v436_v1, %v212_v53  ;;  %v277_v62 = vmax.f32 %v245_v54, 0.0  ;;  %v278_v63 = vmax.f32 %v246_v55, 0.0 }
  0x27   : > { %v279_v2 = vmax.f32 %v247_v56, 0.0  ;;  %v249_v3 = vadd.f32 %v436_v1, %v213_v57  ;;  %306 = vst [vmem:[%s459_s21 + $0xc0] sm:$0xff] %v274_v58  ;;  %307 = vst [vmem:[%s459_s21 + $0xc8] sm:$0xff] %v275_v59 }
  0x28   : > { %308 = vst [vmem:[%s459_s21 + $0xd0] sm:$0xff] %v276_v60  ;;  %v280_v4 = vmax.f32 %v248_v61, 0.0  ;;  %309 = vst [vmem:[%s459_s21 + $0xd8] sm:$0xff] %v277_v62 }
  0x29   : > { %310 = vst [vmem:[%s459_s21 + $0xe0] sm:$0xff] %v278_v63  ;;  %311 = vst [vmem:[%s459_s21 + $0xe8] sm:$0xff] %v279_v2  ;;  %v281_v0 = vmax.f32 %v249_v3, 0.0 }
  0x2a   : > { %312 = vst [vmem:[%s459_s21 + $0xf0] sm:$0xff] %v280_v4 }
  0x2b   : > { %313 = vst [vmem:[%s459_s21 + $0xf8] sm:$0xff] %v281_v0 }
  0x2c PF: > { %s12_s9 = sadd.s32 1, %s398_s9  }
  0x2d   : > { %p9_p4 = scmp.ge.s32.totalorder %s12_s9, 4  }
  0x2f   :  { %11 = sbr.rel (!%p9_p4) target bundleno = 1 (0x1), region = 58 }

// kernel: vgg_block_forward.3
= control target key start
LH: loop header
LB: loop body
LE: loop exit
PB: predicated region body
PF: predicated region fallthrough
CT: control target
= control target key end

     0   :  { %s4278_s12 = smov 0   ;;  %s5399_s0 = inlined_call_operand.vmem [shape: f32[2,18,18,128], index: 0, kind: input, shape index: {}]   ;;  %s5400_s1 = inlined_call_operand.vmem [shape: bf16[9,128,128], index: 1, kind: input, shape index: {}]   ;;  %s5401_s2 = inlined_call_operand.vmem [shape: f32[2,16,16,128], index: 2, kind: output, shape index: {0}]   ;;  %s5402_s3 = inlined_call_operand.vmem [shape: f32[2,2,128], index: 3, kind: output, shape index: {1}]  }
   0x1 LB: > { %s3101_s13 = sadd.s32 4294967295, %s4256_s12   ;;  %p3105_p0 = scmp.ge.s32.totalorder %s4256_s12, 1  ;;  %s4256_s12 = sphi %s4278_s12, %s14_s12  }
   0x2   : > { %p140_p1 = scmp.lt.s32.totalorder %s4256_s12, 3 }
   0x4   : > { %p141_p2 = pnand %p3105_p0, %p140_p1 }
   0x6   : > { %144 = sbr.rel (%p141_p2) target bundleno = 550 (0x226), region = 28 }
   0xb   : > { %v4178_v0 = vld [vmem:[%s5400_s1 + $0x78] sm:$0xff]   ;;  %p168_p3 = scmp.lt.s32.totalorder %s3101_s13, 1  ;;  %v4179_v1 = vld [vmem:[%s5400_s1 + $0x70] sm:$0xff]   ;;  %v4180_v2 = vld [vmem:[%s5400_s1 + $0x68] sm:$0xff]   ;;  %vm3012_vm0 = vcmask 1040384  }
   0xc   : > { %3721 = vmatprep.subr.bf16.mxu0 %v4178_v0  ;;  %4153 = vmatprep.subr.bf16.mxu1 %v4178_v0  ;;  %v4181_v3 = vld [vmem:[%s5400_s1 + $0x60] sm:$0xff]   ;;  %v4182_v10 = vld [vmem:[%s5400_s1 + $0x58] sm:$0xff]   ;;  %v4183_v11 = vld [vmem:[%s5400_s1 + $0x50] sm:$0xff]  }
   0xd   : > { %s5486_s13 = smov (!%p168_p3, %s3101_s13), 1  ;;  %3722 = vmatpush3.bf16.msra.mxu0 %v4178_v0  ;;  %4161 = vmatpush3.bf16.msra.mxu1 %v4178_v0  ;;  %v4184_v12 = vld [vmem:[%s5400_s1 + $0x48] sm:$0xff]   ;;  %v4185_v13 = vld [vmem:[%s5400_s1 + $0x40] sm:$0xff]   ;;  %v4186_v18 = vld [vmem:[%s5400_s1 + $0x38] sm:$0xff]  }
   0xe   : > { %3723 = vmatprep.subr.bf16.mxu0 %v4179_v1  ;;  %4154 = vmatprep.subr.bf16.mxu1 %v4179_v1  ;;  %s4169_s20 = smul.u32 432, %s5486_s13  ;;  %v4187_v19 = vld [vmem:[%s5400_s1 + $0xb8] sm:$0xff]   ;;  %v4188_v26 = vld [vmem:[%s5400_s1 + $0x30] sm:$0xff]   ;;  %v4190_v34 = vld [vmem:[%s5400_s1 + $0x28] sm:$0xff]  }
   0xf   : > { %v4189_v27 = vld [vmem:[%s5400_s1 + $0xb0] sm:$0xff]   ;;  %v4191_v35 = vld [vmem:[%s5400_s1 + $0xa8] sm:$0xff]   ;;  %v4192_v42 = vld [vmem:[%s5400_s1 + $0x20] sm:$0xff]  }
  0x10   : > { %s4301_s23 = scalar_lea.vmem %s5399_s0, %s4169_s20  ;;  %v4193_v43 = vld [vmem:[%s5400_s1 + $0xa0] sm:$0xff]   ;;  %v4194_v50 = vld [vmem:[%s5400_s1 + $0x18] sm:$0xff]   ;;  %v4196_v58 = vld [vmem:[%s5400_s1 + $0x10] sm:$0xff]   ;;  %s3109_s20 = sshll.u32 %s5486_s13, 1 }
  0x11   : > { %3724 = vmatpush3.bf16.msra.mxu0 %v4179_v1  ;;  %4162 = vmatpush3.bf16.msra.mxu1 %v4179_v1  ;;  %v247_v4 = vld [vmem:[%s4301_s23 + $0x1] sm:$0xff]  ;;  %v248_v5 = vld [vmem:[%s4301_s23 + $0x9] sm:$0xff]  ;;  %v249_v14 = vld [vmem:[%s4301_s23 + $0x19] sm:$0xff]  ;;  %s181_s24 = scalar_lea.vmem %s5402_s3, %s3109_s20 }
  0x12   : > { %3725 = vmatprep.subr.bf16.mxu0 %v4180_v2  ;;  %4155 = vmatprep.subr.bf16.mxu1 %v4180_v2  ;;  %v263_v6 = vld [vmem:[%s4301_s23 + $0xc1] sm:$0xff]  ;;  %v279_v7 = vpack.c.bf16 %v248_v5, %v247_v4  ;;  %v264_v8 = vld [vmem:[%s4301_s23 + $0xc9] sm:$0xff]  ;;  %v265_v16 = vld [vmem:[%s4301_s23 + $0xd9] sm:$0xff] }
  0x13   : > { %v4310_v9 = vpack.c.bf16 %v264_v8, %v263_v6  ;;  %v250_v15 = vld [vmem:[%s4301_s23 + $0x21] sm:$0xff]  ;;  %v251_v20 = vld [vmem:[%s4301_s23 + $0x31] sm:$0xff]  ;;  %v252_v21 = vld [vmem:[%s4301_s23 + $0x39] sm:$0xff] }
  0x14   : > { %3737 = vmatprep.mubr.bf16.mxu0 %v279_v7  ;;  %v266_v17 = vld [vmem:[%s4301_s23 + $0xe1] sm:$0xff]  ;;  %v4337_v22 = vpack.c.bf16 %v250_v15, %v249_v14  ;;  %v267_v24 = vld [vmem:[%s4301_s23 + $0xf1] sm:$0xff]  ;;  %v268_v25 = vld [vmem:[%s4301_s23 + $0xf9] sm:$0xff]  ;;  %v4349_v28 = vpack.c.bf16 %v252_v21, %v251_v20 }
  0x15   : > { %3726 = vmatpush3.bf16.msra.mxu0 %v4180_v2  ;;  %4163 = vmatpush3.bf16.msra.mxu1 %v4180_v2  ;;  %v4339_v23 = vpack.c.bf16 %v266_v17, %v265_v16  ;;  %v4351_v29 = vpack.c.bf16 %v268_v25, %v267_v24  ;;  %v253_v30 = vld [vmem:[%s4301_s23 + $0x49] sm:$0xff]  ;;  %v254_v31 = vld [vmem:[%s4301_s23 + $0x51] sm:$0xff]  ;;  %v255_v36 = vld [vmem:[%s4301_s23 + $0x61] sm:$0xff] }
  0x16   : > { %3727 = vmatprep.subr.bf16.mxu0 %v4181_v3  ;;  %4156 = vmatprep.subr.bf16.mxu1 %v4181_v3  ;;  %v269_v32 = vld [vmem:[%s4301_s23 + $0x109] sm:$0xff]  ;;  %v270_v33 = vld [vmem:[%s4301_s23 + $0x111] sm:$0xff]  ;;  %v271_v38 = vld [vmem:[%s4301_s23 + $0x121] sm:$0xff]  ;;  %v4370_v39 = vpack.c.bf16 %v254_v31, %v253_v30 }
  0x17   : > { %3753 = vmatprep.mubr.bf16.mxu1 %v4310_v9  ;;  %v256_v37 = vld [vmem:[%s4301_s23 + $0x69] sm:$0xff]  ;;  %v4372_v40 = vpack.c.bf16 %v270_v33, %v269_v32  ;;  %v257_v46 = vld [vmem:[%s4301_s23 + $0x79] sm:$0xff]  ;;  %v258_v47 = vld [vmem:[%s4301_s23 + $0x81] sm:$0xff] }
  0x18   : > { %v272_v41 = vld [vmem:[%s4301_s23 + $0x129] sm:$0xff]  ;;  %v4381_v44 = vpack.c.bf16 %v256_v37, %v255_v36  ;;  %v273_v48 = vld [vmem:[%s4301_s23 + $0x139] sm:$0xff]  ;;  %v274_v49 = vld [vmem:[%s4301_s23 + $0x141] sm:$0xff]  ;;  %v4401_v54 = vpack.c.bf16 %v258_v47, %v257_v46 }
  0x19   : > { %3728 = vmatpush3.bf16.msra.mxu0 %v4181_v3  ;;  %4164 = vmatpush3.bf16.msra.mxu1 %v4181_v3  ;;  %v4383_v45 = vpack.c.bf16 %v272_v41, %v271_v38  ;;  %v4195_v51 = vld [vmem:[%s5400_s1 + $0x98] sm:$0xff]   ;;  %v4403_v55 = vpack.c.bf16 %v274_v49, %v273_v48  ;;  %v4197_v59 = vld [vmem:[%s5400_s1 + $0x90] sm:$0xff]   ;;  %v4198_v2 = vld [vmem:[%s5400_s1 + $0x8] sm:$0xff]  }
  0x1a   : > { %3729 = vmatprep.subr.bf16.mxu0 %v4182_v10  ;;  %4157 = vmatprep.subr.bf16.mxu1 %v4182_v10  ;;  %v259_v52 = vld [vmem:[%s4301_s23 + $0x91] sm:$0xff]  ;;  %v260_v53 = vld [vmem:[%s4301_s23 + $0x99] sm:$0xff]  ;;  %v261_v62 = vld [vmem:[%s4301_s23 + $0xa9] sm:$0xff] }
  0x1b   : > { %v275_v56 = vld [vmem:[%s4301_s23 + $0x151] sm:$0xff]  ;;  %v276_v57 = vld [vmem:[%s4301_s23 + $0x159] sm:$0xff]  ;;  %v4413_v60 = vpack.c.bf16 %v260_v53, %v259_v52  ;;  %v277_v0 = vld [vmem:[%s4301_s23 + $0x169] sm:$0xff] }
  0x1c   : > { %v4415_v61 = vpack.c.bf16 %v276_v57, %v275_v56  ;;  %v262_v63 = vld [vmem:[%s4301_s23 + $0xb1] sm:$0xff]  ;;  %v4199_v3 = vld [vmem:[%s5400_s1 + $0x88] sm:$0xff]   ;;  %v183_v4 = vld [vmem:[%s4301_s23] sm:$0xff] }
  0x1d   : > { %3730 = vmatpush3.bf16.msra.mxu0 %v4182_v10  ;;  %4165 = vmatpush3.bf16.msra.mxu1 %v4182_v10  ;;  %v278_v1 = vld [vmem:[%s4301_s23 + $0x171] sm:$0xff]  ;;  %v4432_v5 = vpack.c.bf16 %v262_v63, %v261_v62  ;;  %v184_v7 = vld [vmem:[%s4301_s23 + $0x8] sm:$0xff]  ;;  %v186_v16 = vld [vmem:[%s4301_s23 + $0x20] sm:$0xff] }
  0x1e   : > { %3731 = vmatprep.subr.bf16.mxu0 %v4183_v11  ;;  %4158 = vmatprep.subr.bf16.mxu1 %v4183_v11  ;;  %v4434_v6 = vpack.c.bf16 %v278_v1, %v277_v0  ;;  %v730_v8 = vld [vmem:[%s4301_s23 + $0x2] sm:$0xff]  ;;  %v731_v10 = vld [vmem:[%s4301_s23 + $0xa] sm:$0xff]  ;;  %v185_v15 = vld [vmem:[%s4301_s23 + $0x18] sm:$0xff] }
  0x1f   : > { %v762_v14 = vpack.c.bf16 %v731_v10, %v730_v8  ;;  %v732_v17 = vld [vmem:[%s4301_s23 + $0x1a] sm:$0xff]  ;;  %v187_v21 = vld [vmem:[%s4301_s23 + $0x30] sm:$0xff]  ;;  %v4206_v47 = vld [vmem:[%s5400_s1 + $0xe8] sm:$0xff]  }
  0x20   : > { %v4203_v20 = vld [vmem:[%s5400_s1 + $0x138] sm:$0xff]   ;;  %v4204_v33 = vld [vmem:[%s5400_s1 + $0xf0] sm:$0xff]   ;;  %v191_v41 = vld [vmem:[%s4301_s23 + $0x60] sm:$0xff] }
  0x21   : > { %3732 = vmatpush3.bf16.msra.mxu0 %v4183_v11  ;;  %4166 = vmatpush3.bf16.msra.mxu1 %v4183_v11  ;;  %v4200_v11 = vld [vmem:[%s5400_s1] sm:$0xff]   ;;  %v188_v24 = vld [vmem:[%s4301_s23 + $0x38] sm:$0xff]  ;;  %v736_v36 = vld [vmem:[%s4301_s23 + $0x4a] sm:$0xff] }
  0x22   : > { %3733 = vmatprep.subr.bf16.mxu0 %v4184_v12  ;;  %4159 = vmatprep.subr.bf16.mxu1 %v4184_v12  ;;  %v734_v25 = vld [vmem:[%s4301_s23 + $0x32] sm:$0xff]  ;;  %v4465_v31 = vpack.c.bf16 %v188_v24, %v187_v21  ;;  %v739_v46 = vld [vmem:[%s4301_s23 + $0x6a] sm:$0xff]  ;;  %v4208_v53 = vld [vmem:[%s5400_s1 + $0xe0] sm:$0xff]  }
  0x23   : > { %v4205_v37 = vld [vmem:[%s5400_s1 + $0x130] sm:$0xff]   ;;  %v4207_v48 = vld [vmem:[%s5400_s1 + $0x128] sm:$0xff]   ;;  %v193_v56 = vld [vmem:[%s4301_s23 + $0x78] sm:$0xff] }
  0x24   : > { %v737_v38 = vld [vmem:[%s4301_s23 + $0x52] sm:$0xff]  ;;  %v194_v57 = vld [vmem:[%s4301_s23 + $0x80] sm:$0xff]  ;;  %v747_v21 = vld [vmem:[%s4301_s23 + $0xca] sm:$0xff] }
  0x25   : > { %3734 = vmatpush3.bf16.msra.mxu0 %v4184_v12  ;;  %4167 = vmatpush3.bf16.msra.mxu1 %v4184_v12  ;;  %v4201_v12 = vld [vmem:[%s5400_s1 + $0x80] sm:$0xff]   ;;  %v195_v63 = vld [vmem:[%s4301_s23 + $0x90] sm:$0xff]  ;;  %v196_v0 = vld [vmem:[%s4301_s23 + $0x98] sm:$0xff] }
  0x26   : > { %3735 = vmatprep.subr.bf16.mxu0 %v4185_v13  ;;  %4160 = vmatprep.subr.bf16.mxu1 %v4185_v13  ;;  %v4209_v62 = vld [vmem:[%s5400_s1 + $0x120] sm:$0xff]   ;;  %v742_v1 = vld [vmem:[%s4301_s23 + $0x92] sm:$0xff]  ;;  %v4529_v10 = vpack.c.bf16 %v196_v0, %v195_v63  ;;  %v4214_v24 = vld [vmem:[%s5400_s1 + $0xc8] sm:$0xff]  }
  0x27   : > { %v205_v0 = vld [vmem:[%s4301_s23 + $0x108] sm:$0xff] }
  0x29   : > { %3736 = vmatpush3.bf16.msra.mxu0 %v4185_v13  ;;  %4168 = vmatpush3.bf16.msra.mxu1 %v4185_v13  ;;  %v215_v13 = vpack.c.bf16 %v184_v7, %v183_v4  ;;  %v4211_v4 = vld [vmem:[%s5400_s1 + $0x118] sm:$0xff]   ;;  %v4525_v7 = vpack.c.bf16 %v194_v57, %v193_v56 }
  0x2a   : > { %3769 = vmatprep.subr.bf16.mxu1 %v4186_v18  ;;  %3817 = vmatprep.subr.bf16.mxu0 %v4187_v19  ;;  %v4218_v56 = vld [vmem:[%s5400_s1 + $0x178] sm:$0xff]  }
  0x2b   : > { %v4219_v57 = vld [vmem:[%s5400_s1 + $0x1b8] sm:$0xff]  }
  0x2c   : > { %3738 = vmatmul.mubr.bf16.vlgmr.msra.gmra.mxu0 %v4337_v22  ;;  %3754 = vmatmul.mubr.bf16.vlgmr.msra.gmra.mxu1 %v4339_v23 }
  0x2d   : > { %3770 = vmatpush3.bf16.msra.mxu1 %v4186_v18  ;;  %3818 = vmatpush3.bf16.msra.mxu0 %v4187_v19  ;;  %v733_v18 = vld [vmem:[%s4301_s23 + $0x22] sm:$0xff]  ;;  %v4202_v19 = vld [vmem:[%s5400_s1 + $0xf8] sm:$0xff]  }
  0x2e   : > { %3771 = vmatprep.subr.bf16.mxu1 %v4188_v26  ;;  %3819 = vmatprep.subr.bf16.mxu0 %v4189_v27  ;;  %v4463_v30 = vpack.c.bf16 %v733_v18, %v732_v17  ;;  %v4213_v17 = vld [vmem:[%s5400_s1 + $0x110] sm:$0xff]   ;;  %v199_v18 = vld [vmem:[%s4301_s23 + $0xc0] sm:$0xff] }
  0x2f   : > { %3741 = vmatprep.mubr.bf16.mxu0 %v4349_v28  ;;  %3757 = vmatprep.mubr.bf16.mxu1 %v4351_v29 }
  0x31   : > { %3772 = vmatpush3.bf16.msra.mxu1 %v4188_v26  ;;  %3820 = vmatpush3.bf16.msra.mxu0 %v4189_v27  ;;  %v735_v26 = vld [vmem:[%s4301_s23 + $0x3a] sm:$0xff]  ;;  %v4461_v27 = vpack.c.bf16 %v186_v16, %v185_v15  ;;  %v744_v15 = vld [vmem:[%s4301_s23 + $0xaa] sm:$0xff]  ;;  %v745_v16 = vld [vmem:[%s4301_s23 + $0xb2] sm:$0xff] }
  0x32   : > { %3773 = vmatprep.subr.bf16.mxu1 %v4190_v34  ;;  %3821 = vmatprep.subr.bf16.mxu0 %v4191_v35  ;;  %v4467_v32 = vpack.c.bf16 %v735_v26, %v734_v25  ;;  %v4215_v25 = vld [vmem:[%s5400_s1 + $0x108] sm:$0xff]  }
  0x34   : > { %3742 = vmatmul.mubr.bf16.gmra.mxu0 %v4370_v39  ;;  %3758 = vmatmul.mubr.bf16.gmra.mxu1 %v4372_v40 }
  0x35   : > { %3774 = vmatpush3.bf16.msra.mxu1 %v4190_v34  ;;  %3822 = vmatpush3.bf16.msra.mxu0 %v4191_v35  ;;  %v189_v34 = vld [vmem:[%s4301_s23 + $0x48] sm:$0xff]  ;;  %v190_v35 = vld [vmem:[%s4301_s23 + $0x50] sm:$0xff] }
  0x36   : > { %3775 = vmatprep.subr.bf16.mxu1 %v4192_v42  ;;  %3823 = vmatprep.subr.bf16.mxu0 %v4193_v43  ;;  %v4493_v49 = vpack.c.bf16 %v190_v35, %v189_v34 }
  0x37   : > { %3745 = vmatprep.mubr.bf16.mxu0 %v4381_v44  ;;  %3761 = vmatprep.mubr.bf16.mxu1 %v4383_v45 }
  0x39   : > { %3776 = vmatpush3.bf16.msra.mxu1 %v4192_v42  ;;  %3824 = vmatpush3.bf16.msra.mxu0 %v4193_v43  ;;  %v192_v42 = vld [vmem:[%s4301_s23 + $0x68] sm:$0xff] }
  0x3a   : > { %3777 = vmatprep.subr.bf16.mxu1 %v4194_v50  ;;  %3825 = vmatprep.subr.bf16.mxu0 %v4195_v51  ;;  %v738_v43 = vld [vmem:[%s4301_s23 + $0x62] sm:$0xff] }
  0x3b   : > { %v4499_v52 = vpack.c.bf16 %v739_v46, %v738_v43  ;;  %v4217_v43 = vld [vmem:[%s5400_s1 + $0x100] sm:$0xff]   ;;  %v203_v46 = vld [vmem:[%s4301_s23 + $0xf0] sm:$0xff] }
  0x3c   : > { %3746 = vmatmul.mubr.bf16.gmra.mxu0 %v4401_v54  ;;  %3762 = vmatmul.mubr.bf16.gmra.mxu1 %v4403_v55 }
  0x3d   : > { %3778 = vmatpush3.bf16.msra.mxu1 %v4194_v50  ;;  %3826 = vmatpush3.bf16.msra.mxu0 %v4195_v51  ;;  %v4495_v50 = vpack.c.bf16 %v737_v38, %v736_v36  ;;  %v4497_v51 = vpack.c.bf16 %v192_v42, %v191_v41  ;;  %v4216_v36 = vld [vmem:[%s5400_s1 + $0xc0] sm:$0xff]  }
  0x3e   : > { %3779 = vmatprep.subr.bf16.mxu1 %v4196_v58  ;;  %3827 = vmatprep.subr.bf16.mxu0 %v4197_v59  ;;  %v202_v38 = vld [vmem:[%s4301_s23 + $0xe0] sm:$0xff] }
  0x3f   : > { %3749 = vmatprep.mubr.bf16.mxu0 %v4413_v60  ;;  %3765 = vmatprep.mubr.bf16.mxu1 %v4415_v61  ;;  %v748_v41 = vld [vmem:[%s4301_s23 + $0xda] sm:$0xff]  ;;  %v749_v42 = vld [vmem:[%s4301_s23 + $0xe2] sm:$0xff] }
  0x41   : > { %3780 = vmatpush3.bf16.msra.mxu1 %v4196_v58  ;;  %3828 = vmatpush3.bf16.msra.mxu0 %v4197_v59  ;;  %v740_v58 = vld [vmem:[%s4301_s23 + $0x7a] sm:$0xff]  ;;  %v741_v59 = vld [vmem:[%s4301_s23 + $0x82] sm:$0xff] }
  0x42   : > { %3781 = vmatprep.subr.bf16.mxu1 %v4198_v2  ;;  %3829 = vmatprep.subr.bf16.mxu0 %v4199_v3  ;;  %v4527_v8 = vpack.c.bf16 %v741_v59, %v740_v58  ;;  %v4591_v59 = vpack.c.bf16 %v749_v42, %v748_v41 }
  0x44   : > { %3750 = vmatmul.mubr.bf16.gmra.mxu0 %v4432_v5  ;;  %3766 = vmatmul.mubr.bf16.gmra.mxu1 %v4434_v6 }
  0x45   : > { %3782 = vmatpush3.bf16.msra.mxu1 %v4198_v2  ;;  %3830 = vmatpush3.bf16.msra.mxu0 %v4199_v3  ;;  %v743_v2 = vld [vmem:[%s4301_s23 + $0x9a] sm:$0xff] }
  0x46   : > { %3783 = vmatprep.subr.bf16.mxu1 %v4200_v11  ;;  %3831 = vmatprep.subr.bf16.mxu0 %v4201_v12  ;;  %v4210_v3 = vld [vmem:[%s5400_s1 + $0xd8] sm:$0xff]  }
  0x47   : > { %3785 = vmatprep.mubr.bf16.mxu1 %v215_v13  ;;  %3833 = vmatprep.mubr.bf16.mxu0 %v762_v14  ;;  %v197_v13 = vld [vmem:[%s4301_s23 + $0xa8] sm:$0xff]  ;;  %v198_v14 = vld [vmem:[%s4301_s23 + $0xb0] sm:$0xff] }
  0x48   : > { %v4557_v26 = vpack.c.bf16 %v198_v14, %v197_v13  ;;  %v754_v13 = vld [vmem:[%s4301_s23 + $0x122] sm:$0xff]  ;;  %v755_v14 = vld [vmem:[%s4301_s23 + $0x12a] sm:$0xff] }
  0x49   : > { %3784 = vmatpush3.bf16.msra.mxu1 %v4200_v11  ;;  %3832 = vmatpush3.bf16.msra.mxu0 %v4201_v12  ;;  %v4531_v11 = vpack.c.bf16 %v743_v2, %v742_v1  ;;  %v4212_v12 = vld [vmem:[%s5400_s1 + $0xd0] sm:$0xff]  }
  0x4a   : > { %3865 = vmatprep.subr.bf16.mxu1 %v4202_v19  ;;  %3913 = vmatprep.subr.bf16.mxu0 %v4203_v20  ;;  %v206_v1 = vld [vmem:[%s4301_s23 + $0x110] sm:$0xff] }
  0x4b   : > { %v752_v2 = vld [vmem:[%s4301_s23 + $0x10a] sm:$0xff] }
  0x4c   : > { %3786 = vmatmul.mubr.bf16.vlgmr.msra.gmra.mxu1 %v4461_v27  ;;  %3834 = vmatmul.mubr.bf16.vlgmr.msra.gmra.mxu0 %v4463_v30 }
  0x4d   : > { %3866 = vmatpush3.bf16.msra.mxu1 %v4202_v19  ;;  %3914 = vmatpush3.bf16.msra.mxu0 %v4203_v20  ;;  %v200_v19 = vld [vmem:[%s4301_s23 + $0xc8] sm:$0xff] }
  0x4e   : > { %3789 = vmatprep.mubr.bf16.mxu1 %v4465_v31  ;;  %3837 = vmatprep.mubr.bf16.mxu0 %v4467_v32  ;;  %v746_v20 = vld [vmem:[%s4301_s23 + $0xc2] sm:$0xff]  ;;  %v4561_v34 = vpack.c.bf16 %v200_v19, %v199_v18  ;;  %v4615_v18 = vpack.c.bf16 %v755_v14, %v754_v13  ;;  %v209_v19 = vld [vmem:[%s4301_s23 + $0x138] sm:$0xff] }
  0x4f   : > { %3867 = vmatprep.subr.bf16.mxu1 %v4204_v33  ;;  %3915 = vmatprep.subr.bf16.mxu0 %v4205_v37  ;;  %v4563_v35 = vpack.c.bf16 %v747_v21, %v746_v20  ;;  %v210_v20 = vld [vmem:[%s4301_s23 + $0x140] sm:$0xff]  ;;  %v4231_v13 = vld [vmem:[%s5400_s1 + $0x188] sm:$0xff]   ;;  %v4234_v14 = vld [vmem:[%s5400_s1 + $0x1f8] sm:$0xff]  }
  0x50   : > { %v756_v21 = vld [vmem:[%s4301_s23 + $0x13a] sm:$0xff]  ;;  %v4629_v41 = vpack.c.bf16 %v210_v20, %v209_v19 }
  0x51   : > { %3868 = vmatpush3.bf16.msra.mxu1 %v4204_v33  ;;  %3916 = vmatpush3.bf16.msra.mxu0 %v4205_v37  ;;  %v4559_v33 = vpack.c.bf16 %v745_v16, %v744_v15  ;;  %v201_v37 = vld [vmem:[%s4301_s23 + $0xd8] sm:$0xff]  ;;  %v4609_v15 = vpack.c.bf16 %v206_v1, %v205_v0 }
  0x52   : > { %3869 = vmatprep.subr.bf16.mxu1 %v4206_v47  ;;  %3917 = vmatprep.subr.bf16.mxu0 %v4207_v48  ;;  %v4589_v58 = vpack.c.bf16 %v202_v38, %v201_v37  ;;  %v758_v37 = vld [vmem:[%s4301_s23 + $0x152] sm:$0xff]  ;;  %v759_v38 = vld [vmem:[%s4301_s23 + $0x15a] sm:$0xff] }
  0x53   : > { %v761_v0 = vld [vmem:[%s4301_s23 + $0x172] sm:$0xff] }
  0x54   : > { %3790 = vmatmul.mubr.bf16.gmra.mxu1 %v4493_v49  ;;  %3838 = vmatmul.mubr.bf16.gmra.mxu0 %v4495_v50  ;;  %v4235_v19 = vld [vmem:[%s5400_s1 + $0x238] sm:$0xff]  }
  0x55   : > { %3793 = vmatprep.mubr.bf16.mxu1 %v4497_v51  ;;  %3841 = vmatprep.mubr.bf16.mxu0 %v4499_v52 }
  0x56   : > { %3870 = vmatpush3.bf16.msra.mxu1 %v4206_v47  ;;  %3918 = vmatpush3.bf16.msra.mxu0 %v4207_v48  ;;  %v204_v47 = vld [vmem:[%s4301_s23 + $0xf8] sm:$0xff] }
  0x57   : > { %3871 = vmatprep.subr.bf16.mxu1 %v4208_v53  ;;  %3919 = vmatprep.subr.bf16.mxu0 %v4209_v62  ;;  %v750_v48 = vld [vmem:[%s4301_s23 + $0xf2] sm:$0xff] }
  0x5a   : > { %3872 = vmatpush3.bf16.msra.mxu1 %v4208_v53  ;;  %3920 = vmatpush3.bf16.msra.mxu0 %v4209_v62  ;;  %v751_v53 = vld [vmem:[%s4301_s23 + $0xfa] sm:$0xff]  ;;  %v4593_v62 = vpack.c.bf16 %v204_v47, %v203_v46  ;;  %v4635_v46 = vpack.c.bf16 %v759_v38, %v758_v37  ;;  %v213_v47 = vld [vmem:[%s4301_s23 + $0x168] sm:$0xff] }
  0x5b   : > { %3873 = vmatprep.subr.bf16.mxu1 %v4210_v3  ;;  %3921 = vmatprep.subr.bf16.mxu0 %v4211_v4  ;;  %v4595_v63 = vpack.c.bf16 %v751_v53, %v750_v48  ;;  %v214_v48 = vld [vmem:[%s4301_s23 + $0x170] sm:$0xff] }
  0x5c   : > { %3794 = vmatmul.mubr.bf16.gmra.mxu1 %v4525_v7  ;;  %3842 = vmatmul.mubr.bf16.gmra.mxu0 %v4527_v8  ;;  %v760_v53 = vld [vmem:[%s4301_s23 + $0x16a] sm:$0xff]  ;;  %v4645_v1 = vpack.c.bf16 %v214_v48, %v213_v47  ;;  %v3365_v47 = vld [vmem:[%s4301_s23 + $0x1a0] sm:$0xff] }
  0x5d   : > { %3797 = vmatprep.mubr.bf16.mxu1 %v4529_v10  ;;  %3845 = vmatprep.mubr.bf16.mxu0 %v4531_v11  ;;  %v3390_v48 = vld [vmem:[%s4301_s23 + $0x31] sm:$0xff] }
  0x5e   : > { %3874 = vmatpush3.bf16.msra.mxu1 %v4210_v3  ;;  %3922 = vmatpush3.bf16.msra.mxu0 %v4211_v4  ;;  %v753_v3 = vld [vmem:[%s4301_s23 + $0x112] sm:$0xff]  ;;  %v207_v4 = vld [vmem:[%s4301_s23 + $0x120] sm:$0xff] }
  0x5f   : > { %3875 = vmatprep.subr.bf16.mxu1 %v4212_v12  ;;  %3923 = vmatprep.subr.bf16.mxu0 %v4213_v17  ;;  %v4611_v16 = vpack.c.bf16 %v753_v3, %v752_v2  ;;  %v4647_v2 = vpack.c.bf16 %v761_v0, %v760_v53  ;;  %v4220_v3 = vld [vmem:[%s5400_s1 + $0x170] sm:$0xff]  }
  0x62   : > { %3876 = vmatpush3.bf16.msra.mxu1 %v4212_v12  ;;  %3924 = vmatpush3.bf16.msra.mxu0 %v4213_v17  ;;  %v208_v12 = vld [vmem:[%s4301_s23 + $0x128] sm:$0xff] }
  0x63   : > { %3877 = vmatprep.subr.bf16.mxu1 %v4214_v24  ;;  %3925 = vmatprep.subr.bf16.mxu0 %v4215_v25  ;;  %v4613_v17 = vpack.c.bf16 %v208_v12, %v207_v4  ;;  %v4221_v4 = vld [vmem:[%s5400_s1 + $0x1b0] sm:$0xff]   ;;  %v4230_v12 = vld [vmem:[%s5400_s1 + $0x148] sm:$0xff]  }
  0x64   : > { %3798 = vmatmul.mubr.bf16.gmra.mxu1 %v4557_v26  ;;  %3846 = vmatmul.mubr.bf16.gmra.mxu0 %v4559_v33 }
  0x65   : > { %3801 = vmatprep.mubr.bf16.mxu1 %v4561_v34  ;;  %3849 = vmatprep.mubr.bf16.mxu0 %v4563_v35 }
  0x66   : > { %3878 = vmatpush3.bf16.msra.mxu1 %v4214_v24  ;;  %3926 = vmatpush3.bf16.msra.mxu0 %v4215_v25  ;;  %v757_v24 = vld [vmem:[%s4301_s23 + $0x142] sm:$0xff]  ;;  %v211_v25 = vld [vmem:[%s4301_s23 + $0x150] sm:$0xff] }
  0x67   : > { %3879 = vmatprep.subr.bf16.mxu1 %v4216_v36  ;;  %3927 = vmatprep.subr.bf16.mxu0 %v4217_v43  ;;  %v4631_v42 = vpack.c.bf16 %v757_v24, %v756_v21 }
  0x6a   : > { %3880 = vmatpush3.bf16.msra.mxu1 %v4216_v36  ;;  %3928 = vmatpush3.bf16.msra.mxu0 %v4217_v43  ;;  %v212_v36 = vld [vmem:[%s4301_s23 + $0x158] sm:$0xff] }
  0x6b   : > { %3961 = vmatprep.subr.bf16.mxu1 %v4218_v56  ;;  %4009 = vmatprep.subr.bf16.mxu0 %v4219_v57  ;;  %v4633_v43 = vpack.c.bf16 %v212_v36, %v211_v25 }
  0x6c   : > { %3802 = vmatmul.mubr.bf16.gmra.mxu1 %v4589_v58  ;;  %3850 = vmatmul.mubr.bf16.gmra.mxu0 %v4591_v59 }
  0x6d   : > { %3805 = vmatprep.mubr.bf16.mxu1 %v4593_v62  ;;  %3853 = vmatprep.mubr.bf16.mxu0 %v4595_v63 }
  0x74   : > { %3806 = vmatmul.mubr.bf16.gmra.mxu1 %v4609_v15  ;;  %3854 = vmatmul.mubr.bf16.gmra.mxu0 %v4611_v16 }
  0x75   : > { %3809 = vmatprep.mubr.bf16.mxu1 %v4613_v17  ;;  %3857 = vmatprep.mubr.bf16.mxu0 %v4615_v18 }
  0x7c   : > { %3810 = vmatmul.mubr.bf16.gmra.mxu1 %v4629_v41  ;;  %3858 = vmatmul.mubr.bf16.gmra.mxu0 %v4631_v42 }
  0x7d   : > { %3813 = vmatprep.mubr.bf16.mxu1 %v4633_v43  ;;  %3861 = vmatprep.mubr.bf16.mxu0 %v4635_v46 }
  0x84   : > { %3814 = vmatmul.mubr.bf16.gmra.mxu1 %v4645_v1  ;;  %3862 = vmatmul.mubr.bf16.gmra.mxu0 %v4647_v2 }
  0x85   : > { %3881 = vmatprep.mubr.bf16.mxu1 %v4461_v27  ;;  %3929 = vmatprep.mubr.bf16.mxu0 %v4337_v22  ;;  %v4222_v22 = vld [vmem:[%s5400_s1 + $0x168] sm:$0xff]  }
  0x86   : > { %v4223_v27 = vld [vmem:[%s5400_s1 + $0x1a8] sm:$0xff]  }
  0x8c   : > { %3882 = vmatmul.mubr.bf16.vlgmr.msra.gmra.mxu1 %v4465_v31  ;;  %3930 = vmatmul.mubr.bf16.vlgmr.msra.gmra.mxu0 %v4349_v28  ;;  %v4224_v28 = vld [vmem:[%s5400_s1 + $0x160] sm:$0xff]  }
  0x8d   : > { %3962 = vmatpush3.bf16.msra.mxu1 %v4218_v56  ;;  %4010 = vmatpush3.bf16.msra.mxu0 %v4219_v57  ;;  %v4226_v56 = vld [vmem:[%s5400_s1 + $0x158] sm:$0xff]  }
  0x8e   : > { %3885 = vmatprep.mubr.bf16.mxu1 %v4493_v49  ;;  %3933 = vmatprep.mubr.bf16.mxu0 %v4370_v39  ;;  %v4225_v39 = vld [vmem:[%s5400_s1 + $0x1a0] sm:$0xff]   ;;  %v4227_v57 = vld [vmem:[%s5400_s1 + $0x198] sm:$0xff]  }
  0x8f   : > { %3963 = vmatprep.subr.bf16.mxu1 %v4220_v3  ;;  %4011 = vmatprep.subr.bf16.mxu0 %v4221_v4 }
  0x91   : > { %3964 = vmatpush3.bf16.msra.mxu1 %v4220_v3  ;;  %4012 = vmatpush3.bf16.msra.mxu0 %v4221_v4  ;;  %v3391_v3 = vld [vmem:[%s4301_s23 + $0x39] sm:$0xff] }
  0x92   : > { %3965 = vmatprep.subr.bf16.mxu1 %v4222_v22  ;;  %4013 = vmatprep.subr.bf16.mxu0 %v4223_v27  ;;  %v3446_v4 = vld [vmem:[%s4301_s23 + $0x32] sm:$0xff] }
  0x94   : > { %3886 = vmatmul.mubr.bf16.gmra.mxu1 %v4497_v51  ;;  %3934 = vmatmul.mubr.bf16.gmra.mxu0 %v4381_v44  ;;  %v4228_v44 = vld [vmem:[%s5400_s1 + $0x150] sm:$0xff]  }
  0x95   : > { %3889 = vmatprep.mubr.bf16.mxu1 %v4525_v7  ;;  %3937 = vmatprep.mubr.bf16.mxu0 %v4401_v54  ;;  %v4229_v54 = vld [vmem:[%s5400_s1 + $0x190] sm:$0xff]  }
  0x96   : > { %3966 = vmatpush3.bf16.msra.mxu1 %v4222_v22  ;;  %4014 = vmatpush3.bf16.msra.mxu0 %v4223_v27 }
  0x97   : > { %3967 = vmatprep.subr.bf16.mxu1 %v4224_v28  ;;  %4015 = vmatprep.subr.bf16.mxu0 %v4225_v39 }
  0x9a   : > { %3968 = vmatpush3.bf16.msra.mxu1 %v4224_v28  ;;  %4016 = vmatpush3.bf16.msra.mxu0 %v4225_v39  ;;  %v2294_v28 = vpack.c.bf16 %v3391_v3, %v3390_v48  ;;  %v3454_v48 = vld [vmem:[%s4301_s23 + $0x92] sm:$0xff]  ;;  %v3455_v3 = vld [vmem:[%s4301_s23 + $0x9a] sm:$0xff] }
  0x9b   : > { %3969 = vmatprep.subr.bf16.mxu1 %v4226_v56  ;;  %4017 = vmatprep.subr.bf16.mxu0 %v4227_v57 }
  0x9c   : > { %3890 = vmatmul.mubr.bf16.gmra.mxu1 %v4529_v10  ;;  %3938 = vmatmul.mubr.bf16.gmra.mxu0 %v4413_v60  ;;  %v4232_v60 = vld [vmem:[%s5400_s1 + $0x140] sm:$0xff]  }
  0x9d   : > { %3893 = vmatprep.mubr.bf16.mxu1 %v4557_v26  ;;  %3941 = vmatprep.mubr.bf16.mxu0 %v4432_v5  ;;  %v4233_v5 = vld [vmem:[%s5400_s1 + $0x180] sm:$0xff]  }
  0x9e   : > { %3970 = vmatpush3.bf16.msra.mxu1 %v4226_v56  ;;  %4018 = vmatpush3.bf16.msra.mxu0 %v4227_v57 }
  0x9f   : > { %3971 = vmatprep.subr.bf16.mxu1 %v4228_v44  ;;  %4019 = vmatprep.subr.bf16.mxu0 %v4229_v54 }
  0xa2   : > { %3972 = vmatpush3.bf16.msra.mxu1 %v4228_v44  ;;  %4020 = vmatpush3.bf16.msra.mxu0 %v4229_v54 }
  0xa3   : > { %3973 = vmatprep.subr.bf16.mxu1 %v4230_v12  ;;  %4021 = vmatprep.subr.bf16.mxu0 %v4231_v13 }
  0xa4   : > { %3894 = vmatmul.mubr.bf16.gmra.mxu1 %v4561_v34  ;;  %3942 = vmatmul.mubr.bf16.gmra.mxu0 %v4310_v9  ;;  %v3196_v9 = vld [vmem:[%s4301_s23 + $0x180] sm:$0xff] }
  0xa5   : > { %3897 = vmatprep.mubr.bf16.mxu1 %v4589_v58  ;;  %3945 = vmatprep.mubr.bf16.mxu0 %v4339_v23  ;;  %v3197_v23 = vld [vmem:[%s4301_s23 + $0x188] sm:$0xff] }
  0xa6   : > { %3974 = vmatpush3.bf16.msra.mxu1 %v4230_v12  ;;  %4022 = vmatpush3.bf16.msra.mxu0 %v4231_v13  ;;  %v4733_v20 = vpack.c.bf16 %v3197_v23, %v3196_v9  ;;  %v3392_v12 = vld [vmem:[%s4301_s23 + $0x49] sm:$0xff]  ;;  %v3393_v13 = vld [vmem:[%s4301_s23 + $0x51] sm:$0xff] }
  0xa7   : > { %3975 = vmatprep.subr.bf16.mxu1 %v4232_v60  ;;  %4023 = vmatprep.subr.bf16.mxu0 %v4233_v5  ;;  %v3395_v23 = vld [vmem:[%s4301_s23 + $0x69] sm:$0xff] }
  0xaa   : > { %3976 = vmatpush3.bf16.msra.mxu1 %v4232_v60  ;;  %4024 = vmatpush3.bf16.msra.mxu0 %v4233_v5  ;;  %v3448_v60 = vld [vmem:[%s4301_s23 + $0x4a] sm:$0xff]  ;;  %v3449_v5 = vld [vmem:[%s4301_s23 + $0x52] sm:$0xff] }
  0xab   : > { %4057 = vmatprep.subr.bf16.mxu1 %v4234_v14  ;;  %4105 = vmatprep.subr.bf16.mxu0 %v4235_v19 }
  0xac   : > { %3898 = vmatmul.mubr.bf16.gmra.mxu1 %v4593_v62  ;;  %3946 = vmatmul.mubr.bf16.gmra.mxu0 %v4351_v29  ;;  %v3252_v29 = vld [vmem:[%s4301_s23 + $0x181] sm:$0xff] }
  0xad   : > { %3901 = vmatprep.mubr.bf16.mxu1 %v4609_v15  ;;  %3949 = vmatprep.mubr.bf16.mxu0 %v4372_v40  ;;  %v3253_v40 = vld [vmem:[%s4301_s23 + $0x189] sm:$0xff] }
  0xae   : > { %v4735_v21 = vpack.c.bf16 %v3253_v40, %v3252_v29  ;;  %v3450_v29 = vld [vmem:[%s4301_s23 + $0x62] sm:$0xff]  ;;  %v3451_v40 = vld [vmem:[%s4301_s23 + $0x6a] sm:$0xff] }
  0xb4   : > { %3902 = vmatmul.mubr.bf16.gmra.mxu1 %v4613_v17  ;;  %3950 = vmatmul.mubr.bf16.gmra.mxu0 %v4383_v45  ;;  %v4236_v45 = vld [vmem:[%s5400_s1 + $0x1f0] sm:$0xff]  }
  0xb5   : > { %3905 = vmatprep.mubr.bf16.mxu1 %v4629_v41  ;;  %3953 = vmatprep.mubr.bf16.mxu0 %v4403_v55  ;;  %v4237_v55 = vld [vmem:[%s5400_s1 + $0x230] sm:$0xff]  }
  0xbc   : > { %3906 = vmatmul.mubr.bf16.gmra.mxu1 %v4633_v43  ;;  %3954 = vmatmul.mubr.bf16.gmra.mxu0 %v4415_v61  ;;  %v4238_v61 = vld [vmem:[%s5400_s1 + $0x1e8] sm:$0xff]  }
  0xbd   : > { %3909 = vmatprep.mubr.bf16.mxu1 %v4645_v1  ;;  %3957 = vmatprep.mubr.bf16.mxu0 %v4434_v6  ;;  %v4239_v6 = vld [vmem:[%s5400_s1 + $0x228] sm:$0xff]  }
  0xc4   : > { %3910 = vmatmul.mubr.bf16.gmra.mxu1 %v4733_v20  ;;  %3958 = vmatmul.mubr.bf16.gmra.mxu0 %v4735_v21 }
  0xc5   : > { %3977 = vmatprep.mubr.bf16.mxu1 %v4463_v30  ;;  %4025 = vmatprep.mubr.bf16.mxu0 %v4465_v31  ;;  %v4240_v30 = vld [vmem:[%s5400_s1 + $0x1e0] sm:$0xff]  }
  0xc6   : > { %v4241_v31 = vld [vmem:[%s5400_s1 + $0x220] sm:$0xff]  }
  0xcc   : > { %3978 = vmatmul.mubr.bf16.vlgmr.msra.gmra.mxu1 %v4467_v32  ;;  %4026 = vmatmul.mubr.bf16.vlgmr.msra.gmra.mxu0 %v4493_v49  ;;  %v4242_v32 = vld [vmem:[%s5400_s1 + $0x1d8] sm:$0xff]  }
  0xcd   : > { %4058 = vmatpush3.bf16.msra.mxu1 %v4234_v14  ;;  %4106 = vmatpush3.bf16.msra.mxu0 %v4235_v19  ;;  %v4243_v49 = vld [vmem:[%s5400_s1 + $0x218] sm:$0xff]   ;;  %v3394_v14 = vld [vmem:[%s4301_s23 + $0x61] sm:$0xff] }
  0xce   : > { %3981 = vmatprep.mubr.bf16.mxu1 %v4495_v50  ;;  %4029 = vmatprep.mubr.bf16.mxu0 %v4497_v51  ;;  %v4244_v50 = vld [vmem:[%s5400_s1 + $0x1d0] sm:$0xff]  }
  0xcf   : > { %4059 = vmatprep.subr.bf16.mxu1 %v4236_v45  ;;  %4107 = vmatprep.subr.bf16.mxu0 %v4237_v55  ;;  %v4245_v51 = vld [vmem:[%s5400_s1 + $0x210] sm:$0xff]  }
  0xd1   : > { %4060 = vmatpush3.bf16.msra.mxu1 %v4236_v45  ;;  %4108 = vmatpush3.bf16.msra.mxu0 %v4237_v55  ;;  %v2295_v55 = vpack.c.bf16 %v3393_v13, %v3392_v12 }
  0xd2   : > { %4061 = vmatprep.subr.bf16.mxu1 %v4238_v61  ;;  %4109 = vmatprep.subr.bf16.mxu0 %v4239_v6 }
  0xd4   : > { %3982 = vmatmul.mubr.bf16.gmra.mxu1 %v4499_v52  ;;  %4030 = vmatmul.mubr.bf16.gmra.mxu0 %v4525_v7  ;;  %v4246_v52 = vld [vmem:[%s5400_s1 + $0x1c8] sm:$0xff]  }
  0xd5   : > { %3985 = vmatprep.mubr.bf16.mxu1 %v4527_v8  ;;  %4033 = vmatprep.mubr.bf16.mxu0 %v4529_v10  ;;  %v4247_v7 = vld [vmem:[%s5400_s1 + $0x208] sm:$0xff]   ;;  %v4248_v8 = vld [vmem:[%s5400_s1 + $0x1c0] sm:$0xff]  }
  0xd6   : > { %4062 = vmatpush3.bf16.msra.mxu1 %v4238_v61  ;;  %4110 = vmatpush3.bf16.msra.mxu0 %v4239_v6  ;;  %v4249_v10 = vld [vmem:[%s5400_s1 + $0x200] sm:$0xff]   ;;  %v2601_v61 = vpack.c.bf16 %v3449_v5, %v3448_v60  ;;  %v2296_v6 = vpack.c.bf16 %v3395_v23, %v3394_v14  ;;  %v2604_v5 = vpack.c.bf16 %v3455_v3, %v3454_v48 }
  0xd7   : > { %4063 = vmatprep.subr.bf16.mxu1 %v4240_v30  ;;  %4111 = vmatprep.subr.bf16.mxu0 %v4241_v31 }
  0xda   : > { %4064 = vmatpush3.bf16.msra.mxu1 %v4240_v30  ;;  %4112 = vmatpush3.bf16.msra.mxu0 %v4241_v31  ;;  %v2602_v30 = vpack.c.bf16 %v3451_v40, %v3450_v29 }
  0xdb   : > { %4065 = vmatprep.subr.bf16.mxu1 %v4242_v32  ;;  %4113 = vmatprep.subr.bf16.mxu0 %v4243_v49 }
  0xdc   : > { %3986 = vmatmul.mubr.bf16.gmra.mxu1 %v4531_v11  ;;  %4034 = vmatmul.mubr.bf16.gmra.mxu0 %v4557_v26 }
  0xdd   : > { %3989 = vmatprep.mubr.bf16.mxu1 %v4559_v33  ;;  %4037 = vmatprep.mubr.bf16.mxu0 %v4561_v34 }
  0xde   : > { %4066 = vmatpush3.bf16.msra.mxu1 %v4242_v32  ;;  %4114 = vmatpush3.bf16.msra.mxu0 %v4243_v49 }
  0xdf   : > { %4067 = vmatprep.subr.bf16.mxu1 %v4244_v50  ;;  %4115 = vmatprep.subr.bf16.mxu0 %v4245_v51 }
  0xe2   : > { %4068 = vmatpush3.bf16.msra.mxu1 %v4244_v50  ;;  %4116 = vmatpush3.bf16.msra.mxu0 %v4245_v51  ;;  %v3396_v51 = vld [vmem:[%s4301_s23 + $0x79] sm:$0xff] }
  0xe3   : > { %4069 = vmatprep.subr.bf16.mxu1 %v4246_v52  ;;  %4117 = vmatprep.subr.bf16.mxu0 %v4247_v7 }
  0xe4   : > { %3990 = vmatmul.mubr.bf16.gmra.mxu1 %v4563_v35  ;;  %4038 = vmatmul.mubr.bf16.gmra.mxu0 %v4589_v58 }
  0xe5   : > { %3993 = vmatprep.mubr.bf16.mxu1 %v4591_v59  ;;  %4041 = vmatprep.mubr.bf16.mxu0 %v4593_v62 }
  0xe6   : > { %4070 = vmatpush3.bf16.msra.mxu1 %v4246_v52  ;;  %4118 = vmatpush3.bf16.msra.mxu0 %v4247_v7  ;;  %v3397_v52 = vld [vmem:[%s4301_s23 + $0x81] sm:$0xff] }
  0xe7   : > { %4071 = vmatprep.subr.bf16.mxu1 %v4248_v8  ;;  %4119 = vmatprep.subr.bf16.mxu0 %v4249_v10 }
  0xea   : > { %4072 = vmatpush3.bf16.msra.mxu1 %v4248_v8  ;;  %4120 = vmatpush3.bf16.msra.mxu0 %v4249_v10  ;;  %v3452_v8 = vld [vmem:[%s4301_s23 + $0x7a] sm:$0xff]  ;;  %v3453_v10 = vld [vmem:[%s4301_s23 + $0x82] sm:$0xff] }
  0xec   : > { %v4799_v11 = vpop.f32.mrf.mxu0  ;;  %v4801_v26 = vpop.f32.mrf.mxu1  ;;  %3994 = vmatmul.mubr.bf16.gmra.mxu1 %v4595_v63  ;;  %4042 = vmatmul.mubr.bf16.gmra.mxu0 %v4609_v15 }
  0xed   : > { %3997 = vmatprep.mubr.bf16.mxu1 %v4611_v16  ;;  %4045 = vmatprep.mubr.bf16.mxu0 %v4613_v17 }
  0xee   : > { %v4807_v33 = vpop.f32.mrf.mxu0  ;;  %v4809_v34 = vpop.f32.mrf.mxu1 }
  0xf0   : > { %v4811_v35 = vpop.f32.mrf.mxu0  ;;  %v4813_v58 = vpop.f32.mrf.mxu1 }
  0xf2   : > { %v4815_v59 = vpop.f32.mrf.mxu0  ;;  %v4817_v62 = vpop.f32.mrf.mxu1 }
  0xf4   : > { %v4819_v24 = vpop.f32.mrf.mxu0  ;;  %v4821_v63 = vpop.f32.mrf.mxu1  ;;  %3998 = vmatmul.mubr.bf16.gmra.mxu1 %v4615_v18  ;;  %4046 = vmatmul.mubr.bf16.gmra.mxu0 %v4629_v41  ;;  %v3308_v41 = vld [vmem:[%s4301_s23 + $0x182] sm:$0xff] }
  0xf5   : > { %4001 = vmatprep.mubr.bf16.mxu1 %v4631_v42  ;;  %4049 = vmatprep.mubr.bf16.mxu0 %v4633_v43  ;;  %v3309_v42 = vld [vmem:[%s4301_s23 + $0x18a] sm:$0xff]  ;;  %v3364_v43 = vld [vmem:[%s4301_s23 + $0x198] sm:$0xff] }
  0xf6   : > { %v4827_v15 = vpop.f32.mrf.mxu0  ;;  %v4829_v16 = vpop.f32.mrf.mxu1  ;;  %v2003_v27 = vpack.c.bf16 %v3365_v47, %v3364_v43  ;;  %v3399_v47 = vld [vmem:[%s4301_s23 + $0x99] sm:$0xff] }
  0xf8   : > { %v4831_v17 = vpop.f32.mrf.mxu0  ;;  %v4833_v25 = vpop.f32.mrf.mxu1 }
  0xfa   : > { %v4835_v36 = vpop.f32.mrf.mxu0  ;;  %v4837_v18 = vpop.f32.mrf.mxu1 }
  0xfc   : > { %v4839_v37 = vpop.f32.mrf.mxu0  ;;  %v4841_v38 = vpop.f32.mrf.mxu1  ;;  %4002 = vmatmul.mubr.bf16.gmra.mxu1 %v4635_v46  ;;  %4050 = vmatmul.mubr.bf16.gmra.mxu0 %v4645_v1  ;;  %v3447_v46 = vld [vmem:[%s4301_s23 + $0x3a] sm:$0xff] }
  0xfd   : > { %4005 = vmatprep.mubr.bf16.mxu1 %v4647_v2  ;;  %4053 = vmatprep.mubr.bf16.mxu0 %v4733_v20  ;;  %v4863_v2 = vpack.c.bf16 %v3309_v42, %v3308_v41  ;;  %v2600_v39 = vpack.c.bf16 %v3447_v46, %v3446_v4  ;;  %v3398_v41 = vld [vmem:[%s4301_s23 + $0x91] sm:$0xff] }
  0xfe   : > { %v4852_v53 = vpop.f32.mrf.mxu0  ;;  %v4854_v0 = vpop.f32.mrf.mxu1  ;;  %v2298_v60 = vpack.c.bf16 %v3399_v47, %v3398_v41 }
 0x100   : > { %v4859_v22 = vpop.f32.mrf.mxu0  ;;  %v4861_v1 = vpop.f32.mrf.mxu1 }
 0x102   : > { %v4865_v56 = vpop.f32.mrf.mxu0  ;;  %v4867_v57 = vpop.f32.mrf.mxu1 }
 0x104   : > { %v4869_v44 = vpop.f32.mrf.mxu0  ;;  %v4871_v54 = vpop.f32.mrf.mxu1  ;;  %4006 = vmatmul.mubr.bf16.gmra.mxu1 %v4863_v2  ;;  %4054 = vmatmul.mubr.bf16.gmra.mxu0 %v2003_v27 }
 0x105   : > { %4073 = vmatprep.mubr.bf16.mxu1 %v2294_v28  ;;  %4121 = vmatprep.mubr.bf16.mxu0 %v2600_v39  ;;  %v2297_v39 = vpack.c.bf16 %v3397_v52, %v3396_v51  ;;  %v3402_v51 = vld [vmem:[%s4301_s23 + $0xc1] sm:$0xff] }
 0x106   : > { %v4879_v19 = vpop.f32.mrf.mxu0  ;;  %v4881_v9 = vpop.f32.mrf.mxu1 }
 0x108   : > { %v4886_v20 = vpop.f32.mrf.mxu0  ;;  %v4888_v45 = vpop.f32.mrf.mxu1 }
 0x10a   : > { %v4890_v31 = vpop.f32.mrf.mxu0  ;;  %v4892_v32 = vpop.f32.mrf.mxu1 }
 0x10c   : > { %v3787_v49 = vpop.f32.mrf.mxu1  ;;  %v3835_v50 = vpop.f32.mrf.mxu0  ;;  %4074 = vmatmul.mubr.bf16.vlgmr.msra.gmra.mxu1 %v2295_v55  ;;  %4122 = vmatmul.mubr.bf16.vlgmr.msra.gmra.mxu0 %v2601_v61  ;;  %v3400_v61 = vld [vmem:[%s4301_s23 + $0xa9] sm:$0xff] }
 0x10d   : > { %v612_v7 = vadd.f32 %v3787_v49, %v4799_v11  ;;  %4077 = vmatprep.mubr.bf16.mxu1 %v2296_v6  ;;  %4125 = vmatprep.mubr.bf16.mxu0 %v2602_v30  ;;  %v2603_v11 = vpack.c.bf16 %v3453_v10, %v3452_v8  ;;  %v3456_v49 = vld [vmem:[%s4301_s23 + $0xaa] sm:$0xff]  ;;  %v3458_v8 = vld [vmem:[%s4301_s23 + $0xc2] sm:$0xff] }
 0x10e   : > { %v603_v42 = vpop.f32.mrf.mxu1  ;;  %v877_v43 = vpop.f32.mrf.mxu0  ;;  %v3459_v10 = vld [vmem:[%s4301_s23 + $0xca] sm:$0xff] }
 0x10f   : > { %v4903_v4 = vadd.f32 %v3835_v50, %v612_v7  ;;  %v604_v46 = vadd.f32 %v603_v42, %v4807_v33  ;;  %v3457_v50 = vld [vmem:[%s4301_s23 + $0xb2] sm:$0xff]  ;;  %v3403_v7 = vld [vmem:[%s4301_s23 + $0xc9] sm:$0xff] }
 0x110   : > { %v3788_v27 = vpop.f32.mrf.mxu1  ;;  %v3836_v28 = vpop.f32.mrf.mxu0 }
 0x111   : > { %v4906_v12 = vadd.f32 %v877_v43, %v604_v46  ;;  %v615_v13 = vadd.f32 %v3788_v27, %v4811_v35  ;;  %v3401_v35 = vld [vmem:[%s4301_s23 + $0xb1] sm:$0xff]  ;;  %v2300_v27 = vpack.c.bf16 %v3403_v7, %v3402_v51 }
 0x112   : > { %v606_v14 = vpop.f32.mrf.mxu1  ;;  %v880_v23 = vpop.f32.mrf.mxu0  ;;  %v2299_v48 = vpack.c.bf16 %v3401_v35, %v3400_v61  ;;  %v3406_v61 = vld [vmem:[%s4301_s23 + $0xf1] sm:$0xff] }
 0x113   : > { %v4909_v29 = vadd.f32 %v3836_v28, %v615_v13  ;;  %v607_v33 = vadd.f32 %v606_v14, %v4815_v59  ;;  %v2606_v28 = vpack.c.bf16 %v3459_v10, %v3458_v8  ;;  %v3404_v14 = vld [vmem:[%s4301_s23 + $0xd9] sm:$0xff] }
 0x114   : > { %v3791_v40 = vpop.f32.mrf.mxu1  ;;  %v3839_v55 = vpop.f32.mrf.mxu0  ;;  %4078 = vmatmul.mubr.bf16.gmra.mxu1 %v2297_v39  ;;  %4126 = vmatmul.mubr.bf16.gmra.mxu0 %v2603_v11 }
 0x115   : > { %v4914_v6 = vadd.f32 %v880_v23, %v607_v33  ;;  %v628_v30 = vadd.f32 %v3791_v40, %v4819_v24  ;;  %4081 = vmatprep.mubr.bf16.mxu1 %v2298_v60  ;;  %4129 = vmatprep.mubr.bf16.mxu0 %v2604_v5  ;;  %v2605_v24 = vpack.c.bf16 %v3457_v50, %v3456_v49  ;;  %v3460_v40 = vld [vmem:[%s4301_s23 + $0xda] sm:$0xff]  ;;  %v3462_v49 = vld [vmem:[%s4301_s23 + $0xf2] sm:$0xff] }
 0x116   : > { %v619_v52 = vpop.f32.mrf.mxu1  ;;  %v893_v59 = vpop.f32.mrf.mxu0  ;;  %v3463_v50 = vld [vmem:[%s4301_s23 + $0xfa] sm:$0xff] }
 0x117   : > { %v4923_v41 = vadd.f32 %v3839_v55, %v628_v30  ;;  %v620_v42 = vadd.f32 %v619_v52, %v4827_v15  ;;  %v3461_v55 = vld [vmem:[%s4301_s23 + $0xe2] sm:$0xff]  ;;  %v3407_v30 = vld [vmem:[%s4301_s23 + $0xf9] sm:$0xff] }
 0x118   : > { %v3792_v43 = vpop.f32.mrf.mxu1  ;;  %v3840_v47 = vpop.f32.mrf.mxu0 }
 0x119   : > { %v4926_v3 = vadd.f32 %v893_v59, %v620_v42  ;;  %v631_v46 = vadd.f32 %v3792_v43, %v4831_v17  ;;  %v3405_v17 = vld [vmem:[%s4301_s23 + $0xe1] sm:$0xff]  ;;  %v2302_v43 = vpack.c.bf16 %v3407_v30, %v3406_v61 }
 0x11a   : > { %v622_v39 = vpop.f32.mrf.mxu1  ;;  %v896_v11 = vpop.f32.mrf.mxu0  ;;  %v2301_v8 = vpack.c.bf16 %v3405_v17, %v3404_v14  ;;  %v3410_v14 = vld [vmem:[%s4301_s23 + $0x121] sm:$0xff] }
 0x11b   : > { %v4929_v13 = vadd.f32 %v3840_v47, %v631_v46  ;;  %v623_v15 = vadd.f32 %v622_v39, %v4835_v36  ;;  %v2608_v47 = vpack.c.bf16 %v3463_v50, %v3462_v49  ;;  %v3408_v39 = vld [vmem:[%s4301_s23 + $0x109] sm:$0xff] }
 0x11c   : > { %v3795_v60 = vpop.f32.mrf.mxu1  ;;  %v3843_v5 = vpop.f32.mrf.mxu0  ;;  %4082 = vmatmul.mubr.bf16.gmra.mxu1 %v2299_v48  ;;  %4130 = vmatmul.mubr.bf16.gmra.mxu0 %v2605_v24 }
 0x11d   : > { %v4934_v23 = vadd.f32 %v896_v11, %v623_v15  ;;  %v644_v33 = vadd.f32 %v3795_v60, %v4839_v37  ;;  %4085 = vmatprep.mubr.bf16.mxu1 %v2300_v27  ;;  %4133 = vmatprep.mubr.bf16.mxu0 %v2606_v28  ;;  %v2607_v37 = vpack.c.bf16 %v3461_v55, %v3460_v40  ;;  %v3464_v60 = vld [vmem:[%s4301_s23 + $0x10a] sm:$0xff]  ;;  %v3466_v40 = vld [vmem:[%s4301_s23 + $0x122] sm:$0xff] }
 0x11e   : > { %v635_v35 = vpop.f32.mrf.mxu1  ;;  %v909_v36 = vpop.f32.mrf.mxu0  ;;  %v3467_v55 = vld [vmem:[%s4301_s23 + $0x12a] sm:$0xff] }
 0x11f   : > { %v4943_v51 = vadd.f32 %v3843_v5, %v644_v33  ;;  %v636_v52 = vadd.f32 %v635_v35, %v4852_v53  ;;  %v3465_v5 = vld [vmem:[%s4301_s23 + $0x112] sm:$0xff]  ;;  %v3411_v33 = vld [vmem:[%s4301_s23 + $0x129] sm:$0xff] }
 0x120   : > { %v3796_v59 = vpop.f32.mrf.mxu1  ;;  %v3844_v7 = vpop.f32.mrf.mxu0 }
 0x121   : > { %v4946_v10 = vadd.f32 %v909_v36, %v636_v52  ;;  %v647_v42 = vadd.f32 %v3796_v59, %v4859_v22  ;;  %v3409_v22 = vld [vmem:[%s4301_s23 + $0x111] sm:$0xff]  ;;  %v2304_v59 = vpack.c.bf16 %v3411_v33, %v3410_v14 }
 0x122   : > { %v638_v48 = vpop.f32.mrf.mxu1  ;;  %v912_v24 = vpop.f32.mrf.mxu0  ;;  %v2303_v49 = vpack.c.bf16 %v3409_v22, %v3408_v39  ;;  %v3414_v39 = vld [vmem:[%s4301_s23 + $0x151] sm:$0xff] }
 0x123   : > { %v4949_v46 = vadd.f32 %v3844_v7, %v647_v42  ;;  %v639_v53 = vadd.f32 %v638_v48, %v4865_v56  ;;  %v2610_v7 = vpack.c.bf16 %v3467_v55, %v3466_v40  ;;  %v3412_v48 = vld [vmem:[%s4301_s23 + $0x139] sm:$0xff] }
 0x124   : > { %v3799_v27 = vpop.f32.mrf.mxu1  ;;  %v3847_v28 = vpop.f32.mrf.mxu0  ;;  %4086 = vmatmul.mubr.bf16.gmra.mxu1 %v2301_v8  ;;  %4134 = vmatmul.mubr.bf16.gmra.mxu0 %v2607_v37 }
 0x125   : > { %v4954_v11 = vadd.f32 %v912_v24, %v639_v53  ;;  %v660_v15 = vadd.f32 %v3799_v27, %v4869_v44  ;;  %4089 = vmatprep.mubr.bf16.mxu1 %v2302_v43  ;;  %4137 = vmatprep.mubr.bf16.mxu0 %v2608_v47  ;;  %v2609_v44 = vpack.c.bf16 %v3465_v5, %v3464_v60  ;;  %v3468_v27 = vld [vmem:[%s4301_s23 + $0x13a] sm:$0xff]  ;;  %v3470_v60 = vld [vmem:[%s4301_s23 + $0x152] sm:$0xff] }
 0x126   : > { %v651_v17 = vpop.f32.mrf.mxu1  ;;  %v925_v56 = vpop.f32.mrf.mxu0  ;;  %v3471_v5 = vld [vmem:[%s4301_s23 + $0x15a] sm:$0xff] }
 0x127   : > { %v4963_v61 = vadd.f32 %v3847_v28, %v660_v15  ;;  %v652_v35 = vadd.f32 %v651_v17, %v4879_v19  ;;  %v3469_v28 = vld [vmem:[%s4301_s23 + $0x142] sm:$0xff]  ;;  %v3415_v15 = vld [vmem:[%s4301_s23 + $0x159] sm:$0xff] }
 0x128   : > { %v3800_v36 = vpop.f32.mrf.mxu1  ;;  %v3848_v30 = vpop.f32.mrf.mxu0  ;;  %v2611_v55 = vpack.c.bf16 %v3469_v28, %v3468_v27 }
 0x129   : > { %v4966_v50 = vadd.f32 %v925_v56, %v652_v35  ;;  %v663_v52 = vadd.f32 %v3800_v36, %v4886_v20  ;;  %v3413_v20 = vld [vmem:[%s4301_s23 + $0x141] sm:$0xff]  ;;  %v2306_v36 = vpack.c.bf16 %v3415_v15, %v3414_v39 }
 0x12a   : > { %v654_v8 = vpop.f32.mrf.mxu1  ;;  %v928_v37 = vpop.f32.mrf.mxu0  ;;  %v2305_v40 = vpack.c.bf16 %v3413_v20, %v3412_v48 }
 0x12b   : > { %v4969_v42 = vadd.f32 %v3848_v30, %v663_v52  ;;  %v655_v19 = vadd.f32 %v654_v8, %v4890_v31  ;;  %v2612_v30 = vpack.c.bf16 %v3471_v5, %v3470_v60  ;;  %v3416_v8 = vld [vmem:[%s4301_s23 + $0x169] sm:$0xff] }
 0x12c   : > { %v3803_v43 = vpop.f32.mrf.mxu1  ;;  %v3851_v47 = vpop.f32.mrf.mxu0  ;;  %4090 = vmatmul.mubr.bf16.gmra.mxu1 %v2303_v49  ;;  %4138 = vmatmul.mubr.bf16.gmra.mxu0 %v2609_v44 }
 0x12d   : > { %v4974_v24 = vadd.f32 %v928_v37, %v655_v19  ;;  %v676_v53 = vadd.f32 %v3803_v43, %v4801_v26  ;;  %4093 = vmatprep.mubr.bf16.mxu1 %v2304_v59  ;;  %4141 = vmatprep.mubr.bf16.mxu0 %v2610_v7  ;;  %v3417_v19 = vld [vmem:[%s4301_s23 + $0x171] sm:$0xff] }
 0x12e   : > { %v667_v22 = vpop.f32.mrf.mxu1  ;;  %v941_v31 = vpop.f32.mrf.mxu0  ;;  %v3472_v43 = vld [vmem:[%s4301_s23 + $0x16a] sm:$0xff]  ;;  %v2307_v39 = vpack.c.bf16 %v3417_v19, %v3416_v8 }
 0x12f   : > { %v4983_v14 = vadd.f32 %v3851_v47, %v676_v53  ;;  %v668_v17 = vadd.f32 %v667_v22, %v4809_v34  ;;  %v3473_v47 = vld [vmem:[%s4301_s23 + $0x172] sm:$0xff] }
 0x130   : > { %v3804_v56 = vpop.f32.mrf.mxu1  ;;  %v3852_v33 = vpop.f32.mrf.mxu0  ;;  %v2613_v22 = vpack.c.bf16 %v3473_v47, %v3472_v43 }
 0x131   : > { %v4986_v26 = vadd.f32 %v941_v31, %v668_v17  ;;  %v679_v35 = vadd.f32 %v3804_v56, %v4813_v58 }
 0x132   : > { %v670_v49 = vpop.f32.mrf.mxu1  ;;  %v944_v44 = vpop.f32.mrf.mxu0 }
 0x133   : > { %v4989_v52 = vadd.f32 %v3852_v33, %v679_v35  ;;  %v671_v34 = vadd.f32 %v670_v49, %v4817_v62  ;;  %v3476_v35 = vld [vmem:[%s4301_s23 + $0x19a] sm:$0xff] }
 0x134   : > { %v3807_v59 = vpop.f32.mrf.mxu1  ;;  %v3855_v7 = vpop.f32.mrf.mxu0  ;;  %4094 = vmatmul.mubr.bf16.gmra.mxu1 %v2305_v40  ;;  %4142 = vmatmul.mubr.bf16.gmra.mxu0 %v2611_v55 }
 0x135   : > { %v4993_v37 = vadd.f32 %v944_v44, %v671_v34  ;;  %v692_v58 = vadd.f32 %v3807_v59, %v4821_v63  ;;  %4097 = vmatprep.mubr.bf16.mxu1 %v2306_v36  ;;  %4145 = vmatprep.mubr.bf16.mxu0 %v2612_v30  ;;  %v3477_v36 = vld [vmem:[%s4301_s23 + $0x1a2] sm:$0xff] }
 0x136   : > { %v683_v48 = vpop.f32.mrf.mxu1  ;;  %v957_v20 = vpop.f32.mrf.mxu0  ;;  %v2615_v8 = vpack.c.bf16 %v3477_v36, %v3476_v35 }
 0x137   : > { %v4999_v53 = vadd.f32 %v3855_v7, %v692_v58  ;;  %v684_v62 = vadd.f32 %v683_v48, %v4829_v16  ;;  %v3420_v16 = vld [vmem:[%s4301_s23 + $0x199] sm:$0xff] }
 0x138   : > { %v3808_v27 = vpop.f32.mrf.mxu1  ;;  %v3856_v28 = vpop.f32.mrf.mxu0 }
 0x139   : > { %v5002_v31 = vadd.f32 %v957_v20, %v684_v62  ;;  %v695_v63 = vadd.f32 %v3808_v27, %v4833_v25  ;;  %v3421_v25 = vld [vmem:[%s4301_s23 + $0x1a1] sm:$0xff]  ;;  %s3504_s23 = sshll.u32 %s5486_s13, 8 }
 0x13a   : > { %v686_v15 = vpop.f32.mrf.mxu1  ;;  %v960_v60 = vpop.f32.mrf.mxu0  ;;  %v2309_v7 = vpack.c.bf16 %v3421_v25, %v3420_v16  ;;  %s5272_s19 = scalar_lea.vmem %s5401_s2, %s3504_s23 }
 0x13b   : > { %v5005_v5 = vadd.f32 %v3856_v28, %v695_v63  ;;  %v687_v17 = vadd.f32 %v686_v15, %v4837_v18 }
 0x13c   : > { %v3811_v56 = vpop.f32.mrf.mxu1  ;;  %v3859_v33 = vpop.f32.mrf.mxu0  ;;  %4098 = vmatmul.mubr.bf16.gmra.mxu1 %v2307_v39  ;;  %4146 = vmatmul.mubr.bf16.gmra.mxu0 %v2613_v22 }
 0x13d   : > { %v5009_v40 = vadd.f32 %v960_v60, %v687_v17  ;;  %v708_v55 = vadd.f32 %v3811_v56, %v4841_v38  ;;  %4101 = vmatprep.mubr.bf16.mxu1 %v4735_v21  ;;  %4149 = vmatprep.mubr.bf16.mxu0 %v4863_v2 }
 0x13e   : > { %v699_v30 = vpop.f32.mrf.mxu1  ;;  %v973_v49 = vpop.f32.mrf.mxu0 }
 0x13f   : > { %v5017_v44 = vadd.f32 %v3859_v33, %v708_v55  ;;  %v700_v18 = vadd.f32 %v699_v30, %v4854_v0 }
 0x140   : > { %v3812_v34 = vpop.f32.mrf.mxu1  ;;  %v3860_v59 = vpop.f32.mrf.mxu0 }
 0x141   : > { %v5020_v58 = vadd.f32 %v973_v49, %v700_v18  ;;  %v711_v38 = vadd.f32 %v3812_v34, %v4861_v1 }
 0x142   : > { %v702_v21 = vpop.f32.mrf.mxu1  ;;  %v976_v19 = vpop.f32.mrf.mxu0 }
 0x143   : > { %v5023_v2 = vadd.f32 %v3860_v59, %v711_v38  ;;  %v703_v43 = vadd.f32 %v702_v21, %v4867_v57 }
 0x144   : > { %v3815_v47 = vpop.f32.mrf.mxu1  ;;  %v3863_v48 = vpop.f32.mrf.mxu0  ;;  %4102 = vmatmul.mubr.bf16.gmra.mxu1 %v2309_v7  ;;  %4150 = vmatmul.mubr.bf16.gmra.mxu0 %v2615_v8 }
 0x145   : > { %v5026_v20 = vadd.f32 %v976_v19, %v703_v43  ;;  %v724_v0 = vadd.f32 %v3815_v47, %v4871_v54 }
 0x146   : > { %v715_v62 = vpop.f32.mrf.mxu1  ;;  %v989_v27 = vpop.f32.mrf.mxu0 }
 0x147   : > { %v5029_v28 = vadd.f32 %v3863_v48, %v724_v0  ;;  %v716_v1 = vadd.f32 %v715_v62, %v4881_v9 }
 0x148   : > { %v3816_v39 = vpop.f32.mrf.mxu1  ;;  %v3864_v22 = vpop.f32.mrf.mxu0 }
 0x149   : > { %v5032_v63 = vadd.f32 %v989_v27, %v716_v1  ;;  %v727_v57 = vadd.f32 %v3816_v39, %v4888_v45 }
 0x14a   : > { %v718_v15 = vpop.f32.mrf.mxu1  ;;  %v992_v60 = vpop.f32.mrf.mxu0 }
 0x14b   : > { %v5035_v17 = vadd.f32 %v3864_v22, %v727_v57  ;;  %v719_v56 = vadd.f32 %v718_v15, %v4892_v32 }
 0x14c   : > { %v3883_v33 = vpop.f32.mrf.mxu1  ;;  %v3931_v54 = vpop.f32.mrf.mxu0 }
 0x14d   : > { %v5038_v16 = vadd.f32 %v992_v60, %v719_v56  ;;  %v1313_v55 = vadd.f32 %v3883_v33, %v4903_v4 }
 0x14e   : > { %v1184_v25 = vpop.f32.mrf.mxu1  ;;  %v1490_v9 = vpop.f32.mrf.mxu0 }
 0x14f   : > { %v5041_v35 = vadd.f32 %v3931_v54, %v1313_v55  ;;  %v1311_v36 = vadd.f32 %v1184_v25, %v4906_v12 }
 0x150   : > { %v3884_v30 = vpop.f32.mrf.mxu1  ;;  %v3932_v45 = vpop.f32.mrf.mxu0 }
 0x151   : > { %v5044_v49 = vadd.f32 %v1490_v9, %v1311_v36  ;;  %v1314_v18 = vadd.f32 %v3884_v30, %v4909_v29 }
 0x152   : > { %v1187_v34 = vpop.f32.mrf.mxu1  ;;  %v1493_v32 = vpop.f32.mrf.mxu0 }
 0x153   : > { %v5047_v59 = vadd.f32 %v3932_v45, %v1314_v18  ;;  %v1312_v7 = vadd.f32 %v1187_v34, %v4914_v6 }
 0x154   : > { %v3887_v8 = vpop.f32.mrf.mxu1  ;;  %v3935_v4 = vpop.f32.mrf.mxu0 }
 0x155   : > { %v5050_v38 = vadd.f32 %v1493_v32, %v1312_v7  ;;  %v1317_v21 = vadd.f32 %v3887_v8, %v4923_v41 }
 0x156   : > { %v1200_v19 = vpop.f32.mrf.mxu1  ;;  %v1506_v12 = vpop.f32.mrf.mxu0 }
 0x157   : > { %v5053_v43 = vadd.f32 %v3935_v4, %v1317_v21  ;;  %v1315_v47 = vadd.f32 %v1200_v19, %v4926_v3 }
 0x158   : > { %v3888_v48 = vpop.f32.mrf.mxu1  ;;  %v3936_v29 = vpop.f32.mrf.mxu0 }
 0x159   : > { %v5056_v0 = vadd.f32 %v1506_v12, %v1315_v47  ;;  %v1318_v62 = vadd.f32 %v3888_v48, %v4929_v13 }
 0x15a   : > { %v1203_v27 = vpop.f32.mrf.mxu1  ;;  %v1509_v6 = vpop.f32.mrf.mxu0 }
 0x15b   : > { %v5059_v1 = vadd.f32 %v3936_v29, %v1318_v62  ;;  %v1316_v39 = vadd.f32 %v1203_v27, %v4934_v23 }
 0x15c   : > { %v3891_v22 = vpop.f32.mrf.mxu1  ;;  %v3939_v41 = vpop.f32.mrf.mxu0 }
 0x15d   : > { %v5062_v57 = vadd.f32 %v1509_v6, %v1316_v39  ;;  %v1321_v15 = vadd.f32 %v3891_v22, %v4943_v51 }
 0x15e   : > { %v1216_v60 = vpop.f32.mrf.mxu1  ;;  %v1522_v3 = vpop.f32.mrf.mxu0 }
 0x15f   : > { %v5065_v56 = vadd.f32 %v3939_v41, %v1321_v15  ;;  %v1319_v33 = vadd.f32 %v1216_v60, %v4946_v10 }
 0x160   : > { %v3892_v54 = vpop.f32.mrf.mxu1  ;;  %v3940_v13 = vpop.f32.mrf.mxu0 }
 0x161   : > { %v5068_v55 = vadd.f32 %v1522_v3, %v1319_v33  ;;  %v1322_v25 = vadd.f32 %v3892_v54, %v4949_v46 }
 0x162   : > { %v1219_v9 = vpop.f32.mrf.mxu1  ;;  %v1525_v23 = vpop.f32.mrf.mxu0 }
 0x163   : > { %v5071_v36 = vadd.f32 %v3940_v13, %v1322_v25  ;;  %v1320_v30 = vadd.f32 %v1219_v9, %v4954_v11 }
 0x164   : > { %v3895_v45 = vpop.f32.mrf.mxu1  ;;  %v3943_v51 = vpop.f32.mrf.mxu0 }
 0x165   : > { %v5074_v18 = vadd.f32 %v1525_v23, %v1320_v30  ;;  %v1325_v34 = vadd.f32 %v3895_v45, %v4963_v61 }
 0x166   : > { %v1232_v32 = vpop.f32.mrf.mxu1  ;;  %v1538_v10 = vpop.f32.mrf.mxu0 }
 0x167   : > { %v5077_v7 = vadd.f32 %v3943_v51, %v1325_v34  ;;  %v1323_v8 = vadd.f32 %v1232_v32, %v4966_v50 }
 0x168   : > { %v3896_v4 = vpop.f32.mrf.mxu1  ;;  %v3944_v46 = vpop.f32.mrf.mxu0 }
 0x169   : > { %v5080_v21 = vadd.f32 %v1538_v10, %v1323_v8  ;;  %v1326_v19 = vadd.f32 %v3896_v4, %v4969_v42 }
 0x16a   : > { %v1235_v12 = vpop.f32.mrf.mxu1  ;;  %v1541_v11 = vpop.f32.mrf.mxu0 }
 0x16b   : > { %v5083_v47 = vadd.f32 %v3944_v46, %v1326_v19  ;;  %v1324_v48 = vadd.f32 %v1235_v12, %v4974_v24 }
 0x16c   : > { %v3899_v29 = vpop.f32.mrf.mxu1  ;;  %v3947_v61 = vpop.f32.mrf.mxu0 }
 0x16d   : > { %v5086_v62 = vadd.f32 %v1541_v11, %v1324_v48  ;;  %v1329_v27 = vadd.f32 %v3899_v29, %v4983_v14 }
 0x16e   : > { %v1248_v6 = vpop.f32.mrf.mxu1  ;;  %v1554_v50 = vpop.f32.mrf.mxu0 }
 0x16f   : > { %v5089_v39 = vadd.f32 %v3947_v61, %v1329_v27  ;;  %v1327_v22 = vadd.f32 %v1248_v6, %v4986_v26 }
 0x170   : > { %v3900_v41 = vpop.f32.mrf.mxu1  ;;  %v3948_v42 = vpop.f32.mrf.mxu0 }
 0x171   : > { %v5092_v15 = vadd.f32 %v1554_v50, %v1327_v22  ;;  %v1330_v60 = vadd.f32 %v3900_v41, %v4989_v52 }
 0x172   : > { %v1251_v3 = vpop.f32.mrf.mxu1  ;;  %v1557_v24 = vpop.f32.mrf.mxu0 }
 0x173   : > { %v5095_v33 = vadd.f32 %v3948_v42, %v1330_v60  ;;  %v1328_v54 = vadd.f32 %v1251_v3, %v4993_v37 }
 0x174   : > { %v3903_v13 = vpop.f32.mrf.mxu1  ;;  %v3951_v14 = vpop.f32.mrf.mxu0 }
 0x175   : > { %5403 = vst [vmem:[#allocation2_spill] sm:$0xff] %v5095_v33  ;;  %v5098_v25 = vadd.f32 %v1557_v24, %v1328_v54  ;;  %v1333_v9 = vadd.f32 %v3903_v13, %v4999_v53 }
 0x176   : > { %v1264_v23 = vpop.f32.mrf.mxu1  ;;  %v1570_v26 = vpop.f32.mrf.mxu0 }
 0x177   : > { %5404 = vst [vmem:[#allocation3_spill] sm:$0xff] %v5098_v25  ;;  %v5101_v30 = vadd.f32 %v3951_v14, %v1333_v9  ;;  %v1331_v45 = vadd.f32 %v1264_v23, %v5002_v31 }
 0x178   : > { %v3904_v51 = vpop.f32.mrf.mxu1  ;;  %v3952_v52 = vpop.f32.mrf.mxu0 }
 0x179   : > { %5405 = vst [vmem:[#allocation4_spill] sm:$0xff] %v5101_v30  ;;  %v5104_v34 = vadd.f32 %v1570_v26, %v1331_v45  ;;  %v1334_v32 = vadd.f32 %v3904_v51, %v5005_v5 }
 0x17a   : > { %v1267_v10 = vpop.f32.mrf.mxu1  ;;  %v1573_v37 = vpop.f32.mrf.mxu0 }
 0x17b   : > { %5406 = vst [vmem:[#allocation5_spill] sm:$0xff] %v5104_v34  ;;  %v5107_v8 = vadd.f32 %v3952_v52, %v1334_v32  ;;  %v1332_v4 = vadd.f32 %v1267_v10, %v5009_v40 }
 0x17c   : > { %v3907_v46 = vpop.f32.mrf.mxu1  ;;  %v3955_v53 = vpop.f32.mrf.mxu0 }
 0x17d   : > { %5407 = vst [vmem:[#allocation6_spill] sm:$0xff] %v5107_v8  ;;  %v5110_v19 = vadd.f32 %v1573_v37, %v1332_v4  ;;  %v1337_v12 = vadd.f32 %v3907_v46, %v5017_v44 }
 0x17e   : > { %v1280_v11 = vpop.f32.mrf.mxu1  ;;  %v1586_v31 = vpop.f32.mrf.mxu0 }
 0x17f   : > { %5408 = vst [vmem:[#allocation7_spill] sm:$0xff] %v5110_v19  ;;  %v5113_v48 = vadd.f32 %v3955_v53, %v1337_v12  ;;  %v1335_v29 = vadd.f32 %v1280_v11, %v5020_v58 }
 0x180   : > { %v3908_v61 = vpop.f32.mrf.mxu1  ;;  %v3956_v5 = vpop.f32.mrf.mxu0 }
 0x181   : > { %5409 = vst [vmem:[#allocation8_spill] sm:$0xff] %v5113_v48  ;;  %v5116_v27 = vadd.f32 %v1586_v31, %v1335_v29  ;;  %v1338_v6 = vadd.f32 %v3908_v61, %v5023_v2 }
 0x182   : > { %v1283_v50 = vpop.f32.mrf.mxu1  ;;  %v1589_v40 = vpop.f32.mrf.mxu0 }
 0x183   : > { %5410 = vst [vmem:[#allocation9_spill] sm:$0xff] %v5116_v27  ;;  %v5119_v22 = vadd.f32 %v3956_v5, %v1338_v6  ;;  %v1336_v41 = vadd.f32 %v1283_v50, %v5026_v20 }
 0x184   : > { %v3911_v42 = vpop.f32.mrf.mxu1  ;;  %v3959_v44 = vpop.f32.mrf.mxu0 }
 0x185   : > { %5411 = vst [vmem:[#allocation10_spill] sm:$0xff] %v5119_v22  ;;  %v5122_v60 = vadd.f32 %v1589_v40, %v1336_v41  ;;  %v1341_v3 = vadd.f32 %v3911_v42, %v5029_v28 }
 0x186   : > { %v1296_v24 = vpop.f32.mrf.mxu1  ;;  %v1602_v58 = vpop.f32.mrf.mxu0 }
 0x187   : > { %5412 = vst [vmem:[#allocation11_spill] sm:$0xff] %v5122_v60  ;;  %v5125_v54 = vadd.f32 %v3959_v44, %v1341_v3  ;;  %v1339_v13 = vadd.f32 %v1296_v24, %v5032_v63 }
 0x188   : > { %v3912_v14 = vpop.f32.mrf.mxu1  ;;  %v3960_v2 = vpop.f32.mrf.mxu0 }
 0x189   : > { %5413 = vst [vmem:[#allocation12_spill] sm:$0xff] %v5125_v54  ;;  %v5128_v9 = vadd.f32 %v1602_v58, %v1339_v13  ;;  %v1342_v23 = vadd.f32 %v3912_v14, %v5035_v17 }
 0x18a   : > { %v1299_v26 = vpop.f32.mrf.mxu1  ;;  %v1605_v20 = vpop.f32.mrf.mxu0 }
 0x18b   : > { %5414 = vst [vmem:[#allocation13_spill] sm:$0xff] %v5128_v9  ;;  %v5131_v45 = vadd.f32 %v3960_v2, %v1342_v23  ;;  %v1340_v51 = vadd.f32 %v1299_v26, %v5038_v16 }
 0x18c   : > { %v3979_v52 = vpop.f32.mrf.mxu1  ;;  %v5134_v28 = vpop.f32.mrf.mxu0 }
 0x18d   : > { %5415 = vst [vmem:[#allocation14_spill] sm:$0xff] %v5131_v45  ;;  %v5136_v32 = vadd.f32 %v1605_v20, %v1340_v51 }
 0x18e   : > { %v1796_v10 = vpop.f32.mrf.mxu1  ;;  %v5138_v37 = vpop.f32.mrf.mxu0 }
 0x18f   : > { %5416 = vst [vmem:[#allocation15_spill] sm:$0xff] %v5136_v32 }
 0x190   : > { %v5140_v63 = vpop.f32.mrf.mxu1  ;;  %v5142_v4 = vpop.f32.mrf.mxu0 }
 0x192   : > { %v5144_v46 = vpop.f32.mrf.mxu1  ;;  %v5146_v17 = vpop.f32.mrf.mxu0 }
 0x194   : > { %v5148_v53 = vpop.f32.mrf.mxu1  ;;  %v5150_v12 = vpop.f32.mrf.mxu0 }
 0x196   : > { %v5152_v16 = vpop.f32.mrf.mxu1  ;;  %v5154_v11 = vpop.f32.mrf.mxu0 }
 0x198   : > { %v5156_v31 = vpop.f32.mrf.mxu1  ;;  %v5158_v29 = vpop.f32.mrf.mxu0 }
 0x19a   : > { %v5160_v61 = vpop.f32.mrf.mxu1  ;;  %v5162_v5 = vpop.f32.mrf.mxu0 }
 0x19c   : > { %v5164_v6 = vpop.f32.mrf.mxu1  ;;  %v5166_v50 = vpop.f32.mrf.mxu0 }
 0x19e   : > { %v5168_v40 = vpop.f32.mrf.mxu1  ;;  %v5170_v41 = vpop.f32.mrf.mxu0 }
 0x1a0   : > { %v5172_v42 = vpop.f32.mrf.mxu1  ;;  %v5174_v44 = vpop.f32.mrf.mxu0 }
 0x1a2   : > { %v5176_v3 = vpop.f32.mrf.mxu1  ;;  %v5178_v24 = vpop.f32.mrf.mxu0 }
 0x1a4   : > { %v5180_v58 = vpop.f32.mrf.mxu1  ;;  %v5182_v13 = vpop.f32.mrf.mxu0 }
 0x1a6   : > { %v5184_v14 = vpop.f32.mrf.mxu1  ;;  %v5186_v2 = vpop.f32.mrf.mxu0 }
 0x1a8   : > { %v5188_v23 = vpop.f32.mrf.mxu1  ;;  %v5190_v26 = vpop.f32.mrf.mxu0 }
 0x1aa   : > { %v5192_v20 = vpop.f32.mrf.mxu1  ;;  %v5194_v51 = vpop.f32.mrf.mxu0 }
 0x1ac   : > { %v5196_v32 = vpop.f32.mrf.mxu1  ;;  %v5198_v45 = vpop.f32.mrf.mxu0 }
 0x1ae   : > { %v5200_v9 = vpop.f32.mrf.mxu1  ;;  %v5202_v54 = vpop.f32.mrf.mxu0 }
 0x1af   : > { %5417 = vst [vmem:[#allocation16_spill] sm:$0xff] %v5202_v54 }
 0x1b0   : > { %v5204_v60 = vpop.f32.mrf.mxu1  ;;  %v5206_v22 = vpop.f32.mrf.mxu0 }
 0x1b1   : > { %5418 = vst [vmem:[#allocation17_spill] sm:$0xff] %v5204_v60  ;;  %5419 = vst [vmem:[#allocation18_spill] sm:$0xff] %v5206_v22 }
 0x1b2   : > { %v5208_v27 = vpop.f32.mrf.mxu1  ;;  %v5210_v48 = vpop.f32.mrf.mxu0 }
 0x1b3   : > { %5420 = vst [vmem:[#allocation19_spill] sm:$0xff] %v5208_v27  ;;  %5421 = vst [vmem:[#allocation20_spill] sm:$0xff] %v5210_v48 }
 0x1b4   : > { %v5212_v19 = vpop.f32.mrf.mxu1  ;;  %v5214_v8 = vpop.f32.mrf.mxu0 }
 0x1b5   : > { %5422 = vst [vmem:[#allocation21_spill] sm:$0xff] %v5212_v19  ;;  %5423 = vst [vmem:[#allocation22_spill] sm:$0xff] %v5214_v8 }
 0x1b6   : > { %v5216_v34 = vpop.f32.mrf.mxu1  ;;  %v5218_v30 = vpop.f32.mrf.mxu0 }
 0x1b7   : > { %5424 = vst [vmem:[#allocation23_spill] sm:$0xff] %v5216_v34  ;;  %5425 = vst [vmem:[#allocation24_spill] sm:$0xff] %v5218_v30 }
 0x1b8   : > { %v5220_v25 = vpop.f32.mrf.mxu1  ;;  %v5222_v33 = vpop.f32.mrf.mxu0 }
 0x1b9   : > { %5426 = vst [vmem:[#allocation25_spill] sm:$0xff] %v5220_v25  ;;  %5427 = vst [vmem:[#allocation26_spill] sm:$0xff] %v5222_v33 }
 0x1ba   : > { %v5224_v54 = vpop.f32.mrf.mxu1  ;;  %v5226_v60 = vpop.f32.mrf.mxu0 }
 0x1bb   : > { %5428 = vst [vmem:[#allocation27_spill] sm:$0xff] %v5224_v54  ;;  %5429 = vst [vmem:[#allocation28_spill] sm:$0xff] %v5226_v60 }
 0x1bc   : > { %v5228_v22 = vpop.f32.mrf.mxu1  ;;  %v5230_v27 = vpop.f32.mrf.mxu0 }
 0x1bd   : > { %5430 = vst [vmem:[#allocation29_spill] sm:$0xff] %v5228_v22  ;;  %5431 = vst [vmem:[#allocation30_spill] sm:$0xff] %v5230_v27 }
 0x1be   : > { %v5232_v48 = vpop.f32.mrf.mxu1  ;;  %v5234_v19 = vpop.f32.mrf.mxu0 }
 0x1bf   : > { %5432 = vst [vmem:[#allocation31_spill] sm:$0xff] %v5232_v48  ;;  %5433 = vst [vmem:[#allocation32_spill] sm:$0xff] %v5234_v19  ;;  %v1925_v48 = vadd.f32 %v3979_v52, %v5041_v35  ;;  %v1924_v52 = vadd.f32 %v5144_v46, %v5050_v38 }
 0x1c0   : > { %v5236_v8 = vpop.f32.mrf.mxu1  ;;  %v5238_v30 = vpop.f32.mrf.mxu0 }
 0x1c1   : > { %5434 = vst [vmem:[#allocation33_spill] sm:$0xff] %v5236_v8  ;;  %5435 = vst [vmem:[#allocation34_spill] sm:$0xff] %v5238_v30  ;;  %v1923_v30 = vadd.f32 %v1796_v10, %v5044_v49  ;;  %v2231_v38 = vadd.f32 %v5146_v17, %v1924_v52 }
 0x1c2   : > { %v5240_v25 = vpop.f32.mrf.mxu1  ;;  %v5242_v33 = vpop.f32.mrf.mxu0 }
 0x1c3   : > { %5436 = vst [vmem:[#allocation35_spill] sm:$0xff] %v5240_v25  ;;  %5437 = vst [vmem:[#allocation36_spill] sm:$0xff] %v5242_v33  ;;  %v2232_v33 = vadd.f32 %v5134_v28, %v1925_v48  ;;  %v2230_v35 = vadd.f32 %v5138_v37, %v1923_v30  ;;  %v1929_v28 = vadd.f32 %v5148_v53, %v5053_v43 }
 0x1c4   : > { %v5244_v54 = vpop.f32.mrf.mxu1  ;;  %v5246_v60 = vpop.f32.mrf.mxu0 }
 0x1c5   : > { %5438 = vst [vmem:[#allocation37_spill] sm:$0xff] %v5246_v60  ;;  %v1926_v60 = vadd.f32 %v5140_v63, %v5047_v59 }
 0x1c6   : > { %v5248_v22 = vpop.f32.mrf.mxu1  ;;  %v5250_v27 = vpop.f32.mrf.mxu0 }
 0x1c7   : > { %5439 = vst [vmem:[#allocation38_spill] sm:$0xff] %v5248_v22  ;;  %5440 = vst [vmem:[#allocation39_spill] sm:$0xff] %v5250_v27  ;;  %v2233_v59 = vadd.f32 %v5142_v4, %v1926_v60  ;;  %v2236_v60 = vadd.f32 %v5150_v12, %v1929_v28  ;;  %v1928_v4 = vadd.f32 %v5160_v61, %v5062_v57 }
 0x1c8   : > { %v5253_v19 = vpop.f32.mrf.mxu1  ;;  %v5255_v8 = vpop.f32.mrf.mxu0  ;;  %v1933_v12 = vadd.f32 %v5164_v6, %v5065_v56 }
 0x1c9   : > { %5441 = vst [vmem:[#allocation40_spill] sm:$0xff] %v5255_v8  ;;  %v2235_v61 = vadd.f32 %v5162_v5, %v1928_v4 }
 0x1ca   : > { %v5258_v34 = vpop.f32.mrf.mxu1  ;;  %v5260_v25 = vpop.f32.mrf.mxu0  ;;  %v2240_v6 = vadd.f32 %v5166_v50, %v1933_v12 }
 0x1cb   : > { %5442 = vst [vmem:[#allocation41_spill] sm:$0xff] %v5258_v34  ;;  %5443 = vst [vmem:[#allocation42_spill] sm:$0xff] %v5260_v25 }
 0x1cc   : > { %v4075_v22 = vpop.f32.mrf.mxu1  ;;  %v4123_v27 = vpop.f32.mrf.mxu0 }
 0x1cd   : > { %v2538_v8 = vadd.f32 %v4075_v22, %v2232_v33  ;;  %v1927_v33 = vadd.f32 %v5152_v16, %v5056_v0 }
 0x1ce   : > { %v2409_v49 = vpop.f32.mrf.mxu1  ;;  %v2715_v48 = vpop.f32.mrf.mxu0 }
 0x1cf   : > { %v2844_v10 = vadd.f32 %v4123_v27, %v2538_v8  ;;  %v2536_v30 = vadd.f32 %v2409_v49, %v2230_v35  ;;  %v1930_v27 = vadd.f32 %v5156_v31, %v5059_v1  ;;  %v2234_v0 = vadd.f32 %v5154_v11, %v1927_v33 }
 0x1d0   : > { %v4076_v37 = vpop.f32.mrf.mxu1  ;;  %v4124_v63 = vpop.f32.mrf.mxu0 }
 0x1d1   : > { %2876 = vst [vmem:[%s5272_s19 + $0x10] sm:$0xff] %v2844_v10  ;;  %v2842_v22 = vadd.f32 %v2715_v48, %v2536_v30  ;;  %v2539_v46 = vadd.f32 %v4076_v37, %v2233_v59  ;;  %v2237_v57 = vadd.f32 %v5158_v29, %v1930_v27  ;;  %v2945_v28 = vmul.f32 %v2844_v10, %v2844_v10 }
 0x1d2   : > { %v2412_v25 = vpop.f32.mrf.mxu1  ;;  %v2718_v34 = vpop.f32.mrf.mxu0 }
 0x1d3   : > { %2874 = vst [vmem:[%s5272_s19] sm:$0xff] %v2842_v22  ;;  %v2845_v43 = vadd.f32 %v4124_v63, %v2539_v46  ;;  %v2537_v8 = vadd.f32 %v2412_v25, %v2231_v38  ;;  %v2943_v52 = vmul.f32 %v2842_v22, %v2842_v22  ;;  %v1931_v63 = vadd.f32 %v5168_v40, %v5068_v55 }
 0x1d4   : > { %v4079_v17 = vpop.f32.mrf.mxu1  ;;  %v4127_v53 = vpop.f32.mrf.mxu0  ;;  %v1934_v38 = vadd.f32 %v5172_v42, %v5071_v36 }
 0x1d5   : > { %2877 = vst [vmem:[%s5272_s19 + $0x18] sm:$0xff] %v2845_v43  ;;  %v2843_v16 = vadd.f32 %v2718_v34, %v2537_v8  ;;  %v2542_v35 = vadd.f32 %v4079_v17, %v2236_v60  ;;  %v2946_v5 = vmul.f32 %v2845_v43, %v2845_v43  ;;  %v1932_v8 = vadd.f32 %v5176_v3, %v5074_v18 }
 0x1d6   : > { %v2425_v49 = vpop.f32.mrf.mxu1  ;;  %v2731_v25 = vpop.f32.mrf.mxu0 }
 0x1d7   : > { %2875 = vst [vmem:[%s5272_s19 + $0x8] sm:$0xff] %v2843_v16  ;;  %v2906_v48 = vadd.f32 %v2843_v16, %v2842_v22  ;;  %v2944_v1 = vmul.f32 %v2843_v16, %v2843_v16  ;;  %v2848_v31 = vadd.f32 %v4127_v53, %v2542_v35  ;;  %v2540_v59 = vadd.f32 %v2425_v49, %v2234_v0 }
 0x1d8   : > { %v4080_v11 = vpop.f32.mrf.mxu1  ;;  %v4128_v34 = vpop.f32.mrf.mxu0  ;;  %v2238_v53 = vadd.f32 %v5170_v41, %v1931_v63  ;;  %v2241_v0 = vadd.f32 %v5174_v44, %v1934_v38  ;;  %v1937_v49 = vadd.f32 %v5180_v58, %v5077_v7 }
 0x1d9   : > { %v2907_v30 = vadd.f32 %v2906_v48, %v2844_v10  ;;  %v2975_v37 = vadd.f32 %v2944_v1, %v2943_v52  ;;  %2880 = vst [vmem:[%s5272_s19 + $0x30] sm:$0xff] %v2848_v31  ;;  %v2846_v56 = vadd.f32 %v2731_v25, %v2540_v59  ;;  %v2543_v33 = vadd.f32 %v4080_v11, %v2237_v57 }
 0x1da   : > { %v2428_v29 = vpop.f32.mrf.mxu1  ;;  %v2734_v22 = vpop.f32.mrf.mxu0  ;;  %v2239_v52 = vadd.f32 %v5178_v24, %v1932_v8  ;;  %v1935_v25 = vadd.f32 %v5184_v14, %v5080_v21  ;;  %v2949_v1 = vmul.f32 %v2848_v31, %v2848_v31  ;;  %v1938_v11 = vadd.f32 %v5188_v23, %v5083_v47 }
 0x1db   : > { %v2976_v46 = vadd.f32 %v2975_v37, %v2945_v28  ;;  %2878 = vst [vmem:[%s5272_s19 + $0x20] sm:$0xff] %v2846_v56  ;;  %v2908_v60 = vadd.f32 %v2907_v30, %v2845_v43  ;;  %v2541_v10 = vadd.f32 %v2428_v29, %v2235_v61  ;;  %v2947_v50 = vmul.f32 %v2846_v56, %v2846_v56 }
 0x1dc   : > { %v2849_v27 = vadd.f32 %v4128_v34, %v2543_v33  ;;  %v4083_v4 = vpop.f32.mrf.mxu1  ;;  %v4131_v55 = vpop.f32.mrf.mxu0  ;;  %v2244_v37 = vadd.f32 %v5182_v13, %v1937_v49  ;;  %v2245_v33 = vadd.f32 %v5190_v26, %v1938_v11  ;;  %v1936_v29 = vadd.f32 %v5192_v20, %v5086_v62 }
 0x1dd   : > { %v2909_v40 = vadd.f32 %v2908_v60, %v2846_v56  ;;  %v2977_v17 = vadd.f32 %v2976_v46, %v2946_v5  ;;  %v2847_v36 = vadd.f32 %v2734_v22, %v2541_v10  ;;  %v2546_v42 = vadd.f32 %v4083_v4, %v2240_v6 }
 0x1de   : > { %2881 = vst [vmem:[%s5272_s19 + $0x38] sm:$0xff] %v2849_v27  ;;  %v2441_v16 = vpop.f32.mrf.mxu1  ;;  %v2747_v43 = vpop.f32.mrf.mxu0  ;;  %v2950_v34 = vmul.f32 %v2849_v27, %v2849_v27  ;;  %v2242_v56 = vadd.f32 %v5186_v2, %v1935_v25  ;;  %v1941_v22 = vadd.f32 %v5196_v32, %v5089_v39 }
 0x1df   : > { %v2978_v35 = vadd.f32 %v2977_v17, %v2947_v50  ;;  %2879 = vst [vmem:[%s5272_s19 + $0x28] sm:$0xff] %v2847_v36  ;;  %v2910_v12 = vadd.f32 %v2909_v40, %v2847_v36  ;;  %v2948_v18 = vmul.f32 %v2847_v36, %v2847_v36  ;;  %v2852_v3 = vadd.f32 %v4131_v55, %v2546_v42  ;;  %v5444_v36 = vld [vmem:[#allocation2_spill] sm:$0xff]  ;;  %v5445_v42 = vld [vmem:[#allocation17_spill] sm:$0xff] }
 0x1e0   : > { %v2544_v41 = vadd.f32 %v2441_v16, %v2238_v53  ;;  %v4084_v48 = vpop.f32.mrf.mxu1  ;;  %v4132_v44 = vpop.f32.mrf.mxu0  ;;  %v1939_v50 = vadd.f32 %v5200_v9, %v5092_v15  ;;  %v2243_v40 = vadd.f32 %v5194_v51, %v1936_v29  ;;  %v2248_v17 = vadd.f32 %v5198_v45, %v1941_v22  ;;  %v5455_v22 = vld [vmem:[#allocation6_spill] sm:$0xff] }
 0x1e1   : > { %v2911_v59 = vadd.f32 %v2910_v12, %v2848_v31  ;;  %v2979_v57 = vadd.f32 %v2978_v35, %v2948_v18  ;;  %2884 = vst [vmem:[%s5272_s19 + $0x50] sm:$0xff] %v2852_v3  ;;  %v2547_v61 = vadd.f32 %v4084_v48, %v2241_v0  ;;  %v1942_v53 = vadd.f32 %v5445_v42, %v5444_v36  ;;  %v5446_v12 = vld [vmem:[#allocation16_spill] sm:$0xff]  ;;  %v5459_v42 = vld [vmem:[#allocation7_spill] sm:$0xff] }
 0x1e2   : > { %v2850_v24 = vadd.f32 %v2747_v43, %v2544_v41  ;;  %v2444_v28 = vpop.f32.mrf.mxu1  ;;  %v2750_v7 = vpop.f32.mrf.mxu0  ;;  %v2246_v18 = vadd.f32 %v5446_v12, %v1939_v50  ;;  %v5457_v50 = vld [vmem:[#allocation22_spill] sm:$0xff] }
 0x1e3   : > { %v2980_v58 = vadd.f32 %v2979_v57, %v2949_v1  ;;  %v2912_v30 = vadd.f32 %v2911_v59, %v2849_v27  ;;  %v2853_v21 = vadd.f32 %v4132_v44, %v2547_v61  ;;  %v2545_v14 = vadd.f32 %v2444_v28, %v2239_v52  ;;  %v5448_v52 = vld [vmem:[#allocation19_spill] sm:$0xff]  ;;  %v5449_v59 = vld [vmem:[#allocation18_spill] sm:$0xff]  ;;  %v5451_v28 = vld [vmem:[#allocation21_spill] sm:$0xff] }
 0x1e4   : > { %2882 = vst [vmem:[%s5272_s19 + $0x40] sm:$0xff] %v2850_v24  ;;  %v4087_v31 = vpop.f32.mrf.mxu1  ;;  %v4135_v6 = vpop.f32.mrf.mxu0  ;;  %v2951_v38 = vmul.f32 %v2850_v24, %v2850_v24  ;;  %v2953_v27 = vmul.f32 %v2852_v3, %v2852_v3  ;;  %v2249_v57 = vadd.f32 %v5449_v59, %v1942_v53  ;;  %v5460_v53 = vld [vmem:[#allocation27_spill] sm:$0xff] }
 0x1e5   : > { %v2913_v63 = vadd.f32 %v2912_v30, %v2850_v24  ;;  %v2981_v47 = vadd.f32 %v2980_v58, %v2950_v34  ;;  %2885 = vst [vmem:[%s5272_s19 + $0x58] sm:$0xff] %v2853_v21  ;;  %v2851_v23 = vadd.f32 %v2750_v7, %v2545_v14  ;;  %v2550_v13 = vadd.f32 %v4087_v31, %v2244_v37  ;;  %v5450_v24 = vld [vmem:[#allocation4_spill] sm:$0xff] }
 0x1e6   : > { %v2457_v5 = vpop.f32.mrf.mxu1  ;;  %v2763_v2 = vpop.f32.mrf.mxu0  ;;  %v2954_v9 = vmul.f32 %v2853_v21, %v2853_v21  ;;  %v1945_v7 = vadd.f32 %v5451_v28, %v5450_v24 }
 0x1e7   : > { %v2982_v46 = vadd.f32 %v2981_v47, %v2951_v38  ;;  %2883 = vst [vmem:[%s5272_s19 + $0x48] sm:$0xff] %v2851_v23  ;;  %v2914_v60 = vadd.f32 %v2913_v63, %v2851_v23  ;;  %v2952_v10 = vmul.f32 %v2851_v23, %v2851_v23  ;;  %v2548_v8 = vadd.f32 %v2457_v5, %v2242_v56  ;;  %v5453_v38 = vld [vmem:[#allocation5_spill] sm:$0xff]  ;;  %v5454_v47 = vld [vmem:[#allocation23_spill] sm:$0xff] }
 0x1e8   : > { %v2856_v26 = vadd.f32 %v4135_v6, %v2550_v13  ;;  %v4088_v4 = vpop.f32.mrf.mxu1  ;;  %v4136_v62 = vpop.f32.mrf.mxu0  ;;  %v5452_v6 = vld [vmem:[#allocation20_spill] sm:$0xff]  ;;  %v1943_v23 = vadd.f32 %v5454_v47, %v5453_v38  ;;  %v5456_v13 = vld [vmem:[#allocation25_spill] sm:$0xff]  ;;  %v5469_v38 = vld [vmem:[#allocation30_spill] sm:$0xff] }
 0x1e9   : > { %v2915_v20 = vadd.f32 %v2914_v60, %v2852_v3  ;;  %v2983_v55 = vadd.f32 %v2982_v46, %v2952_v10  ;;  %v2854_v39 = vadd.f32 %v2763_v2, %v2548_v8  ;;  %v2551_v32 = vadd.f32 %v4088_v4, %v2245_v33  ;;  %v5447_v3 = vld [vmem:[#allocation3_spill] sm:$0xff] }
 0x1ea   : > { %2888 = vst [vmem:[%s5272_s19 + $0x70] sm:$0xff] %v2856_v26  ;;  %v2460_v0 = vpop.f32.mrf.mxu1  ;;  %v2766_v15 = vpop.f32.mrf.mxu0  ;;  %v1940_v49 = vadd.f32 %v5448_v52, %v5447_v3  ;;  %v1946_v5 = vadd.f32 %v5456_v13, %v5455_v22  ;;  %v2957_v2 = vmul.f32 %v2856_v26, %v2856_v26 }
 0x1eb   : > { %v2984_v16 = vadd.f32 %v2983_v55, %v2953_v27  ;;  %2886 = vst [vmem:[%s5272_s19 + $0x60] sm:$0xff] %v2854_v39  ;;  %v2916_v43 = vadd.f32 %v2915_v20, %v2853_v21  ;;  %v2857_v35 = vadd.f32 %v4136_v62, %v2551_v32  ;;  %v2549_v51 = vadd.f32 %v2460_v0, %v2243_v40 }
 0x1ec   : > { %v4091_v45 = vpop.f32.mrf.mxu1  ;;  %v4139_v25 = vpop.f32.mrf.mxu0  ;;  %v2955_v48 = vmul.f32 %v2854_v39, %v2854_v39  ;;  %v2247_v63 = vadd.f32 %v5452_v6, %v1940_v49  ;;  %v2252_v27 = vadd.f32 %v5457_v50, %v1945_v7  ;;  %v1944_v0 = vadd.f32 %v5460_v53, %v5459_v42  ;;  %v5462_v49 = vld [vmem:[#allocation8_spill] sm:$0xff] }
 0x1ed   : > { %v2917_v41 = vadd.f32 %v2916_v43, %v2854_v39  ;;  %v2985_v44 = vadd.f32 %v2984_v16, %v2954_v9  ;;  %2889 = vst [vmem:[%s5272_s19 + $0x78] sm:$0xff] %v2857_v35  ;;  %v2554_v1 = vadd.f32 %v4091_v45, %v2248_v17  ;;  %v2855_v61 = vadd.f32 %v2766_v15, %v2549_v51  ;;  %v5458_v17 = vld [vmem:[#allocation24_spill] sm:$0xff]  ;;  %v5461_v9 = vld [vmem:[#allocation26_spill] sm:$0xff] }
 0x1ee   : > { %v2473_v11 = vpop.f32.mrf.mxu1  ;;  %v2779_v34 = vpop.f32.mrf.mxu0  ;;  %v2958_v20 = vmul.f32 %v2857_v35, %v2857_v35  ;;  %v2250_v36 = vadd.f32 %v5458_v17, %v1943_v23  ;;  %v2253_v16 = vadd.f32 %v5461_v9, %v1946_v5 }
 0x1ef   : > { %v2986_v58 = vadd.f32 %v2985_v44, %v2955_v48  ;;  %v2860_v30 = vadd.f32 %v4139_v25, %v2554_v1  ;;  %v2552_v21 = vadd.f32 %v2473_v11, %v2246_v18  ;;  %2887 = vst [vmem:[%s5272_s19 + $0x68] sm:$0xff] %v2855_v61  ;;  %v2918_v14 = vadd.f32 %v2917_v41, %v2855_v61  ;;  %v5465_v11 = vld [vmem:[#allocation9_spill] sm:$0xff] }
 0x1f0   : > { %v2956_v37 = vmul.f32 %v2855_v61, %v2855_v61  ;;  %v4092_v56 = vpop.f32.mrf.mxu1  ;;  %v4140_v31 = vpop.f32.mrf.mxu0 }
 0x1f1   : > { %2892 = vst [vmem:[%s5272_s19 + $0x90] sm:$0xff] %v2860_v30  ;;  %v2858_v33 = vadd.f32 %v2779_v34, %v2552_v21  ;;  %v2555_v29 = vadd.f32 %v4092_v56, %v2249_v57  ;;  %v2919_v46 = vadd.f32 %v2918_v14, %v2856_v26  ;;  %v5464_v57 = vld [vmem:[#allocation28_spill] sm:$0xff]  ;;  %v5466_v34 = vld [vmem:[#allocation31_spill] sm:$0xff]  ;;  %v5468_v21 = vld [vmem:[#allocation33_spill] sm:$0xff] }
 0x1f2   : > { %v2987_v60 = vadd.f32 %v2986_v58, %v2956_v37  ;;  %v2476_v10 = vpop.f32.mrf.mxu1  ;;  %v2782_v8 = vpop.f32.mrf.mxu0  ;;  %v2251_v61 = vadd.f32 %v5464_v57, %v1944_v0  ;;  %v1947_v24 = vadd.f32 %v5466_v34, %v5465_v11  ;;  %v5467_v58 = vld [vmem:[#allocation10_spill] sm:$0xff]  ;;  %v2961_v37 = vmul.f32 %v2860_v30, %v2860_v30 }
 0x1f3   : > { %2890 = vst [vmem:[%s5272_s19 + $0x80] sm:$0xff] %v2858_v33  ;;  %v2861_v4 = vadd.f32 %v4140_v31, %v2555_v29  ;;  %v2553_v62 = vadd.f32 %v2476_v10, %v2247_v63  ;;  %v2920_v39 = vadd.f32 %v2919_v46, %v2857_v35  ;;  %v2959_v12 = vmul.f32 %v2858_v33, %v2858_v33  ;;  %v5463_v35 = vld [vmem:[#allocation29_spill] sm:$0xff]  ;;  %v5470_v46 = vld [vmem:[#allocation32_spill] sm:$0xff]  ;;  %v5471_v10 = vld [vmem:[#allocation11_spill] sm:$0xff] }
 0x1f4   : > { %v2988_v55 = vadd.f32 %v2987_v60, %v2957_v2  ;;  %v4095_v32 = vpop.f32.mrf.mxu1  ;;  %v4143_v40 = vpop.f32.mrf.mxu0  ;;  %v1949_v51 = vadd.f32 %v5463_v35, %v5462_v49  ;;  %v1950_v14 = vadd.f32 %v5468_v21, %v5467_v58  ;;  %v2254_v60 = vadd.f32 %v5470_v46, %v1947_v24  ;;  %v5480_v21 = vld [vmem:[#allocation39_spill] sm:$0xff] }
 0x1f5   : > { %2893 = vst [vmem:[%s5272_s19 + $0x98] sm:$0xff] %v2861_v4  ;;  %v2859_v26 = vadd.f32 %v2782_v8, %v2553_v62  ;;  %v2558_v15 = vadd.f32 %v4095_v32, %v2252_v27  ;;  %v2921_v43 = vadd.f32 %v2920_v39, %v2858_v33  ;;  %v2962_v29 = vmul.f32 %v2861_v4, %v2861_v4  ;;  %v5472_v8 = vld [vmem:[#allocation35_spill] sm:$0xff]  ;;  %v5473_v62 = vld [vmem:[#allocation34_spill] sm:$0xff] }
 0x1f6   : > { %v2989_v18 = vadd.f32 %v2988_v55, %v2958_v20  ;;  %v2489_v3 = vpop.f32.mrf.mxu1  ;;  %v2795_v52 = vpop.f32.mrf.mxu0  ;;  %v2256_v47 = vadd.f32 %v5469_v38, %v1949_v51  ;;  %v1948_v50 = vadd.f32 %v5472_v8, %v5471_v10  ;;  %v2257_v20 = vadd.f32 %v5473_v62, %v1950_v14  ;;  %v5481_v14 = vld [vmem:[#allocation15_spill] sm:$0xff]  ;;  %v5484_v8 = vld [vmem:[#allocation42_spill] sm:$0xff] }
 0x1f7   : > { %2891 = vst [vmem:[%s5272_s19 + $0x88] sm:$0xff] %v2859_v26  ;;  %v2960_v45 = vmul.f32 %v2859_v26, %v2859_v26  ;;  %v2864_v25 = vadd.f32 %v4143_v40, %v2558_v15  ;;  %v2556_v41 = vadd.f32 %v2489_v3, %v2250_v36  ;;  %v2922_v44 = vadd.f32 %v2921_v43, %v2859_v26  ;;  %v5474_v36 = vld [vmem:[#allocation12_spill] sm:$0xff]  ;;  %v5477_v3 = vld [vmem:[#allocation38_spill] sm:$0xff] }
 0x1f8   : > { %v2990_v48 = vadd.f32 %v2989_v18, %v2959_v12  ;;  %v4096_v1 = vpop.f32.mrf.mxu1  ;;  %v4144_v59 = vpop.f32.mrf.mxu0  ;;  %v5475_v43 = vld [vmem:[#allocation36_spill] sm:$0xff]  ;;  %v5476_v18 = vld [vmem:[#allocation13_spill] sm:$0xff] }
 0x1f9   : > { %2896 = vst [vmem:[%s5272_s19 + $0xb0] sm:$0xff] %v2864_v25  ;;  %v2862_v28 = vadd.f32 %v2795_v52, %v2556_v41  ;;  %v2559_v7 = vadd.f32 %v4096_v1, %v2253_v16  ;;  %v2923_v56 = vadd.f32 %v2922_v44, %v2860_v30  ;;  %v2255_v12 = vadd.f32 %v5475_v43, %v1948_v50  ;;  %v5478_v44 = vld [vmem:[#allocation37_spill] sm:$0xff] }
 0x1fa   : > { %v2991_v31 = vadd.f32 %v2990_v48, %v2960_v45  ;;  %v2492_v6 = vpop.f32.mrf.mxu1  ;;  %v2798_v63 = vpop.f32.mrf.mxu0  ;;  %v1951_v52 = vadd.f32 %v5477_v3, %v5476_v18  ;;  %v2965_v51 = vmul.f32 %v2864_v25, %v2864_v25 }
 0x1fb   : > { %2894 = vst [vmem:[%s5272_s19 + $0xa0] sm:$0xff] %v2862_v28  ;;  %v2865_v23 = vadd.f32 %v4144_v59, %v2559_v7  ;;  %v2557_v33 = vadd.f32 %v2492_v6, %v2251_v61  ;;  %v2924_v13 = vadd.f32 %v2923_v56, %v2861_v4  ;;  %v2963_v39 = vmul.f32 %v2862_v28, %v2862_v28  ;;  %v5479_v59 = vld [vmem:[#allocation14_spill] sm:$0xff] }
 0x1fc   : > { %v2992_v22 = vadd.f32 %v2991_v31, %v2961_v37  ;;  %v4099_v5 = vpop.f32.mrf.mxu1  ;;  %v4147_v2 = vpop.f32.mrf.mxu0  ;;  %v1953_v4 = vadd.f32 %v5244_v54, %v5474_v36  ;;  %v1954_v57 = vadd.f32 %v5253_v19, %v5479_v59  ;;  %v5482_v37 = vld [vmem:[#allocation41_spill] sm:$0xff] }
 0x1fd   : > { %2897 = vst [vmem:[%s5272_s19 + $0xb8] sm:$0xff] %v2865_v23  ;;  %v2863_v30 = vadd.f32 %v2798_v63, %v2557_v33  ;;  %v2562_v27 = vadd.f32 %v4099_v5, %v2256_v47  ;;  %v2925_v55 = vadd.f32 %v2924_v13, %v2862_v28  ;;  %v2966_v34 = vmul.f32 %v2865_v23, %v2865_v23 }
 0x1fe   : > { %v2993_v32 = vadd.f32 %v2992_v22, %v2962_v29  ;;  %v2505_v40 = vpop.f32.mrf.mxu1  ;;  %v2811_v17 = vpop.f32.mrf.mxu0  ;;  %v2260_v1 = vadd.f32 %v5478_v44, %v1953_v4  ;;  %v1952_v56 = vadd.f32 %v5482_v37, %v5481_v14  ;;  %v5483_v29 = vld [vmem:[#allocation40_spill] sm:$0xff] }
 0x1ff   : > { %2895 = vst [vmem:[%s5272_s19 + $0xa8] sm:$0xff] %v2863_v30  ;;  %v2964_v42 = vmul.f32 %v2863_v30, %v2863_v30  ;;  %v2868_v53 = vadd.f32 %v4147_v2, %v2562_v27  ;;  %v2560_v0 = vadd.f32 %v2505_v40, %v2254_v60  ;;  %v2926_v15 = vadd.f32 %v2925_v55, %v2863_v30 }
 0x200   : > { %v2994_v26 = vadd.f32 %v2993_v32, %v2963_v39  ;;  %v4100_v9 = vpop.f32.mrf.mxu1  ;;  %v4148_v16 = vpop.f32.mrf.mxu0  ;;  %v2261_v22 = vadd.f32 %v5483_v29, %v1954_v57  ;;  %v2259_v50 = vadd.f32 %v5484_v8, %v1952_v56 }
 0x201   : > { %2900 = vst [vmem:[%s5272_s19 + $0xd0] sm:$0xff] %v2868_v53  ;;  %v2866_v49 = vadd.f32 %v2811_v17, %v2560_v0  ;;  %v2563_v35 = vadd.f32 %v4100_v9, %v2257_v20  ;;  %v2927_v45 = vadd.f32 %v2926_v15, %v2864_v25  ;;  %v2258_v25 = vadd.f32 %v5480_v21, %v1951_v52 }
 0x202   : > { %v2995_v54 = vadd.f32 %v2994_v26, %v2964_v42  ;;  %v2508_v41 = vpop.f32.mrf.mxu1  ;;  %v2814_v48 = vpop.f32.mrf.mxu0  ;;  %v2969_v62 = vmul.f32 %v2868_v53, %v2868_v53 }
 0x203   : > { %2898 = vst [vmem:[%s5272_s19 + $0xc0] sm:$0xff] %v2866_v49  ;;  %v2869_v61 = vadd.f32 %v4148_v16, %v2563_v35  ;;  %v2561_v11 = vadd.f32 %v2508_v41, %v2255_v12  ;;  %v2928_v28 = vadd.f32 %v2927_v45, %v2865_v23  ;;  %v2967_v19 = vmul.f32 %v2866_v49, %v2866_v49 }
 0x204   : > { %v2996_v24 = vadd.f32 %v2995_v54, %v2965_v51  ;;  %v4103_v7 = vpop.f32.mrf.mxu1  ;;  %v4151_v58 = vpop.f32.mrf.mxu0 }
 0x205   : > { %2901 = vst [vmem:[%s5272_s19 + $0xd8] sm:$0xff] %v2869_v61  ;;  %v2867_v31 = vadd.f32 %v2814_v48, %v2561_v11  ;;  %v2566_v6 = vadd.f32 %v4103_v7, %v2260_v1  ;;  %v2929_v63 = vadd.f32 %v2928_v28, %v2866_v49  ;;  %v2970_v17 = vmul.f32 %v2869_v61, %v2869_v61 }
 0x206   : > { %v2997_v38 = vadd.f32 %v2996_v24, %v2966_v34  ;;  %v2521_v47 = vpop.f32.mrf.mxu1  ;;  %v2827_v33 = vpop.f32.mrf.mxu0 }
 0x207   : > { %2899 = vst [vmem:[%s5272_s19 + $0xc8] sm:$0xff] %v2867_v31  ;;  %v2968_v23 = vmul.f32 %v2867_v31, %v2867_v31  ;;  %v2872_v13 = vadd.f32 %v4151_v58, %v2566_v6  ;;  %v2564_v5 = vadd.f32 %v2521_v47, %v2258_v25  ;;  %v2930_v46 = vadd.f32 %v2929_v63, %v2867_v31 }
 0x208   : > { %v2998_v2 = vadd.f32 %v2997_v38, %v2967_v19  ;;  %v4104_v60 = vpop.f32.mrf.mxu1  ;;  %v4152_v10 = vpop.f32.mrf.mxu0 }
 0x209   : > { %2904 = vst [vmem:[%s5272_s19 + $0xf0] sm:$0xff] %v2872_v13  ;;  %v2870_v30 = vadd.f32 %v2827_v33, %v2564_v5  ;;  %v2567_v27 = vadd.f32 %v4104_v60, %v2261_v22  ;;  %v2931_v20 = vadd.f32 %v2930_v46, %v2868_v53  ;;  %v2973_v18 = vmul.f32 %v2872_v13, %v2872_v13 }
 0x20a   : > { %v2999_v55 = vadd.f32 %v2998_v2, %v2968_v23  ;;  %v2524_v39 = vpop.f32.mrf.mxu1  ;;  %v2830_v42 = vpop.f32.mrf.mxu0 }
 0x20b   : > { %2902 = vst [vmem:[%s5272_s19 + $0xe0] sm:$0xff] %v2870_v30  ;;  %v2873_v32 = vadd.f32 %v4152_v10, %v2567_v27  ;;  %v2565_v40 = vadd.f32 %v2524_v39, %v2259_v50  ;;  %v2932_v4 = vadd.f32 %v2931_v20, %v2869_v61  ;;  %v2971_v15 = vmul.f32 %v2870_v30, %v2870_v30 }
 0x20c   : > { %v3000_v36 = vadd.f32 %v2999_v55, %v2969_v62 }
 0x20d   : > { %2905 = vst [vmem:[%s5272_s19 + $0xf8] sm:$0xff] %v2873_v32  ;;  %v2871_v0 = vadd.f32 %v2830_v42, %v2565_v40  ;;  %v2933_v26 = vadd.f32 %v2932_v4, %v2870_v30  ;;  %v2974_v52 = vmul.f32 %v2873_v32, %v2873_v32 }
 0x20e   : > { %v3001_v9 = vadd.f32 %v3000_v36, %v2970_v17 }
 0x20f   : > { %2903 = vst [vmem:[%s5272_s19 + $0xe8] sm:$0xff] %v2871_v0  ;;  %v2972_v16 = vmul.f32 %v2871_v0, %v2871_v0  ;;  %v2934_v12 = vadd.f32 %v2933_v26, %v2871_v0 }
 0x210   : > { %v3002_v43 = vadd.f32 %v3001_v9, %v2971_v15 }
 0x211   : > { %v2935_v53 = vadd.f32 %v2934_v12, %v2872_v13 }
 0x212   : > { %v3003_v3 = vadd.f32 %v3002_v43, %v2972_v16 }
 0x213   : > { %v2936_v49 = vadd.f32 %v2935_v53, %v2873_v32 }
 0x214   : > { %v3004_v35 = vadd.f32 %v3003_v3, %v2973_v18 }
 0x215   : > { %v2937_v51 = vrot.slane %v2936_v49, 4 }
 0x216   : > { %v3005_v45 = vadd.f32 %v3004_v35, %v2974_v52 }
 0x217   : > { %v2938_v54 = vadd.f32 %v2937_v51, %v2936_v49 }
 0x218   : > { %v3006_v41 = vrot.slane %v3005_v45, 4 }
 0x219   : > { %v2939_v48 = vrot.slane %v2938_v54, 2 }
 0x21a   : > { %v3007_v44 = vadd.f32 %v3006_v41, %v3005_v45 }
 0x21b   : > { %v2940_v1 = vadd.f32 %v2939_v48, %v2938_v54 }
 0x21c   : > { %v3008_v59 = vrot.slane %v3007_v44, 2 }
 0x21d   : > { %v2941_v57 = vrot.slane %v2940_v1, 1 }
 0x21e   : > { %v3009_v61 = vadd.f32 %v3008_v59, %v3007_v44 }
 0x21f   : > { %v2942_v34 = vadd.f32 %v2941_v57, %v2940_v1 }
 0x220   : > { %v3010_v11 = vrot.slane %v3009_v61, 1 }
 0x222   : > { %v3011_v24 = vadd.f32 %v3010_v11, %v3009_v61 }
 0x224   : > { %v3013_v28 = vsel %vm3012_vm0, %v2942_v34, %v3011_v24 }
 0x225   : > { %3014 = vst [vmem:[%s181_s24] sm:$0x3] %v3013_v28 }
 0x226 PF: > { %s14_s12 = sadd.s32 1, %s4256_s12  }
 0x227   : > { %p11_p4 = scmp.ge.s32.totalorder %s14_s12, 4  }
 0x229   :  { %13 = sbr.rel (!%p11_p4) target bundleno = 1 (0x1), region = 80 }

// kernel: vgg_block_forward.4
= control target key start
LH: loop header
LB: loop body
LE: loop exit
PB: predicated region body
PF: predicated region fallthrough
CT: control target
= control target key end

     0   :  { %s4349_s15 = smov 0   ;;  %s5591_s0 = inlined_call_operand.vmem [shape: f32[2,16,16,128], index: 0, kind: input, shape index: {}]   ;;  %s5592_s1 = inlined_call_operand.vmem [shape: f32[2,128], index: 1, kind: input, shape index: {}]   ;;  %s5593_s2 = inlined_call_operand.vmem [shape: bf16[9,128,128], index: 2, kind: input, shape index: {}]   ;;  %s5594_s3 = inlined_call_operand.vmem [shape: f32[2,16,16,128], index: 3, kind: output, shape index: {0}]   ;;  %s5595_s4 = inlined_call_operand.vmem [shape: f32[2,2,128], index: 4, kind: output, shape index: {1}]  }
   0x1 LB: > { %s3352_s16 = sadd.s32 4294967295, %s4320_s15   ;;  %p3356_p0 = scmp.ge.s32.totalorder %s4320_s15, 1  ;;  %s4320_s15 = sphi %s4349_s15, %s15_s15  }
   0x2   : > { %p165_p1 = scmp.lt.s32.totalorder %s4320_s15, 3 }
   0x4   : > { %p166_p2 = pnand %p3356_p0, %p165_p1 }
   0x6   : > { %169 = sbr.rel (%p166_p2) target bundleno = 550 (0x226), region = 32 }
   0xb   : > { %v4241_v0 = vld [vmem:[%s5593_s2 + $0x78] sm:$0xff]   ;;  %v4363_v1 = vld [vmem:[%s5593_s2 + $0x70] sm:$0xff]   ;;  %v4322_v2 = vmov 0.0   ;;  %p195_p3 = scmp.lt.s32.totalorder %s3352_s16, 1  ;;  %v4243_v3 = vld [vmem:[%s5593_s2 + $0x68] sm:$0xff]   ;;  %vm3263_vm0 = vcmask 1040384  }
   0xc   : > { %348 = vst [vmem:[#allocation2] sm:$0xff] %v4322_v2  ;;  %349 = vst [vmem:[#allocation2 + $0x8] sm:$0xff] %v4322_v2  ;;  %3784 = vmatprep.subr.bf16.mxu0 %v4241_v0  ;;  %4216 = vmatprep.subr.bf16.mxu1 %v4241_v0  ;;  %v4244_v4 = vld [vmem:[%s5593_s2 + $0x60] sm:$0xff]   ;;  %v4245_v21 = vld [vmem:[%s5593_s2 + $0x58] sm:$0xff]  }
   0xd   : > { %350 = vst [vmem:[#allocation2 + $0x10] sm:$0x3] %v4322_v2  ;;  %351 = vst [vmem:[#allocation2 + $0x18] sm:$0xff] %v4322_v2  ;;  %3785 = vmatpush3.bf16.msra.mxu0 %v4241_v0  ;;  %4224 = vmatpush3.bf16.msra.mxu1 %v4241_v0  ;;  %s5679_s16 = smov (!%p195_p3, %s3352_s16), 1  ;;  %v4392_v7 = vld [vmem:[%s5592_s1] ss:$0 sm:$0xff] }
   0xe   : > { %352 = vst [vmem:[#allocation2 + $0x20] sm:$0xff] %v4322_v2  ;;  %353 = vst [vmem:[#allocation2 + $0x28] sm:$0x3] %v4322_v2  ;;  %3786 = vmatprep.subr.bf16.mxu0 %v4363_v1  ;;  %4217 = vmatprep.subr.bf16.mxu1 %v4363_v1  ;;  %s3566_s23 = sshll.u32 %s5679_s16, 8  ;;  %v4397_v9 = vld [vmem:[%s5592_s1 + $0x1] ss:$0 sm:$0xff] }
   0xf   : > { %354 = vst [vmem:[#allocation2 + $0x30] sm:$0xff] %v4322_v2  ;;  %355 = vst [vmem:[#allocation2 + $0x38] sm:$0xff] %v4322_v2  ;;  %s4382_s26 = scalar_lea.vmem %s5591_s0, %s3566_s23  ;;  %v4246_v28 = vld [vmem:[%s5593_s2 + $0x50] sm:$0xff]   ;;  %v4247_v55 = vld [vmem:[%s5593_s2 + $0x48] sm:$0xff]   ;;  %s5464_s10 = scalar_lea.vmem %s5594_s3, %s3566_s23 }
  0x10   : > { %356 = vst [vmem:[#allocation2 + $0x40] sm:$0x3] %v4322_v2  ;;  %357 = vst [vmem:[#allocation2 + $0x48] sm:$0xff] %v4322_v2  ;;  %v226_v10 = vld [vmem:[%s4382_s26 + $0x70] sm:$0xff]  ;;  %v227_v11 = vld [vmem:[%s4382_s26 + $0x78] sm:$0xff]  ;;  %s3361_s23 = sshll.u32 %s5679_s16, 1 }
  0x11   : > { %358 = vst [vmem:[#allocation2 + $0x50] sm:$0xff] %v4322_v2  ;;  %359 = vst [vmem:[#allocation2 + $0x58] sm:$0x3] %v4322_v2  ;;  %3787 = vmatpush3.bf16.msra.mxu0 %v4363_v1  ;;  %4225 = vmatpush3.bf16.msra.mxu1 %v4363_v1  ;;  %v262_v12 = vmul.f32 %v4392_v7, %v226_v10  ;;  %v263_v13 = vmul.f32 %v4392_v7, %v227_v11  ;;  %v212_v14 = vld [vmem:[%s4382_s26] sm:$0xff]  ;;  %v213_v15 = vld [vmem:[%s4382_s26 + $0x8] sm:$0xff]  ;;  %s208_s13 = scalar_lea.vmem %s5595_s4, %s3361_s23 }
  0x12   : > { %360 = vst [vmem:[#allocation2 + $0x60] sm:$0xff] %v4322_v2  ;;  %361 = vst [vmem:[#allocation2 + $0x68] sm:$0xff] %v4322_v2  ;;  %3788 = vmatprep.subr.bf16.mxu0 %v4243_v3  ;;  %4218 = vmatprep.subr.bf16.mxu1 %v4243_v3  ;;  %v228_v16 = vld [vmem:[%s4382_s26 + $0x80] sm:$0xff]  ;;  %v248_v17 = vmul.f32 %v4392_v7, %v212_v14  ;;  %v249_v18 = vmul.f32 %v4392_v7, %v213_v15  ;;  %v229_v19 = vld [vmem:[%s4382_s26 + $0x88] sm:$0xff] }
  0x13   : > { %362 = vst [vmem:[#allocation2 + $0x70] sm:$0x3] %v4322_v2  ;;  %363 = vst [vmem:[#allocation2 + $0x78] sm:$0xff] %v4322_v2  ;;  %v499_v5 = vld [vmem:[#allocation2 + $0x1] sm:$0xff]  ;;  %v264_v20 = vmul.f32 %v4392_v7, %v228_v16  ;;  %v298_v22 = vadd.f32 %v4397_v9, %v262_v12  ;;  %v299_v23 = vadd.f32 %v4397_v9, %v263_v13  ;;  %v214_v35 = vld [vmem:[%s4382_s26 + $0x10] sm:$0xff] }
  0x14   : > { %364 = vst [vmem:[#allocation2 + $0x80] sm:$0xff] %v4322_v2  ;;  %365 = vst [vmem:[#allocation2 + $0x88] sm:$0x3] %v4322_v2  ;;  %v500_v6 = vld [vmem:[#allocation2 + $0x9] sm:$0xff]  ;;  %v265_v24 = vmul.f32 %v4392_v7, %v229_v19  ;;  %v4417_v25 = vadd.f32 %v4397_v9, %v248_v17  ;;  %v4420_v26 = vadd.f32 %v4397_v9, %v249_v18  ;;  %v215_v38 = vld [vmem:[%s4382_s26 + $0x18] sm:$0xff] }
  0x15   : > { %366 = vst [vmem:[#allocation2 + $0x90] sm:$0xff] %v4322_v2  ;;  %367 = vst [vmem:[#allocation2 + $0x98] sm:$0xff] %v4322_v2  ;;  %v531_v8 = vpack.c.bf16 %v500_v6, %v499_v5  ;;  %3789 = vmatpush3.bf16.msra.mxu0 %v4243_v3  ;;  %4226 = vmatpush3.bf16.msra.mxu1 %v4243_v3  ;;  %v4423_v27 = vadd.f32 %v4397_v9, %v264_v20  ;;  %v330_v29 = vmax.f32 %v298_v22, 0.0  ;;  %v230_v40 = vld [vmem:[%s4382_s26 + $0x90] sm:$0xff]  ;;  %v231_v41 = vld [vmem:[%s4382_s26 + $0x98] sm:$0xff] }
  0x16   : > { %368 = vst [vmem:[#allocation2 + $0xa0] sm:$0x3] %v4322_v2  ;;  %369 = vst [vmem:[#allocation2 + $0xa8] sm:$0xff] %v4322_v2  ;;  %3790 = vmatprep.subr.bf16.mxu0 %v4244_v4  ;;  %4219 = vmatprep.subr.bf16.mxu1 %v4244_v4  ;;  %v331_v30 = vmax.f32 %v299_v23, 0.0  ;;  %v4429_v31 = vadd.f32 %v4397_v9, %v265_v24  ;;  %v316_v32 = vmax.f32 %v4417_v25, 0.0  ;;  %v317_v33 = vmax.f32 %v4420_v26, 0.0 }
  0x17   : > { %370 = vst [vmem:[#allocation2 + $0xb0] sm:$0xff] %v4322_v2  ;;  %371 = vst [vmem:[#allocation2 + $0xb8] sm:$0x3] %v4322_v2  ;;  %3800 = vmatprep.mubr.bf16.mxu0 %v531_v8  ;;  %v332_v34 = vmax.f32 %v4423_v27, 0.0  ;;  %v250_v39 = vmul.f32 %v4392_v7, %v214_v35  ;;  %v251_v42 = vmul.f32 %v4392_v7, %v215_v38  ;;  %v216_v45 = vld [vmem:[%s4382_s26 + $0x20] sm:$0xff]  ;;  %v217_v46 = vld [vmem:[%s4382_s26 + $0x28] sm:$0xff] }
  0x18   : > { %372 = vst [vmem:[#allocation2 + $0xc0] sm:$0xff] %v4322_v2  ;;  %373 = vst [vmem:[#allocation2 + $0xc8] sm:$0xff] %v4322_v2  ;;  %v539_v36 = vpack.c.bf16 %v331_v30, %v330_v29  ;;  %v333_v37 = vmax.f32 %v4429_v31, 0.0  ;;  %v266_v43 = vmul.f32 %v4392_v7, %v230_v40  ;;  %v267_v44 = vmul.f32 %v4392_v7, %v231_v41  ;;  %v232_v47 = vld [vmem:[%s4382_s26 + $0xa0] sm:$0xff]  ;;  %v233_v51 = vld [vmem:[%s4382_s26 + $0xa8] sm:$0xff] }
  0x19   : > { %374 = vst [vmem:[#allocation2 + $0xd0] sm:$0x3] %v4322_v2  ;;  %375 = vst [vmem:[#allocation2 + $0xd8] sm:$0xff] %v4322_v2  ;;  %3791 = vmatpush3.bf16.msra.mxu0 %v4244_v4  ;;  %4227 = vmatpush3.bf16.msra.mxu1 %v4244_v4  ;;  %v4455_v48 = vadd.f32 %v4397_v9, %v250_v39  ;;  %v252_v49 = vmul.f32 %v4392_v7, %v216_v45  ;;  %v4487_v0 = vld [vmem:[%s5593_s2 + $0x40] sm:$0xff]   ;;  %v218_v4 = vld [vmem:[%s4382_s26 + $0x30] sm:$0xff] }
  0x1a   : > { %376 = vst [vmem:[#allocation2 + $0xe0] sm:$0xff] %v4322_v2  ;;  %377 = vst [vmem:[#allocation2 + $0xe8] sm:$0x3] %v4322_v2  ;;  %3792 = vmatprep.subr.bf16.mxu0 %v4245_v21  ;;  %4220 = vmatprep.subr.bf16.mxu1 %v4245_v21  ;;  %v253_v50 = vmul.f32 %v4392_v7, %v217_v46  ;;  %v4461_v52 = vadd.f32 %v4397_v9, %v251_v42  ;;  %v219_v6 = vld [vmem:[%s4382_s26 + $0x38] sm:$0xff]  ;;  %v234_v8 = vld [vmem:[%s4382_s26 + $0xb0] sm:$0xff] }
  0x1b   : > { %378 = vst [vmem:[#allocation2 + $0xf0] sm:$0xff] %v4322_v2  ;;  %379 = vst [vmem:[#allocation2 + $0xf8] sm:$0xff] %v4322_v2  ;;  %3816 = vmatprep.mubr.bf16.mxu1 %v539_v36  ;;  %v4464_v53 = vadd.f32 %v4397_v9, %v266_v43  ;;  %v4467_v54 = vadd.f32 %v4397_v9, %v267_v44  ;;  %v318_v56 = vmax.f32 %v4455_v48, 0.0  ;;  %v235_v10 = vld [vmem:[%s4382_s26 + $0xb8] sm:$0xff]  ;;  %v220_v14 = vld [vmem:[%s4382_s26 + $0x40] sm:$0xff] }
  0x1c   : > { %380 = vst [vmem:[#allocation2 + $0x100] sm:$0x3] %v4322_v2  ;;  %381 = vst [vmem:[#allocation2 + $0x108] sm:$0xff] %v4322_v2  ;;  %v4474_v57 = vadd.f32 %v4397_v9, %v252_v49  ;;  %v4477_v58 = vadd.f32 %v4397_v9, %v253_v50  ;;  %v268_v59 = vmul.f32 %v4392_v7, %v232_v47  ;;  %v319_v60 = vmax.f32 %v4461_v52, 0.0  ;;  %v221_v15 = vld [vmem:[%s4382_s26 + $0x48] sm:$0xff]  ;;  %v236_v16 = vld [vmem:[%s4382_s26 + $0xc0] sm:$0xff] }
  0x1d   : > { %382 = vst [vmem:[#allocation2 + $0x110] sm:$0xff] %v4322_v2  ;;  %383 = vst [vmem:[#allocation2 + $0x118] sm:$0x3] %v4322_v2  ;;  %3793 = vmatpush3.bf16.msra.mxu0 %v4245_v21  ;;  %4228 = vmatpush3.bf16.msra.mxu1 %v4245_v21  ;;  %v334_v61 = vmax.f32 %v4464_v53, 0.0  ;;  %v335_v62 = vmax.f32 %v4467_v54, 0.0  ;;  %v269_v63 = vmul.f32 %v4392_v7, %v233_v51  ;;  %v237_v24 = vld [vmem:[%s4382_s26 + $0xc8] sm:$0xff] }
  0x1e   : > { %384 = vst [vmem:[#allocation2 + $0x120] sm:$0xff] %v4322_v2  ;;  %385 = vst [vmem:[#allocation2 + $0x128] sm:$0xff] %v4322_v2  ;;  %3794 = vmatprep.subr.bf16.mxu0 %v4246_v28  ;;  %4221 = vmatprep.subr.bf16.mxu1 %v4246_v28  ;;  %v320_v1 = vmax.f32 %v4474_v57, 0.0  ;;  %v4494_v3 = vadd.f32 %v4397_v9, %v268_v59  ;;  %v254_v12 = vmul.f32 %v4392_v7, %v218_v4  ;;  %v4249_v25 = vld [vmem:[%s5593_s2 + $0x38] sm:$0xff]   ;;  %v222_v43 = vld [vmem:[%s4382_s26 + $0x50] sm:$0xff] }
  0x1f   : > { %386 = vst [vmem:[#allocation2 + $0x130] sm:$0x3] %v4322_v2  ;;  %387 = vst [vmem:[#allocation2 + $0x138] sm:$0xff] %v4322_v2  ;;  %v4504_v5 = vadd.f32 %v4397_v9, %v269_v63  ;;  %v255_v13 = vmul.f32 %v4392_v7, %v219_v6  ;;  %v270_v18 = vmul.f32 %v4392_v7, %v234_v8  ;;  %v4250_v26 = vld [vmem:[%s5593_s2 + $0xb8] sm:$0xff]   ;;  %v238_v50 = vld [vmem:[%s4382_s26 + $0xd0] sm:$0xff] }
  0x20   : > { %388 = vst [vmem:[#allocation2 + $0x140] sm:$0xff] %v4322_v2  ;;  %389 = vst [vmem:[#allocation2 + $0x148] sm:$0x3] %v4322_v2  ;;  %v336_v11 = vmax.f32 %v4494_v3, 0.0  ;;  %v271_v19 = vmul.f32 %v4392_v7, %v235_v10  ;;  %v256_v20 = vmul.f32 %v4392_v7, %v220_v14  ;;  %v4526_v21 = vadd.f32 %v4397_v9, %v254_v12  ;;  %v223_v44 = vld [vmem:[%s4382_s26 + $0x58] sm:$0xff]  ;;  %v224_v27 = vld [vmem:[%s4382_s26 + $0x60] sm:$0xff] }
  0x21   : > { %390 = vst [vmem:[#allocation2 + $0x150] sm:$0xff] %v4322_v2  ;;  %391 = vst [vmem:[#allocation2 + $0x158] sm:$0xff] %v4322_v2  ;;  %3795 = vmatpush3.bf16.msra.mxu0 %v4246_v28  ;;  %4229 = vmatpush3.bf16.msra.mxu1 %v4246_v28  ;;  %v337_v17 = vmax.f32 %v4504_v5, 0.0  ;;  %v4529_v22 = vadd.f32 %v4397_v9, %v255_v13  ;;  %v257_v23 = vmul.f32 %v4392_v7, %v221_v15  ;;  %v239_v51 = vld [vmem:[%s4382_s26 + $0xd8] sm:$0xff]  ;;  %v4251_v31 = vld [vmem:[%s5593_s2 + $0x30] sm:$0xff]  }
  0x22   : > { %392 = vst [vmem:[#allocation2 + $0x160] sm:$0x3] %v4322_v2  ;;  %393 = vst [vmem:[#allocation2 + $0x168] sm:$0xff] %v4322_v2  ;;  %3796 = vmatprep.subr.bf16.mxu0 %v4247_v55  ;;  %4222 = vmatprep.subr.bf16.mxu1 %v4247_v55  ;;  %v272_v28 = vmul.f32 %v4392_v7, %v236_v16  ;;  %v4546_v35 = vadd.f32 %v4397_v9, %v271_v19  ;;  %v225_v63 = vld [vmem:[%s4382_s26 + $0x68] sm:$0xff]  ;;  %v240_v48 = vld [vmem:[%s4382_s26 + $0xe0] sm:$0xff] }
  0x23   : > { %394 = vst [vmem:[#allocation2 + $0x170] sm:$0xff] %v4322_v2  ;;  %395 = vst [vmem:[#allocation2 + $0x178] sm:$0x3] %v4322_v2  ;;  %v4559_v36 = vadd.f32 %v4397_v9, %v256_v20  ;;  %v4562_v38 = vadd.f32 %v4397_v9, %v257_v23  ;;  %v273_v41 = vmul.f32 %v4392_v7, %v237_v24  ;;  %v4252_v52 = vld [vmem:[%s5593_s2 + $0xb0] sm:$0xff]   ;;  %v4253_v16 = vld [vmem:[%s5593_s2 + $0x28] sm:$0xff]  }
  0x24   : > { %396 = vst [vmem:[#allocation2 + $0x180] sm:$0xff] %v4322_v2  ;;  %397 = vst [vmem:[#allocation2 + $0x188] sm:$0xff] %v4322_v2  ;;  %v339_v40 = vmax.f32 %v4546_v35, 0.0  ;;  %v4568_v42 = vadd.f32 %v4397_v9, %v272_v28  ;;  %v540_v45 = vpack.c.bf16 %v333_v37, %v332_v34  ;;  %v258_v49 = vmul.f32 %v4392_v7, %v222_v43  ;;  %v4255_v57 = vld [vmem:[%s5593_s2 + $0x20] sm:$0xff]   ;;  %v4257_v5 = vld [vmem:[%s5593_s2 + $0x18] sm:$0xff]  }
  0x25   : > { %398 = vst [vmem:[#allocation2 + $0x190] sm:$0x3] %v4322_v2  ;;  %399 = vst [vmem:[#allocation2 + $0x198] sm:$0xff] %v4322_v2  ;;  %3797 = vmatpush3.bf16.msra.mxu0 %v4247_v55  ;;  %4230 = vmatpush3.bf16.msra.mxu1 %v4247_v55  ;;  %v324_v46 = vmax.f32 %v4559_v36, 0.0  ;;  %v325_v47 = vmax.f32 %v4562_v38, 0.0  ;;  %v259_v59 = vmul.f32 %v4392_v7, %v223_v44  ;;  %v4262_v36 = vld [vmem:[%s5593_s2 + $0x88] sm:$0xff]  }
  0x26   : > { %400 = vst [vmem:[#allocation2 + $0x1a0] sm:$0xff] %v4322_v2  ;;  %401 = vst [vmem:[#allocation2 + $0x1a8] sm:$0x3] %v4322_v2  ;;  %v321_v2 = vmax.f32 %v4477_v58, 0.0  ;;  %3798 = vmatprep.subr.bf16.mxu0 %v4487_v0  ;;  %4223 = vmatprep.subr.bf16.mxu1 %v4487_v0  ;;  %v340_v55 = vmax.f32 %v4568_v42, 0.0  ;;  %v275_v54 = vmul.f32 %v4392_v7, %v239_v51  ;;  %v4256_v58 = vld [vmem:[%s5593_s2 + $0xa0] sm:$0xff]  }
  0x27   : > { %417 = vst [vmem:[#allocation2 + $0xc1] sm:$0xff] %v330_v29  ;;  %418 = vst [vmem:[#allocation2 + $0xc9] sm:$0xff] %v331_v30  ;;  %v4538_v29 = vpack.c.bf16 %v317_v33, %v316_v32  ;;  %v4543_v30 = vadd.f32 %v4397_v9, %v270_v18  ;;  %v4627_v53 = vadd.f32 %v4397_v9, %v259_v59  ;;  %v4254_v18 = vld [vmem:[%s5593_s2 + $0xa8] sm:$0xff]  }
  0x28   : > { %403 = vst [vmem:[#allocation2 + $0x19] sm:$0xff] %v316_v32  ;;  %404 = vst [vmem:[#allocation2 + $0x21] sm:$0xff] %v317_v33  ;;  %v322_v32 = vmax.f32 %v4526_v21, 0.0  ;;  %v323_v33 = vmax.f32 %v4529_v22, 0.0  ;;  %v261_v10 = vmul.f32 %v4392_v7, %v225_v63  ;;  %v276_v12 = vmul.f32 %v4392_v7, %v240_v48  ;;  %v4259_v22 = vld [vmem:[%s5593_s2 + $0x10] sm:$0xff]  }
  0x29   : > { %419 = vst [vmem:[#allocation2 + $0xd9] sm:$0xff] %v332_v34  ;;  %420 = vst [vmem:[#allocation2 + $0xe1] sm:$0xff] %v333_v37  ;;  %v338_v39 = vmax.f32 %v4543_v30, 0.0  ;;  %3799 = vmatpush3.bf16.msra.mxu0 %v4487_v0  ;;  %4231 = vmatpush3.bf16.msra.mxu1 %v4487_v0  ;;  %v4595_v34 = vpack.c.bf16 %v319_v60, %v318_v56  ;;  %v4602_v37 = vadd.f32 %v4397_v9, %v273_v41  ;;  %v4260_v30 = vld [vmem:[%s5593_s2 + $0x90] sm:$0xff]   ;;  %v4323_v48 = vmov 0.0|0.0  }
  0x2a   : > { %405 = vst [vmem:[#allocation2 + $0x31] sm:$0xff] %v318_v56  ;;  %406 = vst [vmem:[#allocation2 + $0x39] sm:$0xff] %v319_v60  ;;  %3832 = vmatprep.subr.bf16.mxu1 %v4249_v25  ;;  %3880 = vmatprep.subr.bf16.mxu0 %v4250_v26  ;;  %v541_v56 = vpack.c.bf16 %v335_v62, %v334_v61  ;;  %v4620_v60 = vadd.f32 %v4397_v9, %v258_v49  ;;  %v327_v13 = vmax.f32 %v4627_v53, 0.0  ;;  %v983_v42 = vld [vmem:[#allocation2 + $0xa] sm:$0xff] }
  0x2b   : > { %421 = vst [vmem:[#allocation2 + $0xf1] sm:$0xff] %v334_v61  ;;  %422 = vst [vmem:[#allocation2 + $0xf9] sm:$0xff] %v335_v62  ;;  %v274_v0 = vmul.f32 %v4392_v7, %v238_v50  ;;  %v341_v4 = vmax.f32 %v4602_v37, 0.0  ;;  %v260_v61 = vmul.f32 %v4392_v7, %v224_v27  ;;  %v241_v62 = vld [vmem:[%s4382_s26 + $0xe8] sm:$0xff]  ;;  %v311_v14 = vadd.f32 %v4397_v9, %v275_v54  ;;  %v4265_v37 = vld [vmem:[%s5593_s2 + $0xf8] sm:$0xff]  }
  0x2c   : > { %407 = vst [vmem:[#allocation2 + $0x49] sm:$0xff] %v320_v1  ;;  %408 = vst [vmem:[#allocation2 + $0x51] sm:$0xff] %v321_v2  ;;  %3801 = vmatmul.mubr.bf16.vlgmr.msra.gmra.mxu0 %v4538_v29  ;;  %3817 = vmatmul.mubr.bf16.vlgmr.msra.gmra.mxu1 %v540_v45  ;;  %v326_v6 = vmax.f32 %v4620_v60, 0.0  ;;  %v297_v20 = vadd.f32 %v4397_v9, %v261_v10  ;;  %v277_v23 = vmul.f32 %v4392_v7, %v241_v62  ;;  %v4268_v10 = vld [vmem:[%s5593_s2 + $0x130] sm:$0xff]  }
  0x2d   : > { %423 = vst [vmem:[#allocation2 + $0x109] sm:$0xff] %v336_v11  ;;  %424 = vst [vmem:[#allocation2 + $0x111] sm:$0xff] %v337_v17  ;;  %v4635_v8 = vadd.f32 %v4397_v9, %v274_v0  ;;  %3833 = vmatpush3.bf16.msra.mxu1 %v4249_v25  ;;  %3881 = vmatpush3.bf16.msra.mxu0 %v4250_v26  ;;  %v4644_v15 = vadd.f32 %v4397_v9, %v260_v61  ;;  %v343_v25 = vmax.f32 %v311_v14, 0.0 }
  0x2e   : > { %409 = vst [vmem:[#allocation2 + $0x61] sm:$0xff] %v322_v32  ;;  %410 = vst [vmem:[#allocation2 + $0x69] sm:$0xff] %v323_v33  ;;  %3834 = vmatprep.subr.bf16.mxu1 %v4251_v31  ;;  %3882 = vmatprep.subr.bf16.mxu0 %v4252_v52  ;;  %v312_v24 = vadd.f32 %v4397_v9, %v276_v12  ;;  %v4661_v28 = vpack.c.bf16 %v321_v2, %v320_v1  ;;  %v329_v43 = vmax.f32 %v297_v20, 0.0 }
  0x2f   : > { %425 = vst [vmem:[#allocation2 + $0x121] sm:$0xff] %v338_v39  ;;  %426 = vst [vmem:[#allocation2 + $0x129] sm:$0xff] %v339_v40  ;;  %v342_v19 = vmax.f32 %v4635_v8, 0.0  ;;  %3804 = vmatprep.mubr.bf16.mxu0 %v4595_v34  ;;  %3820 = vmatprep.mubr.bf16.mxu1 %v541_v56  ;;  %v328_v26 = vmax.f32 %v4644_v15, 0.0  ;;  %v542_v41 = vpack.c.bf16 %v337_v17, %v336_v11  ;;  %v4258_v11 = vld [vmem:[%s5593_s2 + $0x98] sm:$0xff]   ;;  %v438_v51 = vld [vmem:[#allocation2 + $0x20] sm:$0xff] }
  0x30   : > { %411 = vst [vmem:[#allocation2 + $0x79] sm:$0xff] %v324_v46  ;;  %412 = vst [vmem:[#allocation2 + $0x81] sm:$0xff] %v325_v47  ;;  %v313_v44 = vadd.f32 %v4397_v9, %v277_v23  ;;  %v344_v45 = vmax.f32 %v312_v24, 0.0  ;;  %v4679_v2 = vpack.c.bf16 %v323_v33, %v322_v32  ;;  %v4685_v3 = vpack.c.bf16 %v339_v40, %v338_v39  ;;  %v4261_v33 = vld [vmem:[%s5593_s2 + $0x8] sm:$0xff]   ;;  %v437_v50 = vld [vmem:[#allocation2 + $0x18] sm:$0xff] }
  0x31   : > { %427 = vst [vmem:[#allocation2 + $0x139] sm:$0xff] %v340_v55  ;;  %428 = vst [vmem:[#allocation2 + $0x141] sm:$0xff] %v341_v4  ;;  %3835 = vmatpush3.bf16.msra.mxu1 %v4251_v31  ;;  %3883 = vmatpush3.bf16.msra.mxu0 %v4252_v52  ;;  %v4700_v17 = vpack.c.bf16 %v325_v47, %v324_v46  ;;  %v4706_v21 = vpack.c.bf16 %v341_v4, %v340_v55  ;;  %v982_v40 = vld [vmem:[#allocation2 + $0x2] sm:$0xff]  ;;  %v984_v27 = vld [vmem:[#allocation2 + $0x1a] sm:$0xff] }
  0x32   : > { %413 = vst [vmem:[#allocation2 + $0x91] sm:$0xff] %v326_v6  ;;  %414 = vst [vmem:[#allocation2 + $0x99] sm:$0xff] %v327_v13  ;;  %3836 = vmatprep.subr.bf16.mxu1 %v4253_v16  ;;  %3884 = vmatprep.subr.bf16.mxu0 %v4254_v18  ;;  %v345_v1 = vmax.f32 %v313_v44, 0.0  ;;  %v4714_v35 = vpack.c.bf16 %v327_v13, %v326_v6  ;;  %v4716_v32 = vpack.c.bf16 %v343_v25, %v342_v19  ;;  %v4263_v46 = vld [vmem:[%s5593_s2] sm:$0xff]   ;;  %v4266_v55 = vld [vmem:[%s5593_s2 + $0x138] sm:$0xff]  }
  0x33   : > { %429 = vst [vmem:[#allocation2 + $0x151] sm:$0xff] %v342_v19  ;;  %430 = vst [vmem:[#allocation2 + $0x159] sm:$0xff] %v343_v25  ;;  %v4728_v38 = vpack.c.bf16 %v329_v43, %v328_v26  ;;  %v4264_v47 = vld [vmem:[%s5593_s2 + $0x80] sm:$0xff]   ;;  %v1014_v49 = vpack.c.bf16 %v983_v42, %v982_v40  ;;  %v439_v59 = vld [vmem:[#allocation2 + $0x30] sm:$0xff]  ;;  %v4746_v60 = vpack.c.bf16 %v438_v51, %v437_v50 }
  0x34   : > { %415 = vst [vmem:[#allocation2 + $0xa9] sm:$0xff] %v328_v26  ;;  %416 = vst [vmem:[#allocation2 + $0xb1] sm:$0xff] %v329_v43  ;;  %3805 = vmatmul.mubr.bf16.gmra.mxu0 %v4661_v28  ;;  %3821 = vmatmul.mubr.bf16.gmra.mxu1 %v542_v41  ;;  %v4730_v39 = vpack.c.bf16 %v345_v1, %v344_v45  ;;  %v985_v31 = vld [vmem:[#allocation2 + $0x22] sm:$0xff]  ;;  %v440_v63 = vld [vmem:[#allocation2 + $0x38] sm:$0xff] }
  0x35   : > { %431 = vst [vmem:[#allocation2 + $0x169] sm:$0xff] %v344_v45  ;;  %432 = vst [vmem:[#allocation2 + $0x171] sm:$0xff] %v345_v1  ;;  %3837 = vmatpush3.bf16.msra.mxu1 %v4253_v16  ;;  %3885 = vmatpush3.bf16.msra.mxu0 %v4254_v18  ;;  %v986_v52 = vld [vmem:[#allocation2 + $0x32] sm:$0xff]  ;;  %v987_v56 = vld [vmem:[#allocation2 + $0x3a] sm:$0xff]  ;;  %v4748_v0 = vpack.c.bf16 %v985_v31, %v984_v27  ;;  %v4750_v4 = vpack.c.bf16 %v440_v63, %v439_v59 }
  0x36   : > { %3838 = vmatprep.subr.bf16.mxu1 %v4255_v57  ;;  %3886 = vmatprep.subr.bf16.mxu0 %v4256_v58  ;;  %v4752_v53 = vpack.c.bf16 %v987_v56, %v986_v52  ;;  %v441_v54 = vld [vmem:[#allocation2 + $0x48] sm:$0xff]  ;;  %v442_v61 = vld [vmem:[#allocation2 + $0x50] sm:$0xff]  ;;  %v443_v12 = vld [vmem:[#allocation2 + $0x60] sm:$0xff] }
  0x37   : > { %3808 = vmatprep.mubr.bf16.mxu0 %v4679_v2  ;;  %3824 = vmatprep.mubr.bf16.mxu1 %v4685_v3  ;;  %v988_v62 = vld [vmem:[#allocation2 + $0x4a] sm:$0xff]  ;;  %v989_v6 = vld [vmem:[#allocation2 + $0x52] sm:$0xff]  ;;  %v990_v14 = vld [vmem:[#allocation2 + $0x62] sm:$0xff]  ;;  %v4770_v19 = vpack.c.bf16 %v442_v61, %v441_v54 }
  0x38   : > { %v4267_v8 = vld [vmem:[%s5593_s2 + $0xf0] sm:$0xff]   ;;  %v444_v13 = vld [vmem:[#allocation2 + $0x68] sm:$0xff]  ;;  %v4772_v20 = vpack.c.bf16 %v989_v6, %v988_v62  ;;  %v4271_v25 = vld [vmem:[%s5593_s2 + $0xe0] sm:$0xff]  }
  0x39   : > { %3839 = vmatpush3.bf16.msra.mxu1 %v4255_v57  ;;  %3887 = vmatpush3.bf16.msra.mxu0 %v4256_v58  ;;  %v991_v15 = vld [vmem:[#allocation2 + $0x6a] sm:$0xff]  ;;  %v4774_v23 = vpack.c.bf16 %v444_v13, %v443_v12  ;;  %v445_v26 = vld [vmem:[#allocation2 + $0x78] sm:$0xff]  ;;  %v446_v41 = vld [vmem:[#allocation2 + $0x80] sm:$0xff] }
  0x3a   : > { %3840 = vmatprep.subr.bf16.mxu1 %v4257_v5  ;;  %3888 = vmatprep.subr.bf16.mxu0 %v4258_v11  ;;  %v4269_v16 = vld [vmem:[%s5593_s2 + $0xe8] sm:$0xff]   ;;  %v4776_v24 = vpack.c.bf16 %v991_v15, %v990_v14  ;;  %v992_v43 = vld [vmem:[#allocation2 + $0x7a] sm:$0xff]  ;;  %v447_v57 = vld [vmem:[#allocation2 + $0x90] sm:$0xff] }
  0x3b   : > { %v4270_v18 = vld [vmem:[%s5593_s2 + $0x128] sm:$0xff]   ;;  %v4272_v45 = vld [vmem:[%s5593_s2 + $0x120] sm:$0xff]   ;;  %v448_v58 = vld [vmem:[#allocation2 + $0x98] sm:$0xff] }
  0x3c   : > { %3809 = vmatmul.mubr.bf16.gmra.mxu0 %v4700_v17  ;;  %3825 = vmatmul.mubr.bf16.gmra.mxu1 %v4706_v21  ;;  %v993_v44 = vld [vmem:[#allocation2 + $0x82] sm:$0xff]  ;;  %v994_v1 = vld [vmem:[#allocation2 + $0x92] sm:$0xff] }
  0x3d   : > { %3841 = vmatpush3.bf16.msra.mxu1 %v4257_v5  ;;  %3889 = vmatpush3.bf16.msra.mxu0 %v4258_v11  ;;  %v995_v5 = vld [vmem:[#allocation2 + $0x9a] sm:$0xff]  ;;  %v449_v42 = vld [vmem:[#allocation2 + $0xa8] sm:$0xff]  ;;  %v4276_v50 = vld [vmem:[%s5593_s2 + $0x110] sm:$0xff]  }
  0x3e   : > { %3842 = vmatprep.subr.bf16.mxu1 %v4259_v22  ;;  %3890 = vmatprep.subr.bf16.mxu0 %v4260_v30  ;;  %v4273_v11 = vld [vmem:[%s5593_s2 + $0xd8] sm:$0xff]   ;;  %v4800_v40 = vpack.c.bf16 %v995_v5, %v994_v1  ;;  %v451_v27 = vld [vmem:[#allocation2 + $0xc0] sm:$0xff]  ;;  %v452_v31 = vld [vmem:[#allocation2 + $0xc8] sm:$0xff] }
  0x3f   : > { %3812 = vmatprep.mubr.bf16.mxu0 %v4714_v35  ;;  %3828 = vmatprep.mubr.bf16.mxu1 %v4716_v32  ;;  %v997_v51 = vld [vmem:[#allocation2 + $0xb2] sm:$0xff]  ;;  %v4277_v59 = vld [vmem:[%s5593_s2 + $0xc8] sm:$0xff]   ;;  %v4822_v56 = vpack.c.bf16 %v452_v31, %v451_v27  ;;  %v4279_v61 = vld [vmem:[%s5593_s2 + $0xc0] sm:$0xff]  }
  0x40   : > { %v4278_v63 = vld [vmem:[%s5593_s2 + $0x108] sm:$0xff]   ;;  %v453_v62 = vld [vmem:[#allocation2 + $0xd8] sm:$0xff]  ;;  %v454_v6 = vld [vmem:[#allocation2 + $0xe0] sm:$0xff] }
  0x41   : > { %3843 = vmatpush3.bf16.msra.mxu1 %v4259_v22  ;;  %3891 = vmatpush3.bf16.msra.mxu0 %v4260_v30  ;;  %v4274_v22 = vld [vmem:[%s5593_s2 + $0x118] sm:$0xff]   ;;  %v4794_v30 = vpack.c.bf16 %v446_v41, %v445_v26  ;;  %v4280_v12 = vld [vmem:[%s5593_s2 + $0x100] sm:$0xff]   ;;  %v242_v13 = vld [vmem:[%s4382_s26 + $0xf0] sm:$0xff] }
  0x42   : > { %3844 = vmatprep.subr.bf16.mxu1 %v4261_v33  ;;  %3892 = vmatprep.subr.bf16.mxu0 %v4262_v36  ;;  %v455_v14 = vld [vmem:[#allocation2 + $0xf0] sm:$0xff]  ;;  %v456_v15 = vld [vmem:[#allocation2 + $0xf8] sm:$0xff]  ;;  %v1006_v27 = vld [vmem:[#allocation2 + $0x122] sm:$0xff] }
  0x43   : > { %v1003_v26 = vld [vmem:[#allocation2 + $0xfa] sm:$0xff]  ;;  %v4856_v5 = vpack.c.bf16 %v456_v15, %v455_v14  ;;  %v1007_v31 = vld [vmem:[#allocation2 + $0x12a] sm:$0xff] }
  0x44   : > { %3813 = vmatmul.mubr.bf16.gmra.mxu0 %v4728_v38  ;;  %3829 = vmatmul.mubr.bf16.gmra.mxu1 %v4730_v39  ;;  %v1011_v14 = vld [vmem:[#allocation2 + $0x15a] sm:$0xff] }
  0x45   : > { %3845 = vmatpush3.bf16.msra.mxu1 %v4261_v33  ;;  %3893 = vmatpush3.bf16.msra.mxu0 %v4262_v36  ;;  %v4796_v33 = vpack.c.bf16 %v993_v44, %v992_v43  ;;  %v4798_v36 = vpack.c.bf16 %v448_v58, %v447_v57  ;;  %v4843_v43 = vld [vmem:[%s5593_s2 + $0x178] sm:$0xff]   ;;  %v4852_v58 = vpack.c.bf16 %v454_v6, %v453_v62  ;;  %v462_v62 = vld [vmem:[#allocation2 + $0x140] sm:$0xff] }
  0x46   : > { %3846 = vmatprep.subr.bf16.mxu1 %v4263_v46  ;;  %3894 = vmatprep.subr.bf16.mxu0 %v4264_v47  ;;  %v1008_v6 = vld [vmem:[#allocation2 + $0x13a] sm:$0xff] }
  0x47   : > { %3848 = vmatprep.mubr.bf16.mxu1 %v4323_v48  ;;  %3896 = vmatprep.mubr.bf16.mxu0 %v1014_v49  ;;  %v4275_v49 = vld [vmem:[%s5593_s2 + $0xd0] sm:$0xff]  }
  0x49   : > { %3847 = vmatpush3.bf16.msra.mxu1 %v4263_v46  ;;  %3895 = vmatpush3.bf16.msra.mxu0 %v4264_v47  ;;  %v450_v46 = vld [vmem:[#allocation2 + $0xb0] sm:$0xff] }
  0x4a   : > { %3928 = vmatprep.subr.bf16.mxu1 %v4265_v37  ;;  %3976 = vmatprep.subr.bf16.mxu0 %v4266_v55  ;;  %v996_v47 = vld [vmem:[#allocation2 + $0xaa] sm:$0xff]  ;;  %v4818_v48 = vpack.c.bf16 %v450_v46, %v449_v42 }
  0x4b   : > { %v4820_v52 = vpack.c.bf16 %v997_v51, %v996_v47  ;;  %v457_v42 = vld [vmem:[#allocation2 + $0x108] sm:$0xff]  ;;  %v458_v46 = vld [vmem:[#allocation2 + $0x110] sm:$0xff] }
  0x4c   : > { %3849 = vmatmul.mubr.bf16.vlgmr.msra.gmra.mxu1 %v4746_v60  ;;  %3897 = vmatmul.mubr.bf16.vlgmr.msra.gmra.mxu0 %v4748_v0  ;;  %v1004_v47 = vld [vmem:[#allocation2 + $0x10a] sm:$0xff] }
  0x4d   : > { %3929 = vmatpush3.bf16.msra.mxu1 %v4265_v37  ;;  %3977 = vmatpush3.bf16.msra.mxu0 %v4266_v55  ;;  %v998_v37 = vld [vmem:[#allocation2 + $0xc2] sm:$0xff]  ;;  %v999_v55 = vld [vmem:[#allocation2 + $0xca] sm:$0xff] }
  0x4e   : > { %3852 = vmatprep.mubr.bf16.mxu1 %v4750_v4  ;;  %3900 = vmatprep.mubr.bf16.mxu0 %v4752_v53  ;;  %v4824_v54 = vpack.c.bf16 %v999_v55, %v998_v37  ;;  %v460_v51 = vld [vmem:[#allocation2 + $0x128] sm:$0xff]  ;;  %v4868_v37 = vpack.c.bf16 %v458_v46, %v457_v42  ;;  %v4283_v42 = vld [vmem:[%s5593_s2 + $0x170] sm:$0xff]  }
  0x4f   : > { %3930 = vmatprep.subr.bf16.mxu1 %v4267_v8  ;;  %3978 = vmatprep.subr.bf16.mxu0 %v4268_v10  ;;  %v4284_v46 = vld [vmem:[%s5593_s2 + $0x1b0] sm:$0xff]  }
  0x51   : > { %3931 = vmatpush3.bf16.msra.mxu1 %v4267_v8  ;;  %3979 = vmatpush3.bf16.msra.mxu0 %v4268_v10  ;;  %v1000_v8 = vld [vmem:[#allocation2 + $0xda] sm:$0xff]  ;;  %v1001_v10 = vld [vmem:[#allocation2 + $0xe2] sm:$0xff] }
  0x52   : > { %3932 = vmatprep.subr.bf16.mxu1 %v4269_v16  ;;  %3980 = vmatprep.subr.bf16.mxu0 %v4270_v18 }
  0x54   : > { %3853 = vmatmul.mubr.bf16.gmra.mxu1 %v4770_v19  ;;  %3901 = vmatmul.mubr.bf16.gmra.mxu0 %v4772_v20 }
  0x55   : > { %3856 = vmatprep.mubr.bf16.mxu1 %v4774_v23  ;;  %3904 = vmatprep.mubr.bf16.mxu0 %v4776_v24 }
  0x56   : > { %3933 = vmatpush3.bf16.msra.mxu1 %v4269_v16  ;;  %3981 = vmatpush3.bf16.msra.mxu0 %v4270_v18  ;;  %v1002_v16 = vld [vmem:[#allocation2 + $0xf2] sm:$0xff] }
  0x57   : > { %3934 = vmatprep.subr.bf16.mxu1 %v4271_v25  ;;  %3982 = vmatprep.subr.bf16.mxu0 %v4272_v45  ;;  %v243_v18 = vld [vmem:[%s4382_s26 + $0xf8] sm:$0xff] }
  0x58   : > { %v279_v41 = vmul.f32 %v4392_v7, %v243_v18 }
  0x5a   : > { %3935 = vmatpush3.bf16.msra.mxu1 %v4271_v25  ;;  %3983 = vmatpush3.bf16.msra.mxu0 %v4272_v45  ;;  %v278_v25 = vmul.f32 %v4392_v7, %v242_v13  ;;  %v4849_v45 = vld [vmem:[%s5593_s2 + $0x1b8] sm:$0xff]   ;;  %v315_v57 = vadd.f32 %v4397_v9, %v279_v41  ;;  %v4854_v7 = vpack.c.bf16 %v1001_v10, %v1000_v8  ;;  %v1009_v8 = vld [vmem:[#allocation2 + $0x142] sm:$0xff]  ;;  %v463_v10 = vld [vmem:[#allocation2 + $0x150] sm:$0xff] }
  0x5b   : > { %3936 = vmatprep.subr.bf16.mxu1 %v4273_v11  ;;  %3984 = vmatprep.subr.bf16.mxu0 %v4274_v22  ;;  %v1010_v13 = vld [vmem:[#allocation2 + $0x152] sm:$0xff] }
  0x5c   : > { %3857 = vmatmul.mubr.bf16.gmra.mxu1 %v4794_v30  ;;  %3905 = vmatmul.mubr.bf16.gmra.mxu0 %v4796_v33  ;;  %v314_v44 = vadd.f32 %v4397_v9, %v278_v25  ;;  %v4886_v25 = vpack.c.bf16 %v1011_v14, %v1010_v13  ;;  %v466_v41 = vld [vmem:[#allocation2 + $0x170] sm:$0xff]  ;;  %v4297_v13 = vld [vmem:[%s5593_s2 + $0x1f8] sm:$0xff]  }
  0x5d   : > { %3860 = vmatprep.mubr.bf16.mxu1 %v4798_v36  ;;  %3908 = vmatprep.mubr.bf16.mxu0 %v4800_v40  ;;  %v4298_v14 = vld [vmem:[%s5593_s2 + $0x238] sm:$0xff]  }
  0x5e   : > { %3937 = vmatpush3.bf16.msra.mxu1 %v4273_v11  ;;  %3985 = vmatpush3.bf16.msra.mxu0 %v4274_v22  ;;  %v346_v1 = vmax.f32 %v314_v44, 0.0  ;;  %v4858_v11 = vpack.c.bf16 %v1003_v26, %v1002_v16  ;;  %v347_v22 = vmax.f32 %v315_v57, 0.0  ;;  %v4882_v16 = vpack.c.bf16 %v1009_v8, %v1008_v6  ;;  %v465_v26 = vld [vmem:[#allocation2 + $0x168] sm:$0xff]  ;;  %v1013_v57 = vld [vmem:[#allocation2 + $0x172] sm:$0xff] }
  0x5f   : > { %3938 = vmatprep.subr.bf16.mxu1 %v4275_v49  ;;  %3986 = vmatprep.subr.bf16.mxu0 %v4276_v50  ;;  %v1012_v44 = vld [vmem:[#allocation2 + $0x16a] sm:$0xff]  ;;  %v1613_v8 = vld [vmem:[#allocation2 + $0xf9] sm:$0xff] }
  0x60   : > { %433 = vst [vmem:[#allocation2 + $0x181] sm:$0xff] %v346_v1  ;;  %434 = vst [vmem:[#allocation2 + $0x189] sm:$0xff] %v347_v22  ;;  %v4862_v9 = vpack.c.bf16 %v347_v22, %v346_v1  ;;  %v4892_v1 = vpack.c.bf16 %v466_v41, %v465_v26  ;;  %v4894_v22 = vpack.c.bf16 %v1013_v57, %v1012_v44  ;;  %v1612_v6 = vld [vmem:[#allocation2 + $0xf1] sm:$0xff] }
  0x61   : > { %v4970_v26 = vpack.c.bf16 %v1613_v8, %v1612_v6  ;;  %v2515_v8 = vld [vmem:[#allocation2 + $0x49] sm:$0xff] }
  0x62   : > { %3939 = vmatpush3.bf16.msra.mxu1 %v4275_v49  ;;  %3987 = vmatpush3.bf16.msra.mxu0 %v4276_v50  ;;  %v1005_v49 = vld [vmem:[#allocation2 + $0x112] sm:$0xff]  ;;  %v459_v50 = vld [vmem:[#allocation2 + $0x120] sm:$0xff] }
  0x63   : > { %3940 = vmatprep.subr.bf16.mxu1 %v4277_v59  ;;  %3988 = vmatprep.subr.bf16.mxu0 %v4278_v63  ;;  %v4870_v55 = vpack.c.bf16 %v1005_v49, %v1004_v47  ;;  %v1608_v47 = vld [vmem:[#allocation2 + $0xc1] sm:$0xff]  ;;  %v1609_v49 = vld [vmem:[#allocation2 + $0xc9] sm:$0xff] }
  0x64   : > { %3861 = vmatmul.mubr.bf16.gmra.mxu1 %v4818_v48  ;;  %3909 = vmatmul.mubr.bf16.gmra.mxu0 %v4820_v52 }
  0x65   : > { %3864 = vmatprep.mubr.bf16.mxu1 %v4822_v56  ;;  %3912 = vmatprep.mubr.bf16.mxu0 %v4824_v54 }
  0x66   : > { %3941 = vmatpush3.bf16.msra.mxu1 %v4277_v59  ;;  %3989 = vmatpush3.bf16.msra.mxu0 %v4278_v63  ;;  %v4872_v59 = vpack.c.bf16 %v460_v51, %v459_v50  ;;  %v4874_v63 = vpack.c.bf16 %v1007_v31, %v1006_v27  ;;  %v1610_v50 = vld [vmem:[#allocation2 + $0xd9] sm:$0xff]  ;;  %v1611_v51 = vld [vmem:[#allocation2 + $0xe1] sm:$0xff]  ;;  %v4950_v31 = vpack.c.bf16 %v1609_v49, %v1608_v47 }
  0x67   : > { %3942 = vmatprep.subr.bf16.mxu1 %v4279_v61  ;;  %3990 = vmatprep.subr.bf16.mxu0 %v4280_v12  ;;  %v4293_v27 = vld [vmem:[%s5593_s2 + $0x148] sm:$0xff]   ;;  %v1318_v44 = vld [vmem:[#allocation2 + $0x180] sm:$0xff] }
  0x68   : > { %v1319_v57 = vld [vmem:[#allocation2 + $0x188] sm:$0xff]  ;;  %v2820_v47 = vld [vmem:[#allocation2 + $0x3a] sm:$0xff] }
  0x6a   : > { %3943 = vmatpush3.bf16.msra.mxu1 %v4279_v61  ;;  %3991 = vmatpush3.bf16.msra.mxu0 %v4280_v12  ;;  %v461_v61 = vld [vmem:[#allocation2 + $0x138] sm:$0xff] }
  0x6b   : > { %4024 = vmatprep.subr.bf16.mxu1 %v4843_v43  ;;  %4072 = vmatprep.subr.bf16.mxu0 %v4849_v45  ;;  %v464_v12 = vld [vmem:[#allocation2 + $0x158] sm:$0xff]  ;;  %v4880_v15 = vpack.c.bf16 %v462_v62, %v461_v61  ;;  %v4952_v61 = vpack.c.bf16 %v1611_v51, %v1610_v50  ;;  %v4296_v62 = vld [vmem:[%s5593_s2 + $0x180] sm:$0xff]  }
  0x6c   : > { %3865 = vmatmul.mubr.bf16.gmra.mxu1 %v4852_v58  ;;  %3913 = vmatmul.mubr.bf16.gmra.mxu0 %v4854_v7  ;;  %v4884_v18 = vpack.c.bf16 %v464_v12, %v463_v10  ;;  %v1614_v10 = vld [vmem:[#allocation2 + $0x109] sm:$0xff]  ;;  %v1615_v12 = vld [vmem:[#allocation2 + $0x111] sm:$0xff] }
  0x6d   : > { %3868 = vmatprep.mubr.bf16.mxu1 %v4856_v5  ;;  %3916 = vmatprep.mubr.bf16.mxu0 %v4858_v11  ;;  %v4972_v41 = vpack.c.bf16 %v1615_v12, %v1614_v10  ;;  %v2516_v10 = vld [vmem:[#allocation2 + $0x51] sm:$0xff] }
  0x6e   : > { %v2821_v12 = vld [vmem:[#allocation2 + $0x4a] sm:$0xff] }
  0x74   : > { %3869 = vmatmul.mubr.bf16.gmra.mxu1 %v4868_v37  ;;  %3917 = vmatmul.mubr.bf16.gmra.mxu0 %v4870_v55 }
  0x75   : > { %3872 = vmatprep.mubr.bf16.mxu1 %v4872_v59  ;;  %3920 = vmatprep.mubr.bf16.mxu0 %v4874_v63 }
  0x7c   : > { %3873 = vmatmul.mubr.bf16.gmra.mxu1 %v4880_v15  ;;  %3921 = vmatmul.mubr.bf16.gmra.mxu0 %v4882_v16 }
  0x7d   : > { %3876 = vmatprep.mubr.bf16.mxu1 %v4884_v18  ;;  %3924 = vmatprep.mubr.bf16.mxu0 %v4886_v25 }
  0x84   : > { %3877 = vmatmul.mubr.bf16.gmra.mxu1 %v4892_v1  ;;  %3925 = vmatmul.mubr.bf16.gmra.mxu0 %v4894_v22 }
  0x85   : > { %3944 = vmatprep.mubr.bf16.mxu1 %v4746_v60  ;;  %3992 = vmatprep.mubr.bf16.mxu0 %v4538_v29  ;;  %v4285_v29 = vld [vmem:[%s5593_s2 + $0x168] sm:$0xff]  }
  0x86   : > { %v4286_v60 = vld [vmem:[%s5593_s2 + $0x1a8] sm:$0xff]  }
  0x8c   : > { %3945 = vmatmul.mubr.bf16.vlgmr.msra.gmra.mxu1 %v4750_v4  ;;  %3993 = vmatmul.mubr.bf16.vlgmr.msra.gmra.mxu0 %v4595_v34  ;;  %v4287_v34 = vld [vmem:[%s5593_s2 + $0x160] sm:$0xff]  }
  0x8d   : > { %4025 = vmatpush3.bf16.msra.mxu1 %v4843_v43  ;;  %4073 = vmatpush3.bf16.msra.mxu0 %v4849_v45  ;;  %v4289_v43 = vld [vmem:[%s5593_s2 + $0x158] sm:$0xff]  }
  0x8e   : > { %3948 = vmatprep.mubr.bf16.mxu1 %v4770_v19  ;;  %3996 = vmatprep.mubr.bf16.mxu0 %v4661_v28  ;;  %v4288_v28 = vld [vmem:[%s5593_s2 + $0x1a0] sm:$0xff]   ;;  %v4290_v45 = vld [vmem:[%s5593_s2 + $0x198] sm:$0xff]  }
  0x8f   : > { %4026 = vmatprep.subr.bf16.mxu1 %v4283_v42  ;;  %4074 = vmatprep.subr.bf16.mxu0 %v4284_v46 }
  0x91   : > { %4027 = vmatpush3.bf16.msra.mxu1 %v4283_v42  ;;  %4075 = vmatpush3.bf16.msra.mxu0 %v4284_v46  ;;  %v4986_v42 = vpack.c.bf16 %v1319_v57, %v1318_v44 }
  0x92   : > { %4028 = vmatprep.subr.bf16.mxu1 %v4285_v29  ;;  %4076 = vmatprep.subr.bf16.mxu0 %v4286_v60 }
  0x94   : > { %3949 = vmatmul.mubr.bf16.gmra.mxu1 %v4774_v23  ;;  %3997 = vmatmul.mubr.bf16.gmra.mxu0 %v4679_v2  ;;  %v4291_v2 = vld [vmem:[%s5593_s2 + $0x150] sm:$0xff]  }
  0x95   : > { %3952 = vmatprep.mubr.bf16.mxu1 %v4794_v30  ;;  %4000 = vmatprep.mubr.bf16.mxu0 %v4700_v17  ;;  %v4292_v17 = vld [vmem:[%s5593_s2 + $0x190] sm:$0xff]  }
  0x96   : > { %4029 = vmatpush3.bf16.msra.mxu1 %v4285_v29  ;;  %4077 = vmatpush3.bf16.msra.mxu0 %v4286_v60 }
  0x97   : > { %4030 = vmatprep.subr.bf16.mxu1 %v4287_v34  ;;  %4078 = vmatprep.subr.bf16.mxu0 %v4288_v28 }
  0x9a   : > { %4031 = vmatpush3.bf16.msra.mxu1 %v4287_v34  ;;  %4079 = vmatpush3.bf16.msra.mxu0 %v4288_v28 }
  0x9b   : > { %4032 = vmatprep.subr.bf16.mxu1 %v4289_v43  ;;  %4080 = vmatprep.subr.bf16.mxu0 %v4290_v45 }
  0x9c   : > { %3953 = vmatmul.mubr.bf16.gmra.mxu1 %v4798_v36  ;;  %4001 = vmatmul.mubr.bf16.gmra.mxu0 %v4714_v35  ;;  %v4294_v35 = vld [vmem:[%s5593_s2 + $0x188] sm:$0xff]  }
  0x9d   : > { %3956 = vmatprep.mubr.bf16.mxu1 %v4818_v48  ;;  %4004 = vmatprep.mubr.bf16.mxu0 %v4728_v38  ;;  %v4295_v38 = vld [vmem:[%s5593_s2 + $0x140] sm:$0xff]  }
  0x9e   : > { %4033 = vmatpush3.bf16.msra.mxu1 %v4289_v43  ;;  %4081 = vmatpush3.bf16.msra.mxu0 %v4290_v45 }
  0x9f   : > { %4034 = vmatprep.subr.bf16.mxu1 %v4291_v2  ;;  %4082 = vmatprep.subr.bf16.mxu0 %v4292_v17 }
  0xa2   : > { %4035 = vmatpush3.bf16.msra.mxu1 %v4291_v2  ;;  %4083 = vmatpush3.bf16.msra.mxu0 %v4292_v17  ;;  %v2514_v2 = vld [vmem:[#allocation2 + $0x39] sm:$0xff] }
  0xa3   : > { %4036 = vmatprep.subr.bf16.mxu1 %v4293_v27  ;;  %4084 = vmatprep.subr.bf16.mxu0 %v4294_v35  ;;  %v2819_v17 = vld [vmem:[#allocation2 + $0x32] sm:$0xff] }
  0xa4   : > { %3957 = vmatmul.mubr.bf16.gmra.mxu1 %v4822_v56  ;;  %4005 = vmatmul.mubr.bf16.gmra.mxu0 %v4950_v31 }
  0xa5   : > { %3960 = vmatprep.mubr.bf16.mxu1 %v4852_v58  ;;  %4008 = vmatprep.mubr.bf16.mxu0 %v4952_v61 }
  0xa6   : > { %4037 = vmatpush3.bf16.msra.mxu1 %v4293_v27  ;;  %4085 = vmatpush3.bf16.msra.mxu0 %v4294_v35  ;;  %v2851_v27 = vpack.c.bf16 %v2820_v47, %v2819_v17 }
  0xa7   : > { %4038 = vmatprep.subr.bf16.mxu1 %v4295_v38  ;;  %4086 = vmatprep.subr.bf16.mxu0 %v4296_v62 }
  0xaa   : > { %4039 = vmatpush3.bf16.msra.mxu1 %v4295_v38  ;;  %4087 = vmatpush3.bf16.msra.mxu0 %v4296_v62 }
  0xab   : > { %4120 = vmatprep.subr.bf16.mxu1 %v4297_v13  ;;  %4168 = vmatprep.subr.bf16.mxu0 %v4298_v14 }
  0xac   : > { %3961 = vmatmul.mubr.bf16.gmra.mxu1 %v4856_v5  ;;  %4009 = vmatmul.mubr.bf16.gmra.mxu0 %v4970_v26 }
  0xad   : > { %3964 = vmatprep.mubr.bf16.mxu1 %v4868_v37  ;;  %4012 = vmatprep.mubr.bf16.mxu0 %v4972_v41 }
  0xb4   : > { %3965 = vmatmul.mubr.bf16.gmra.mxu1 %v4872_v59  ;;  %4013 = vmatmul.mubr.bf16.gmra.mxu0 %v4685_v3  ;;  %v4299_v3 = vld [vmem:[%s5593_s2 + $0x1f0] sm:$0xff]  }
  0xb5   : > { %3968 = vmatprep.mubr.bf16.mxu1 %v4880_v15  ;;  %4016 = vmatprep.mubr.bf16.mxu0 %v4706_v21  ;;  %v4300_v21 = vld [vmem:[%s5593_s2 + $0x230] sm:$0xff]  }
  0xbc   : > { %3969 = vmatmul.mubr.bf16.gmra.mxu1 %v4884_v18  ;;  %4017 = vmatmul.mubr.bf16.gmra.mxu0 %v4716_v32  ;;  %v4301_v32 = vld [vmem:[%s5593_s2 + $0x1e8] sm:$0xff]  }
  0xbd   : > { %3972 = vmatprep.mubr.bf16.mxu1 %v4892_v1  ;;  %4020 = vmatprep.mubr.bf16.mxu0 %v4730_v39  ;;  %v4302_v39 = vld [vmem:[%s5593_s2 + $0x228] sm:$0xff]  }
  0xc4   : > { %3973 = vmatmul.mubr.bf16.gmra.mxu1 %v4986_v42  ;;  %4021 = vmatmul.mubr.bf16.gmra.mxu0 %v4862_v9 }
  0xc5   : > { %4040 = vmatprep.mubr.bf16.mxu1 %v4748_v0  ;;  %4088 = vmatprep.mubr.bf16.mxu0 %v4750_v4  ;;  %v4303_v0 = vld [vmem:[%s5593_s2 + $0x1e0] sm:$0xff]  }
  0xc6   : > { %v4304_v4 = vld [vmem:[%s5593_s2 + $0x220] sm:$0xff]  }
  0xcc   : > { %4041 = vmatmul.mubr.bf16.vlgmr.msra.gmra.mxu1 %v4752_v53  ;;  %4089 = vmatmul.mubr.bf16.vlgmr.msra.gmra.mxu0 %v4770_v19  ;;  %v4305_v53 = vld [vmem:[%s5593_s2 + $0x1d8] sm:$0xff]  }
  0xcd   : > { %4121 = vmatpush3.bf16.msra.mxu1 %v4297_v13  ;;  %4169 = vmatpush3.bf16.msra.mxu0 %v4298_v14  ;;  %v4306_v19 = vld [vmem:[%s5593_s2 + $0x218] sm:$0xff]   ;;  %v2517_v14 = vld [vmem:[#allocation2 + $0x61] sm:$0xff] }
  0xce   : > { %4044 = vmatprep.mubr.bf16.mxu1 %v4772_v20  ;;  %4092 = vmatprep.mubr.bf16.mxu0 %v4774_v23  ;;  %v4307_v20 = vld [vmem:[%s5593_s2 + $0x1d0] sm:$0xff]  }
  0xcf   : > { %4122 = vmatprep.subr.bf16.mxu1 %v4299_v3  ;;  %4170 = vmatprep.subr.bf16.mxu0 %v4300_v21  ;;  %v4308_v23 = vld [vmem:[%s5593_s2 + $0x210] sm:$0xff]  }
  0xd0   : > { %v2822_v13 = vld [vmem:[#allocation2 + $0x52] sm:$0xff] }
  0xd1   : > { %4123 = vmatpush3.bf16.msra.mxu1 %v4299_v3  ;;  %4171 = vmatpush3.bf16.msra.mxu0 %v4300_v21  ;;  %v2823_v3 = vld [vmem:[#allocation2 + $0x62] sm:$0xff]  ;;  %v2824_v21 = vld [vmem:[#allocation2 + $0x6a] sm:$0xff] }
  0xd2   : > { %4124 = vmatprep.subr.bf16.mxu1 %v4301_v32  ;;  %4172 = vmatprep.subr.bf16.mxu0 %v4302_v39 }
  0xd4   : > { %4045 = vmatmul.mubr.bf16.gmra.mxu1 %v4776_v24  ;;  %4093 = vmatmul.mubr.bf16.gmra.mxu0 %v4794_v30  ;;  %v4309_v24 = vld [vmem:[%s5593_s2 + $0x1c8] sm:$0xff]  }
  0xd5   : > { %4048 = vmatprep.mubr.bf16.mxu1 %v4796_v33  ;;  %4096 = vmatprep.mubr.bf16.mxu0 %v4798_v36  ;;  %v4310_v30 = vld [vmem:[%s5593_s2 + $0x208] sm:$0xff]   ;;  %v4311_v33 = vld [vmem:[%s5593_s2 + $0x1c0] sm:$0xff]  }
  0xd6   : > { %4125 = vmatpush3.bf16.msra.mxu1 %v4301_v32  ;;  %4173 = vmatpush3.bf16.msra.mxu0 %v4302_v39  ;;  %v4312_v36 = vld [vmem:[%s5593_s2 + $0x200] sm:$0xff]  }
  0xd7   : > { %4126 = vmatprep.subr.bf16.mxu1 %v4303_v0  ;;  %4174 = vmatprep.subr.bf16.mxu0 %v4304_v4 }
  0xda   : > { %4127 = vmatpush3.bf16.msra.mxu1 %v4303_v0  ;;  %4175 = vmatpush3.bf16.msra.mxu0 %v4304_v4  ;;  %v2546_v0 = vpack.c.bf16 %v2516_v10, %v2515_v8  ;;  %v2852_v4 = vpack.c.bf16 %v2822_v13, %v2821_v12 }
  0xdb   : > { %4128 = vmatprep.subr.bf16.mxu1 %v4305_v53  ;;  %4176 = vmatprep.subr.bf16.mxu0 %v4306_v19 }
  0xdc   : > { %4049 = vmatmul.mubr.bf16.gmra.mxu1 %v4800_v40  ;;  %4097 = vmatmul.mubr.bf16.gmra.mxu0 %v4818_v48 }
  0xdd   : > { %4052 = vmatprep.mubr.bf16.mxu1 %v4820_v52  ;;  %4100 = vmatprep.mubr.bf16.mxu0 %v4822_v56 }
  0xde   : > { %4129 = vmatpush3.bf16.msra.mxu1 %v4305_v53  ;;  %4177 = vmatpush3.bf16.msra.mxu0 %v4306_v19  ;;  %v2853_v19 = vpack.c.bf16 %v2824_v21, %v2823_v3 }
  0xdf   : > { %4130 = vmatprep.subr.bf16.mxu1 %v4307_v20  ;;  %4178 = vmatprep.subr.bf16.mxu0 %v4308_v23 }
  0xe2   : > { %4131 = vmatpush3.bf16.msra.mxu1 %v4307_v20  ;;  %4179 = vmatpush3.bf16.msra.mxu0 %v4308_v23 }
  0xe3   : > { %4132 = vmatprep.subr.bf16.mxu1 %v4309_v24  ;;  %4180 = vmatprep.subr.bf16.mxu0 %v4310_v30 }
  0xe4   : > { %4053 = vmatmul.mubr.bf16.gmra.mxu1 %v4824_v54  ;;  %4101 = vmatmul.mubr.bf16.gmra.mxu0 %v4852_v58 }
  0xe5   : > { %4056 = vmatprep.mubr.bf16.mxu1 %v4854_v7  ;;  %4104 = vmatprep.mubr.bf16.mxu0 %v4856_v5 }
  0xe6   : > { %4133 = vmatpush3.bf16.msra.mxu1 %v4309_v24  ;;  %4181 = vmatpush3.bf16.msra.mxu0 %v4310_v30 }
  0xe7   : > { %4134 = vmatprep.subr.bf16.mxu1 %v4311_v33  ;;  %4182 = vmatprep.subr.bf16.mxu0 %v4312_v36 }
  0xea   : > { %4135 = vmatpush3.bf16.msra.mxu1 %v4311_v33  ;;  %4183 = vmatpush3.bf16.msra.mxu0 %v4312_v36  ;;  %v2519_v33 = vld [vmem:[#allocation2 + $0x79] sm:$0xff]  ;;  %v2520_v36 = vld [vmem:[#allocation2 + $0x81] sm:$0xff] }
  0xeb   : > { %v2548_v13 = vpack.c.bf16 %v2520_v36, %v2519_v33  ;;  %v2829_v36 = vld [vmem:[#allocation2 + $0xaa] sm:$0xff] }
  0xec   : > { %v5050_v40 = vpop.f32.mrf.mxu0  ;;  %v5052_v48 = vpop.f32.mrf.mxu1  ;;  %4057 = vmatmul.mubr.bf16.gmra.mxu1 %v4858_v11  ;;  %4105 = vmatmul.mubr.bf16.gmra.mxu0 %v4868_v37 }
  0xed   : > { %4060 = vmatprep.mubr.bf16.mxu1 %v4870_v55  ;;  %4108 = vmatprep.mubr.bf16.mxu0 %v4872_v59 }
  0xee   : > { %v5058_v52 = vpop.f32.mrf.mxu0  ;;  %v5060_v56 = vpop.f32.mrf.mxu1 }
  0xf0   : > { %v5062_v54 = vpop.f32.mrf.mxu0  ;;  %v5064_v58 = vpop.f32.mrf.mxu1 }
  0xf2   : > { %v5066_v7 = vpop.f32.mrf.mxu0  ;;  %v5068_v5 = vpop.f32.mrf.mxu1 }
  0xf4   : > { %v5070_v46 = vpop.f32.mrf.mxu0  ;;  %v5072_v11 = vpop.f32.mrf.mxu1  ;;  %4061 = vmatmul.mubr.bf16.gmra.mxu1 %v4874_v63  ;;  %4109 = vmatmul.mubr.bf16.gmra.mxu0 %v4880_v15  ;;  %v1930_v15 = vld [vmem:[#allocation2 + $0x182] sm:$0xff] }
  0xf5   : > { %4064 = vmatprep.mubr.bf16.mxu1 %v4882_v16  ;;  %4112 = vmatprep.mubr.bf16.mxu0 %v4884_v18  ;;  %v1931_v16 = vld [vmem:[#allocation2 + $0x18a] sm:$0xff] }
  0xf6   : > { %v5078_v37 = vpop.f32.mrf.mxu0  ;;  %v5080_v55 = vpop.f32.mrf.mxu1  ;;  %v2513_v18 = vld [vmem:[#allocation2 + $0x31] sm:$0xff] }
  0xf7   : > { %v2545_v51 = vpack.c.bf16 %v2514_v2, %v2513_v18  ;;  %v2826_v18 = vld [vmem:[#allocation2 + $0x82] sm:$0xff]  ;;  %v2521_v2 = vld [vmem:[#allocation2 + $0x91] sm:$0xff] }
  0xf8   : > { %v5082_v59 = vpop.f32.mrf.mxu0  ;;  %v5084_v29 = vpop.f32.mrf.mxu1 }
  0xfa   : > { %v5086_v60 = vpop.f32.mrf.mxu0  ;;  %v5088_v34 = vpop.f32.mrf.mxu1 }
  0xfc   : > { %v5090_v28 = vpop.f32.mrf.mxu0  ;;  %v5092_v63 = vpop.f32.mrf.mxu1  ;;  %4065 = vmatmul.mubr.bf16.gmra.mxu1 %v4886_v25  ;;  %4113 = vmatmul.mubr.bf16.gmra.mxu0 %v4892_v1  ;;  %v5106_v25 = vpack.c.bf16 %v1931_v16, %v1930_v15  ;;  %v4313_v1 = vld [vmem:[#allocation2] sm:$0xff] }
  0xfd   : > { %4068 = vmatprep.mubr.bf16.mxu1 %v4894_v22  ;;  %4116 = vmatprep.mubr.bf16.mxu0 %v4986_v42  ;;  %v2254_v22 = vpack.c.bf16 %v4313_v1, %v4313_v1  ;;  %v2518_v42 = vld [vmem:[#allocation2 + $0x69] sm:$0xff]  ;;  %v2825_v16 = vld [vmem:[#allocation2 + $0x7a] sm:$0xff] }
  0xfe   : > { %v5098_v43 = vpop.f32.mrf.mxu0  ;;  %v5100_v45 = vpop.f32.mrf.mxu1  ;;  %v2547_v53 = vpack.c.bf16 %v2518_v42, %v2517_v14  ;;  %v2522_v1 = vld [vmem:[#allocation2 + $0x99] sm:$0xff]  ;;  %v2854_v14 = vpack.c.bf16 %v2826_v18, %v2825_v16 }
  0xff   : > { %v2549_v3 = vpack.c.bf16 %v2522_v1, %v2521_v2  ;;  %v2830_v16 = vld [vmem:[#allocation2 + $0xb2] sm:$0xff] }
 0x100   : > { %v5102_v49 = vpop.f32.mrf.mxu0  ;;  %v5104_v50 = vpop.f32.mrf.mxu1 }
 0x102   : > { %v5108_v35 = vpop.f32.mrf.mxu0  ;;  %v5110_v38 = vpop.f32.mrf.mxu1 }
 0x104   : > { %v5112_v62 = vpop.f32.mrf.mxu0  ;;  %v5114_v6 = vpop.f32.mrf.mxu1  ;;  %4069 = vmatmul.mubr.bf16.gmra.mxu1 %v5106_v25  ;;  %4117 = vmatmul.mubr.bf16.gmra.mxu0 %v2254_v22  ;;  %v2827_v22 = vld [vmem:[#allocation2 + $0x92] sm:$0xff] }
 0x105   : > { %4136 = vmatprep.mubr.bf16.mxu1 %v2545_v51  ;;  %4184 = vmatprep.mubr.bf16.mxu0 %v2851_v27  ;;  %v2828_v51 = vld [vmem:[#allocation2 + $0x9a] sm:$0xff] }
 0x106   : > { %v5117_v44 = vpop.f32.mrf.mxu0  ;;  %v5119_v57 = vpop.f32.mrf.mxu1  ;;  %v2855_v21 = vpack.c.bf16 %v2828_v51, %v2827_v22 }
 0x108   : > { %v5121_v32 = vpop.f32.mrf.mxu0  ;;  %v5123_v39 = vpop.f32.mrf.mxu1 }
 0x10a   : > { %v5125_v20 = vpop.f32.mrf.mxu0  ;;  %v5127_v23 = vpop.f32.mrf.mxu1 }
 0x10c   : > { %v3850_v24 = vpop.f32.mrf.mxu1  ;;  %v3898_v30 = vpop.f32.mrf.mxu0  ;;  %4137 = vmatmul.mubr.bf16.vlgmr.msra.gmra.mxu1 %v2546_v0  ;;  %4185 = vmatmul.mubr.bf16.vlgmr.msra.gmra.mxu0 %v2852_v4 }
 0x10d   : > { %v864_v15 = vadd.f32 %v3850_v24, %v5050_v40  ;;  %4140 = vmatprep.mubr.bf16.mxu1 %v2547_v53  ;;  %4188 = vmatprep.mubr.bf16.mxu0 %v2853_v19 }
 0x10e   : > { %v855_v17 = vpop.f32.mrf.mxu1  ;;  %v1129_v47 = vpop.f32.mrf.mxu0 }
 0x10f   : > { %v5130_v27 = vadd.f32 %v3898_v30, %v864_v15  ;;  %v856_v8 = vadd.f32 %v855_v17, %v5058_v52  ;;  %v2523_v52 = vld [vmem:[#allocation2 + $0xa9] sm:$0xff] }
 0x110   : > { %v3851_v10 = vpop.f32.mrf.mxu1  ;;  %v3899_v12 = vpop.f32.mrf.mxu0  ;;  %v2831_v17 = vld [vmem:[#allocation2 + $0xc2] sm:$0xff] }
 0x111   : > { %v5133_v42 = vadd.f32 %v1129_v47, %v856_v8  ;;  %v867_v40 = vadd.f32 %v3851_v10, %v5062_v54  ;;  %v2524_v54 = vld [vmem:[#allocation2 + $0xb1] sm:$0xff]  ;;  %v2856_v10 = vpack.c.bf16 %v2830_v16, %v2829_v36 }
 0x112   : > { %v858_v0 = vpop.f32.mrf.mxu1  ;;  %v1132_v4 = vpop.f32.mrf.mxu0  ;;  %v2832_v47 = vld [vmem:[#allocation2 + $0xca] sm:$0xff]  ;;  %v2550_v8 = vpack.c.bf16 %v2524_v54, %v2523_v52  ;;  %v2836_v54 = vld [vmem:[#allocation2 + $0xfa] sm:$0xff] }
 0x113   : > { %v5136_v53 = vadd.f32 %v3899_v12, %v867_v40  ;;  %v859_v19 = vadd.f32 %v858_v0, %v5066_v7 }
 0x114   : > { %v3854_v24 = vpop.f32.mrf.mxu1  ;;  %v3902_v30 = vpop.f32.mrf.mxu0  ;;  %4141 = vmatmul.mubr.bf16.gmra.mxu1 %v2548_v13  ;;  %4189 = vmatmul.mubr.bf16.gmra.mxu0 %v2854_v14  ;;  %v2857_v13 = vpack.c.bf16 %v2832_v47, %v2831_v17 }
 0x115   : > { %v5139_v15 = vadd.f32 %v1132_v4, %v859_v19  ;;  %v880_v33 = vadd.f32 %v3854_v24, %v5070_v46  ;;  %4144 = vmatprep.mubr.bf16.mxu1 %v2549_v3  ;;  %4192 = vmatprep.mubr.bf16.mxu0 %v2855_v21  ;;  %v2833_v24 = vld [vmem:[#allocation2 + $0xda] sm:$0xff] }
 0x116   : > { %v871_v18 = vpop.f32.mrf.mxu1  ;;  %v1145_v2 = vpop.f32.mrf.mxu0 }
 0x117   : > { %v5142_v1 = vadd.f32 %v3902_v30, %v880_v33  ;;  %v872_v7 = vadd.f32 %v871_v18, %v5078_v37  ;;  %v2835_v33 = vld [vmem:[#allocation2 + $0xf2] sm:$0xff] }
 0x118   : > { %v3855_v22 = vpop.f32.mrf.mxu1  ;;  %v3903_v51 = vpop.f32.mrf.mxu0  ;;  %v2859_v47 = vpack.c.bf16 %v2836_v54, %v2835_v33 }
 0x119   : > { %v5145_v12 = vadd.f32 %v1145_v2, %v872_v7  ;;  %v883_v46 = vadd.f32 %v3855_v22, %v5082_v59  ;;  %v2834_v59 = vld [vmem:[#allocation2 + $0xe2] sm:$0xff] }
 0x11a   : > { %v874_v14 = vpop.f32.mrf.mxu1  ;;  %v1148_v40 = vpop.f32.mrf.mxu0  ;;  %v2858_v2 = vpack.c.bf16 %v2834_v59, %v2833_v24 }
 0x11b   : > { %v5148_v3 = vadd.f32 %v3903_v51, %v883_v46  ;;  %v875_v21 = vadd.f32 %v874_v14, %v5086_v60  ;;  %v2533_v14 = vld [vmem:[#allocation2 + $0x121] sm:$0xff] }
 0x11c   : > { %v3858_v0 = vpop.f32.mrf.mxu1  ;;  %v3906_v4 = vpop.f32.mrf.mxu0  ;;  %4145 = vmatmul.mubr.bf16.gmra.mxu1 %v2550_v8  ;;  %4193 = vmatmul.mubr.bf16.gmra.mxu0 %v2856_v10 }
 0x11d   : > { %v5151_v37 = vadd.f32 %v1148_v40, %v875_v21  ;;  %v896_v19 = vadd.f32 %v3858_v0, %v5090_v28  ;;  %4148 = vmatprep.mubr.bf16.mxu1 %v4950_v31  ;;  %4196 = vmatprep.mubr.bf16.mxu0 %v2857_v13  ;;  %v2838_v13 = vld [vmem:[#allocation2 + $0x112] sm:$0xff]  ;;  %v2534_v0 = vld [vmem:[#allocation2 + $0x129] sm:$0xff] }
 0x11e   : > { %v887_v30 = vpop.f32.mrf.mxu1  ;;  %v1161_v52 = vpop.f32.mrf.mxu0 }
 0x11f   : > { %v5155_v36 = vadd.f32 %v3906_v4, %v896_v19  ;;  %v888_v60 = vadd.f32 %v887_v30, %v5098_v43  ;;  %v2839_v4 = vld [vmem:[#allocation2 + $0x122] sm:$0xff] }
 0x120   : > { %v3859_v16 = vpop.f32.mrf.mxu1  ;;  %v3907_v18 = vpop.f32.mrf.mxu0 }
 0x121   : > { %v5158_v17 = vadd.f32 %v1161_v52, %v888_v60  ;;  %v899_v28 = vadd.f32 %v3859_v16, %v5102_v49  ;;  %v2837_v49 = vld [vmem:[#allocation2 + $0x10a] sm:$0xff] }
 0x122   : > { %v890_v31 = vpop.f32.mrf.mxu1  ;;  %v1164_v7 = vpop.f32.mrf.mxu0  ;;  %v2860_v30 = vpack.c.bf16 %v2838_v13, %v2837_v49  ;;  %v2538_v49 = vld [vmem:[#allocation2 + $0x159] sm:$0xff] }
 0x123   : > { %v5161_v22 = vadd.f32 %v3907_v18, %v899_v28  ;;  %v891_v51 = vadd.f32 %v890_v31, %v5108_v35  ;;  %v2840_v35 = vld [vmem:[#allocation2 + $0x12a] sm:$0xff]  ;;  %v2844_v13 = vld [vmem:[#allocation2 + $0x15a] sm:$0xff] }
 0x124   : > { %v3862_v8 = vpop.f32.mrf.mxu1  ;;  %v3910_v10 = vpop.f32.mrf.mxu0  ;;  %4149 = vmatmul.mubr.bf16.gmra.mxu1 %v4952_v61  ;;  %4197 = vmatmul.mubr.bf16.gmra.mxu0 %v2858_v2  ;;  %v2861_v33 = vpack.c.bf16 %v2840_v35, %v2839_v4 }
 0x125   : > { %v5165_v43 = vadd.f32 %v1164_v7, %v891_v51  ;;  %v912_v46 = vadd.f32 %v3862_v8, %v5112_v62  ;;  %4152 = vmatprep.mubr.bf16.mxu1 %v4970_v26  ;;  %4200 = vmatprep.mubr.bf16.mxu0 %v2859_v47  ;;  %v2555_v62 = vpack.c.bf16 %v2534_v0, %v2533_v14  ;;  %v2536_v47 = vld [vmem:[#allocation2 + $0x141] sm:$0xff]  ;;  %v2537_v8 = vld [vmem:[#allocation2 + $0x151] sm:$0xff] }
 0x126   : > { %v903_v40 = vpop.f32.mrf.mxu1  ;;  %v1177_v21 = vpop.f32.mrf.mxu0  ;;  %v2842_v51 = vld [vmem:[#allocation2 + $0x142] sm:$0xff] }
 0x127   : > { %v5169_v19 = vadd.f32 %v3910_v10, %v912_v46  ;;  %v904_v61 = vadd.f32 %v903_v40, %v5117_v44  ;;  %v2535_v44 = vld [vmem:[#allocation2 + $0x139] sm:$0xff] }
 0x128   : > { %v3863_v24 = vpop.f32.mrf.mxu1  ;;  %v3911_v59 = vpop.f32.mrf.mxu0  ;;  %v2556_v0 = vpack.c.bf16 %v2536_v47, %v2535_v44 }
 0x129   : > { %v5172_v52 = vadd.f32 %v1177_v21, %v904_v61  ;;  %v915_v26 = vadd.f32 %v3863_v24, %v5121_v32  ;;  %v2841_v32 = vld [vmem:[#allocation2 + $0x13a] sm:$0xff]  ;;  %v2557_v61 = vpack.c.bf16 %v2538_v49, %v2537_v8 }
 0x12a   : > { %v906_v54 = vpop.f32.mrf.mxu1  ;;  %v1180_v60 = vpop.f32.mrf.mxu0  ;;  %v2862_v4 = vpack.c.bf16 %v2842_v51, %v2841_v32 }
 0x12b   : > { %v5175_v16 = vadd.f32 %v3911_v59, %v915_v26  ;;  %v907_v18 = vadd.f32 %v906_v54, %v5125_v20  ;;  %v2843_v20 = vld [vmem:[#allocation2 + $0x152] sm:$0xff] }
 0x12c   : > { %v3866_v2 = vpop.f32.mrf.mxu1  ;;  %v3914_v28 = vpop.f32.mrf.mxu0  ;;  %4153 = vmatmul.mubr.bf16.gmra.mxu1 %v4972_v41  ;;  %4201 = vmatmul.mubr.bf16.gmra.mxu0 %v2860_v30  ;;  %v2863_v24 = vpack.c.bf16 %v2844_v13, %v2843_v20 }
 0x12d   : > { %v5179_v31 = vadd.f32 %v1180_v60, %v907_v18  ;;  %v928_v7 = vadd.f32 %v3866_v2, %v5052_v48  ;;  %4156 = vmatprep.mubr.bf16.mxu1 %v2555_v62  ;;  %4204 = vmatprep.mubr.bf16.mxu0 %v2861_v33  ;;  %v2845_v2 = vld [vmem:[#allocation2 + $0x16a] sm:$0xff] }
 0x12e   : > { %v919_v10 = vpop.f32.mrf.mxu1  ;;  %v1193_v46 = vpop.f32.mrf.mxu0 }
 0x12f   : > { %v5182_v14 = vadd.f32 %v3914_v28, %v928_v7  ;;  %v920_v41 = vadd.f32 %v919_v10, %v5060_v56  ;;  %v2539_v56 = vld [vmem:[#allocation2 + $0x169] sm:$0xff]  ;;  %v2846_v28 = vld [vmem:[#allocation2 + $0x172] sm:$0xff] }
 0x130   : > { %v3867_v40 = vpop.f32.mrf.mxu1  ;;  %v3915_v21 = vpop.f32.mrf.mxu0  ;;  %v2864_v10 = vpack.c.bf16 %v2846_v28, %v2845_v2 }
 0x131   : > { %v5185_v35 = vadd.f32 %v1193_v46, %v920_v41  ;;  %v931_v48 = vadd.f32 %v3867_v40, %v5064_v58  ;;  %v2540_v58 = vld [vmem:[#allocation2 + $0x171] sm:$0xff] }
 0x132   : > { %v922_v59 = vpop.f32.mrf.mxu1  ;;  %v1196_v30 = vpop.f32.mrf.mxu0  ;;  %v2558_v8 = vpack.c.bf16 %v2540_v58, %v2539_v56 }
 0x133   : > { %v5188_v26 = vadd.f32 %v3915_v21, %v931_v48  ;;  %v923_v62 = vadd.f32 %v922_v59, %v5068_v5  ;;  %v2849_v48 = vld [vmem:[#allocation2 + $0x19a] sm:$0xff] }
 0x134   : > { %v3870_v33 = vpop.f32.mrf.mxu1  ;;  %v3918_v54 = vpop.f32.mrf.mxu0  ;;  %4157 = vmatmul.mubr.bf16.gmra.mxu1 %v2556_v0  ;;  %4205 = vmatmul.mubr.bf16.gmra.mxu0 %v2862_v4  ;;  %v2543_v0 = vld [vmem:[#allocation2 + $0x199] sm:$0xff] }
 0x135   : > { %v5191_v60 = vadd.f32 %v1196_v30, %v923_v62  ;;  %v944_v18 = vadd.f32 %v3870_v33, %v5072_v11  ;;  %4160 = vmatprep.mubr.bf16.mxu1 %v2557_v61  ;;  %4208 = vmatprep.mubr.bf16.mxu0 %v2863_v24  ;;  %v2850_v61 = vld [vmem:[#allocation2 + $0x1a2] sm:$0xff] }
 0x136   : > { %v935_v44 = vpop.f32.mrf.mxu1  ;;  %v1209_v47 = vpop.f32.mrf.mxu0  ;;  %v2866_v56 = vpack.c.bf16 %v2850_v61, %v2849_v48 }
 0x137   : > { %v5194_v7 = vadd.f32 %v3918_v54, %v944_v18  ;;  %v936_v5 = vadd.f32 %v935_v44, %v5080_v55 }
 0x138   : > { %v3871_v32 = vpop.f32.mrf.mxu1  ;;  %v3919_v51 = vpop.f32.mrf.mxu0 }
 0x139   : > { %v5197_v46 = vadd.f32 %v1209_v47, %v936_v5  ;;  %v947_v49 = vadd.f32 %v3871_v32, %v5084_v29  ;;  %v2544_v29 = vld [vmem:[#allocation2 + $0x1a1] sm:$0xff] }
 0x13a   : > { %v938_v11 = vpop.f32.mrf.mxu1  ;;  %v1212_v20 = vpop.f32.mrf.mxu0  ;;  %v2560_v54 = vpack.c.bf16 %v2544_v29, %v2543_v0 }
 0x13b   : > { %v5200_v13 = vadd.f32 %v3919_v51, %v947_v49  ;;  %v939_v41 = vadd.f32 %v938_v11, %v5088_v34 }
 0x13c   : > { %v3874_v40 = vpop.f32.mrf.mxu1  ;;  %v3922_v21 = vpop.f32.mrf.mxu0  ;;  %4161 = vmatmul.mubr.bf16.gmra.mxu1 %v2558_v8  ;;  %4209 = vmatmul.mubr.bf16.gmra.mxu0 %v2864_v10 }
 0x13d   : > { %v5203_v55 = vadd.f32 %v1212_v20, %v939_v41  ;;  %v960_v4 = vadd.f32 %v3874_v40, %v5092_v63  ;;  %4164 = vmatprep.mubr.bf16.mxu1 %v4862_v9  ;;  %4212 = vmatprep.mubr.bf16.mxu0 %v5106_v25 }
 0x13e   : > { %v951_v24 = vpop.f32.mrf.mxu1  ;;  %v1225_v59 = vpop.f32.mrf.mxu0 }
 0x13f   : > { %v5208_v30 = vadd.f32 %v3922_v21, %v960_v4  ;;  %v952_v34 = vadd.f32 %v951_v24, %v5100_v45 }
 0x140   : > { %v3875_v62 = vpop.f32.mrf.mxu1  ;;  %v3923_v33 = vpop.f32.mrf.mxu0 }
 0x141   : > { %v5211_v18 = vadd.f32 %v1225_v59, %v952_v34  ;;  %v963_v63 = vadd.f32 %v3875_v62, %v5104_v50 }
 0x142   : > { %v954_v9 = vpop.f32.mrf.mxu1  ;;  %v1228_v58 = vpop.f32.mrf.mxu0 }
 0x143   : > { %v5214_v25 = vadd.f32 %v3923_v33, %v963_v63  ;;  %v955_v2 = vadd.f32 %v954_v9, %v5110_v38 }
 0x144   : > { %v3878_v28 = vpop.f32.mrf.mxu1  ;;  %v3926_v44 = vpop.f32.mrf.mxu0  ;;  %4165 = vmatmul.mubr.bf16.gmra.mxu1 %v2560_v54  ;;  %4213 = vmatmul.mubr.bf16.gmra.mxu0 %v2866_v56 }
 0x145   : > { %v5217_v47 = vadd.f32 %v1228_v58, %v955_v2  ;;  %v976_v45 = vadd.f32 %v3878_v28, %v5114_v6 }
 0x146   : > { %v967_v5 = vpop.f32.mrf.mxu1  ;;  %v1241_v32 = vpop.f32.mrf.mxu0 }
 0x147   : > { %v5220_v51 = vadd.f32 %v3926_v44, %v976_v45  ;;  %v968_v50 = vadd.f32 %v967_v5, %v5119_v57 }
 0x148   : > { %v3879_v8 = vpop.f32.mrf.mxu1  ;;  %v3927_v10 = vpop.f32.mrf.mxu0 }
 0x149   : > { %v5223_v49 = vadd.f32 %v1241_v32, %v968_v50  ;;  %v979_v38 = vadd.f32 %v3879_v8, %v5123_v39 }
 0x14a   : > { %v970_v11 = vpop.f32.mrf.mxu1  ;;  %v1244_v20 = vpop.f32.mrf.mxu0 }
 0x14b   : > { %v5226_v41 = vadd.f32 %v3927_v10, %v979_v38  ;;  %v971_v40 = vadd.f32 %v970_v11, %v5127_v23 }
 0x14c   : > { %v3946_v21 = vpop.f32.mrf.mxu1  ;;  %v3994_v6 = vpop.f32.mrf.mxu0 }
 0x14d   : > { %v5229_v0 = vadd.f32 %v1244_v20, %v971_v40  ;;  %v1564_v4 = vadd.f32 %v3946_v21, %v5130_v27 }
 0x14e   : > { %v1435_v29 = vpop.f32.mrf.mxu1  ;;  %v1741_v57 = vpop.f32.mrf.mxu0 }
 0x14f   : > { %v5232_v48 = vadd.f32 %v3994_v6, %v1564_v4  ;;  %v1562_v61 = vadd.f32 %v1435_v29, %v5133_v42 }
 0x150   : > { %v3947_v24 = vpop.f32.mrf.mxu1  ;;  %v3995_v39 = vpop.f32.mrf.mxu0 }
 0x151   : > { %v5235_v59 = vadd.f32 %v1741_v57, %v1562_v61  ;;  %v1565_v34 = vadd.f32 %v3947_v24, %v5136_v53 }
 0x152   : > { %v1438_v62 = vpop.f32.mrf.mxu1  ;;  %v1744_v23 = vpop.f32.mrf.mxu0 }
 0x153   : > { %v5238_v33 = vadd.f32 %v3995_v39, %v1565_v34  ;;  %v1563_v54 = vadd.f32 %v1438_v62, %v5139_v15 }
 0x154   : > { %v3950_v56 = vpop.f32.mrf.mxu1  ;;  %v3998_v27 = vpop.f32.mrf.mxu0 }
 0x155   : > { %v5241_v63 = vadd.f32 %v1744_v23, %v1563_v54  ;;  %v1568_v9 = vadd.f32 %v3950_v56, %v5142_v1 }
 0x156   : > { %v1451_v58 = vpop.f32.mrf.mxu1  ;;  %v1757_v42 = vpop.f32.mrf.mxu0 }
 0x157   : > { %v5244_v2 = vadd.f32 %v3998_v27, %v1568_v9  ;;  %v1566_v28 = vadd.f32 %v1451_v58, %v5145_v12 }
 0x158   : > { %v3951_v44 = vpop.f32.mrf.mxu1  ;;  %v3999_v53 = vpop.f32.mrf.mxu0 }
 0x159   : > { %v5247_v45 = vadd.f32 %v1757_v42, %v1566_v28  ;;  %v1569_v5 = vadd.f32 %v3951_v44, %v5148_v3 }
 0x15a   : > { %v1454_v32 = vpop.f32.mrf.mxu1  ;;  %v1760_v15 = vpop.f32.mrf.mxu0 }
 0x15b   : > { %v5250_v50 = vadd.f32 %v3999_v53, %v1569_v5  ;;  %v1567_v8 = vadd.f32 %v1454_v32, %v5151_v37 }
 0x15c   : > { %v3954_v10 = vpop.f32.mrf.mxu1  ;;  %v4002_v1 = vpop.f32.mrf.mxu0 }
 0x15d   : > { %v5253_v38 = vadd.f32 %v1760_v15, %v1567_v8  ;;  %v1572_v11 = vadd.f32 %v3954_v10, %v5155_v36 }
 0x15e   : > { %v1467_v20 = vpop.f32.mrf.mxu1  ;;  %v1773_v12 = vpop.f32.mrf.mxu0 }
 0x15f   : > { %v5256_v40 = vadd.f32 %v4002_v1, %v1572_v11  ;;  %v1570_v21 = vadd.f32 %v1467_v20, %v5158_v17 }
 0x160   : > { %v3955_v6 = vpop.f32.mrf.mxu1  ;;  %v4003_v3 = vpop.f32.mrf.mxu0 }
 0x161   : > { %v5259_v4 = vadd.f32 %v1773_v12, %v1570_v21  ;;  %v1573_v29 = vadd.f32 %v3955_v6, %v5161_v22 }
 0x162   : > { %v1470_v57 = vpop.f32.mrf.mxu1  ;;  %v1776_v37 = vpop.f32.mrf.mxu0 }
 0x163   : > { %v5262_v61 = vadd.f32 %v4003_v3, %v1573_v29  ;;  %v1571_v24 = vadd.f32 %v1470_v57, %v5165_v43 }
 0x164   : > { %v3958_v39 = vpop.f32.mrf.mxu1  ;;  %v4006_v36 = vpop.f32.mrf.mxu0 }
 0x165   : > { %v5265_v34 = vadd.f32 %v1776_v37, %v1571_v24  ;;  %v1576_v62 = vadd.f32 %v3958_v39, %v5169_v19 }
 0x166   : > { %v1483_v23 = vpop.f32.mrf.mxu1  ;;  %v1789_v17 = vpop.f32.mrf.mxu0 }
 0x167   : > { %v5268_v54 = vadd.f32 %v4006_v36, %v1576_v62  ;;  %v1574_v56 = vadd.f32 %v1483_v23, %v5172_v52 }
 0x168   : > { %v3959_v27 = vpop.f32.mrf.mxu1  ;;  %v4007_v22 = vpop.f32.mrf.mxu0 }
 0x169   : > { %v5271_v9 = vadd.f32 %v1789_v17, %v1574_v56  ;;  %v1577_v58 = vadd.f32 %v3959_v27, %v5175_v16 }
 0x16a   : > { %v1486_v42 = vpop.f32.mrf.mxu1  ;;  %v1792_v43 = vpop.f32.mrf.mxu0 }
 0x16b   : > { %v5274_v28 = vadd.f32 %v4007_v22, %v1577_v58  ;;  %v1575_v44 = vadd.f32 %v1486_v42, %v5179_v31 }
 0x16c   : > { %v3962_v53 = vpop.f32.mrf.mxu1  ;;  %v4010_v19 = vpop.f32.mrf.mxu0 }
 0x16d   : > { %v5277_v5 = vadd.f32 %v1792_v43, %v1575_v44  ;;  %v1580_v32 = vadd.f32 %v3962_v53, %v5182_v14 }
 0x16e   : > { %v1499_v15 = vpop.f32.mrf.mxu1  ;;  %v1805_v52 = vpop.f32.mrf.mxu0 }
 0x16f   : > { %v5280_v8 = vadd.f32 %v4010_v19, %v1580_v32  ;;  %v1578_v10 = vadd.f32 %v1499_v15, %v5185_v35 }
 0x170   : > { %v3963_v1 = vpop.f32.mrf.mxu1  ;;  %v4011_v16 = vpop.f32.mrf.mxu0 }
 0x171   : > { %v5283_v11 = vadd.f32 %v1805_v52, %v1578_v10  ;;  %v1581_v20 = vadd.f32 %v3963_v1, %v5188_v26 }
 0x172   : > { %v1502_v12 = vpop.f32.mrf.mxu1  ;;  %v1808_v31 = vpop.f32.mrf.mxu0 }
 0x173   : > { %v5286_v21 = vadd.f32 %v4011_v16, %v1581_v20  ;;  %v1579_v6 = vadd.f32 %v1502_v12, %v5191_v60 }
 0x174   : > { %v3966_v3 = vpop.f32.mrf.mxu1  ;;  %v4014_v14 = vpop.f32.mrf.mxu0 }
 0x175   : > { %5596 = vst [vmem:[#allocation3_spill] sm:$0xff] %v5286_v21  ;;  %v5289_v29 = vadd.f32 %v1808_v31, %v1579_v6  ;;  %v1584_v57 = vadd.f32 %v3966_v3, %v5194_v7 }
 0x176   : > { %v1515_v37 = vpop.f32.mrf.mxu1  ;;  %v1821_v35 = vpop.f32.mrf.mxu0 }
 0x177   : > { %5597 = vst [vmem:[#allocation4_spill] sm:$0xff] %v5289_v29  ;;  %v5292_v24 = vadd.f32 %v4014_v14, %v1584_v57  ;;  %v1582_v39 = vadd.f32 %v1515_v37, %v5197_v46 }
 0x178   : > { %v3967_v36 = vpop.f32.mrf.mxu1  ;;  %v4015_v26 = vpop.f32.mrf.mxu0 }
 0x179   : > { %5598 = vst [vmem:[#allocation5_spill] sm:$0xff] %v5292_v24  ;;  %v5295_v62 = vadd.f32 %v1821_v35, %v1582_v39  ;;  %v1585_v23 = vadd.f32 %v3967_v36, %v5200_v13 }
 0x17a   : > { %v1518_v17 = vpop.f32.mrf.mxu1  ;;  %v1824_v60 = vpop.f32.mrf.mxu0 }
 0x17b   : > { %5599 = vst [vmem:[#allocation6_spill] sm:$0xff] %v5295_v62  ;;  %v5298_v56 = vadd.f32 %v4015_v26, %v1585_v23  ;;  %v1583_v27 = vadd.f32 %v1518_v17, %v5203_v55 }
 0x17c   : > { %v3970_v22 = vpop.f32.mrf.mxu1  ;;  %v4018_v7 = vpop.f32.mrf.mxu0 }
 0x17d   : > { %5600 = vst [vmem:[#allocation7_spill] sm:$0xff] %v5298_v56  ;;  %v5301_v58 = vadd.f32 %v1824_v60, %v1583_v27  ;;  %v1588_v42 = vadd.f32 %v3970_v22, %v5208_v30 }
 0x17e   : > { %v1531_v43 = vpop.f32.mrf.mxu1  ;;  %v1837_v46 = vpop.f32.mrf.mxu0 }
 0x17f   : > { %5601 = vst [vmem:[#allocation8_spill] sm:$0xff] %v5301_v58  ;;  %v5304_v44 = vadd.f32 %v4018_v7, %v1588_v42  ;;  %v1586_v53 = vadd.f32 %v1531_v43, %v5211_v18 }
 0x180   : > { %v3971_v19 = vpop.f32.mrf.mxu1  ;;  %v4019_v13 = vpop.f32.mrf.mxu0 }
 0x181   : > { %5602 = vst [vmem:[#allocation9_spill] sm:$0xff] %v5304_v44  ;;  %v5307_v32 = vadd.f32 %v1837_v46, %v1586_v53  ;;  %v1589_v15 = vadd.f32 %v3971_v19, %v5214_v25 }
 0x182   : > { %v1534_v52 = vpop.f32.mrf.mxu1  ;;  %v1840_v55 = vpop.f32.mrf.mxu0 }
 0x183   : > { %5603 = vst [vmem:[#allocation10_spill] sm:$0xff] %v5307_v32  ;;  %v5310_v10 = vadd.f32 %v4019_v13, %v1589_v15  ;;  %v1587_v1 = vadd.f32 %v1534_v52, %v5217_v47 }
 0x184   : > { %v3974_v16 = vpop.f32.mrf.mxu1  ;;  %v4022_v30 = vpop.f32.mrf.mxu0 }
 0x185   : > { %5604 = vst [vmem:[#allocation11_spill] sm:$0xff] %v5310_v10  ;;  %v5313_v20 = vadd.f32 %v1840_v55, %v1587_v1  ;;  %v1592_v12 = vadd.f32 %v3974_v16, %v5220_v51 }
 0x186   : > { %v1547_v31 = vpop.f32.mrf.mxu1  ;;  %v1853_v18 = vpop.f32.mrf.mxu0 }
 0x187   : > { %5605 = vst [vmem:[#allocation12_spill] sm:$0xff] %v5313_v20  ;;  %v5316_v6 = vadd.f32 %v4022_v30, %v1592_v12  ;;  %v1590_v3 = vadd.f32 %v1547_v31, %v5223_v49 }
 0x188   : > { %v3975_v14 = vpop.f32.mrf.mxu1  ;;  %v4023_v25 = vpop.f32.mrf.mxu0 }
 0x189   : > { %5606 = vst [vmem:[#allocation13_spill] sm:$0xff] %v5316_v6  ;;  %v5319_v57 = vadd.f32 %v1853_v18, %v1590_v3  ;;  %v1593_v37 = vadd.f32 %v3975_v14, %v5226_v41 }
 0x18a   : > { %v1550_v35 = vpop.f32.mrf.mxu1  ;;  %v1856_v47 = vpop.f32.mrf.mxu0 }
 0x18b   : > { %5607 = vst [vmem:[#allocation14_spill] sm:$0xff] %v5319_v57  ;;  %v5322_v39 = vadd.f32 %v4023_v25, %v1593_v37  ;;  %v1591_v36 = vadd.f32 %v1550_v35, %v5229_v0 }
 0x18c   : > { %v4042_v26 = vpop.f32.mrf.mxu1  ;;  %v5325_v51 = vpop.f32.mrf.mxu0 }
 0x18d   : > { %5608 = vst [vmem:[#allocation15_spill] sm:$0xff] %v5322_v39  ;;  %v5327_v23 = vadd.f32 %v1856_v47, %v1591_v36 }
 0x18e   : > { %v2047_v17 = vpop.f32.mrf.mxu1  ;;  %v5329_v60 = vpop.f32.mrf.mxu0 }
 0x18f   : > { %5609 = vst [vmem:[#allocation16_spill] sm:$0xff] %v5327_v23 }
 0x190   : > { %v5331_v49 = vpop.f32.mrf.mxu1  ;;  %v5333_v27 = vpop.f32.mrf.mxu0 }
 0x192   : > { %v5335_v22 = vpop.f32.mrf.mxu1  ;;  %v5337_v41 = vpop.f32.mrf.mxu0 }
 0x194   : > { %v5339_v7 = vpop.f32.mrf.mxu1  ;;  %v5341_v42 = vpop.f32.mrf.mxu0 }
 0x196   : > { %v5343_v0 = vpop.f32.mrf.mxu1  ;;  %v5345_v43 = vpop.f32.mrf.mxu0 }
 0x198   : > { %v5347_v46 = vpop.f32.mrf.mxu1  ;;  %v5349_v53 = vpop.f32.mrf.mxu0 }
 0x19a   : > { %v5351_v19 = vpop.f32.mrf.mxu1  ;;  %v5353_v13 = vpop.f32.mrf.mxu0 }
 0x19c   : > { %v5355_v15 = vpop.f32.mrf.mxu1  ;;  %v5357_v52 = vpop.f32.mrf.mxu0 }
 0x19e   : > { %v5359_v55 = vpop.f32.mrf.mxu1  ;;  %v5361_v1 = vpop.f32.mrf.mxu0 }
 0x1a0   : > { %v5363_v16 = vpop.f32.mrf.mxu1  ;;  %v5365_v30 = vpop.f32.mrf.mxu0 }
 0x1a2   : > { %v5367_v12 = vpop.f32.mrf.mxu1  ;;  %v5369_v31 = vpop.f32.mrf.mxu0 }
 0x1a4   : > { %v5371_v18 = vpop.f32.mrf.mxu1  ;;  %v5373_v3 = vpop.f32.mrf.mxu0 }
 0x1a6   : > { %v5375_v14 = vpop.f32.mrf.mxu1  ;;  %v5377_v25 = vpop.f32.mrf.mxu0 }
 0x1a8   : > { %v5379_v37 = vpop.f32.mrf.mxu1  ;;  %v5381_v35 = vpop.f32.mrf.mxu0 }
 0x1aa   : > { %v5383_v47 = vpop.f32.mrf.mxu1  ;;  %v5385_v36 = vpop.f32.mrf.mxu0 }
 0x1ac   : > { %v5387_v23 = vpop.f32.mrf.mxu1  ;;  %v5389_v39 = vpop.f32.mrf.mxu0 }
 0x1ae   : > { %v5391_v57 = vpop.f32.mrf.mxu1  ;;  %v5393_v6 = vpop.f32.mrf.mxu0 }
 0x1af   : > { %5610 = vst [vmem:[#allocation17_spill] sm:$0xff] %v5393_v6 }
 0x1b0   : > { %v5395_v20 = vpop.f32.mrf.mxu1  ;;  %v5397_v10 = vpop.f32.mrf.mxu0 }
 0x1b1   : > { %5611 = vst [vmem:[#allocation18_spill] sm:$0xff] %v5395_v20  ;;  %5612 = vst [vmem:[#allocation19_spill] sm:$0xff] %v5397_v10 }
 0x1b2   : > { %v5399_v32 = vpop.f32.mrf.mxu1  ;;  %v5401_v44 = vpop.f32.mrf.mxu0 }
 0x1b3   : > { %5613 = vst [vmem:[#allocation20_spill] sm:$0xff] %v5399_v32  ;;  %5614 = vst [vmem:[#allocation21_spill] sm:$0xff] %v5401_v44 }
 0x1b4   : > { %v5403_v58 = vpop.f32.mrf.mxu1  ;;  %v5405_v56 = vpop.f32.mrf.mxu0 }
 0x1b5   : > { %5615 = vst [vmem:[#allocation22_spill] sm:$0xff] %v5403_v58  ;;  %5616 = vst [vmem:[#allocation23_spill] sm:$0xff] %v5405_v56 }
 0x1b6   : > { %v5407_v62 = vpop.f32.mrf.mxu1  ;;  %v5409_v24 = vpop.f32.mrf.mxu0 }
 0x1b7   : > { %5617 = vst [vmem:[#allocation24_spill] sm:$0xff] %v5407_v62  ;;  %5618 = vst [vmem:[#allocation25_spill] sm:$0xff] %v5409_v24 }
 0x1b8   : > { %v5411_v29 = vpop.f32.mrf.mxu1  ;;  %v5413_v21 = vpop.f32.mrf.mxu0 }
 0x1b9   : > { %5619 = vst [vmem:[#allocation26_spill] sm:$0xff] %v5411_v29  ;;  %5620 = vst [vmem:[#allocation27_spill] sm:$0xff] %v5413_v21 }
 0x1ba   : > { %v5415_v6 = vpop.f32.mrf.mxu1  ;;  %v5417_v20 = vpop.f32.mrf.mxu0 }
 0x1bb   : > { %5621 = vst [vmem:[#allocation28_spill] sm:$0xff] %v5415_v6  ;;  %5622 = vst [vmem:[#allocation29_spill] sm:$0xff] %v5417_v20 }
 0x1bc   : > { %v5419_v10 = vpop.f32.mrf.mxu1  ;;  %v5421_v32 = vpop.f32.mrf.mxu0 }
 0x1bd   : > { %5623 = vst [vmem:[#allocation30_spill] sm:$0xff] %v5419_v10  ;;  %5624 = vst [vmem:[#allocation31_spill] sm:$0xff] %v5421_v32 }
 0x1be   : > { %v5423_v44 = vpop.f32.mrf.mxu1  ;;  %v5425_v58 = vpop.f32.mrf.mxu0 }
 0x1bf   : > { %5625 = vst [vmem:[#allocation32_spill] sm:$0xff] %v5423_v44  ;;  %5626 = vst [vmem:[#allocation33_spill] sm:$0xff] %v5425_v58  ;;  %v2176_v44 = vadd.f32 %v4042_v26, %v5232_v48  ;;  %v2175_v48 = vadd.f32 %v5335_v22, %v5241_v63 }
 0x1c0   : > { %v5427_v56 = vpop.f32.mrf.mxu1  ;;  %v5429_v62 = vpop.f32.mrf.mxu0 }
 0x1c1   : > { %5627 = vst [vmem:[#allocation34_spill] sm:$0xff] %v5427_v56  ;;  %5628 = vst [vmem:[#allocation35_spill] sm:$0xff] %v5429_v62  ;;  %v2174_v62 = vadd.f32 %v2047_v17, %v5235_v59 }
 0x1c2   : > { %v5431_v24 = vpop.f32.mrf.mxu1  ;;  %v5433_v29 = vpop.f32.mrf.mxu0 }
 0x1c3   : > { %5629 = vst [vmem:[#allocation36_spill] sm:$0xff] %v5431_v24  ;;  %5630 = vst [vmem:[#allocation37_spill] sm:$0xff] %v5433_v29 }
 0x1c4   : > { %v5435_v21 = vpop.f32.mrf.mxu1  ;;  %v5437_v6 = vpop.f32.mrf.mxu0 }
 0x1c5   : > { %5631 = vst [vmem:[#allocation38_spill] sm:$0xff] %v5435_v21  ;;  %5632 = vst [vmem:[#allocation39_spill] sm:$0xff] %v5437_v6  ;;  %v2483_v21 = vadd.f32 %v5325_v51, %v2176_v44  ;;  %v2177_v6 = vadd.f32 %v5331_v49, %v5238_v33  ;;  %v2180_v51 = vadd.f32 %v5339_v7, %v5244_v2 }
 0x1c6   : > { %v5439_v20 = vpop.f32.mrf.mxu1  ;;  %v5441_v32 = vpop.f32.mrf.mxu0 }
 0x1c7   : > { %5633 = vst [vmem:[#allocation40_spill] sm:$0xff] %v5439_v20  ;;  %5634 = vst [vmem:[#allocation41_spill] sm:$0xff] %v5441_v32  ;;  %v2481_v32 = vadd.f32 %v5329_v60, %v2174_v62  ;;  %v2484_v33 = vadd.f32 %v5333_v27, %v2177_v6  ;;  %v2487_v6 = vadd.f32 %v5341_v42, %v2180_v51 }
 0x1c8   : > { %v5444_v58 = vpop.f32.mrf.mxu1  ;;  %v5446_v56 = vpop.f32.mrf.mxu0  ;;  %v2179_v27 = vadd.f32 %v5351_v19, %v5253_v38  ;;  %v2184_v42 = vadd.f32 %v5355_v15, %v5256_v40 }
 0x1c9   : > { %5635 = vst [vmem:[#allocation42_spill] sm:$0xff] %v5446_v56 }
 0x1ca   : > { %v5449_v24 = vpop.f32.mrf.mxu1  ;;  %v5451_v29 = vpop.f32.mrf.mxu0  ;;  %v2486_v19 = vadd.f32 %v5353_v13, %v2179_v27  ;;  %v2491_v15 = vadd.f32 %v5357_v52, %v2184_v42 }
 0x1cb   : > { %5636 = vst [vmem:[#allocation43_spill] sm:$0xff] %v5451_v29 }
 0x1cc   : > { %v4138_v20 = vpop.f32.mrf.mxu1  ;;  %v4186_v10 = vpop.f32.mrf.mxu0 }
 0x1cd   : > { %v2789_v26 = vadd.f32 %v4138_v20, %v2483_v21  ;;  %v2482_v21 = vadd.f32 %v5337_v41, %v2175_v48  ;;  %v2178_v20 = vadd.f32 %v5343_v0, %v5247_v45 }
 0x1ce   : > { %v2660_v59 = vpop.f32.mrf.mxu1  ;;  %v2966_v44 = vpop.f32.mrf.mxu0 }
 0x1cf   : > { %v3095_v62 = vadd.f32 %v4186_v10, %v2789_v26  ;;  %v2787_v17 = vadd.f32 %v2660_v59, %v2481_v32  ;;  %v2181_v32 = vadd.f32 %v5347_v46, %v5250_v50  ;;  %v2485_v45 = vadd.f32 %v5345_v43, %v2178_v20 }
 0x1d0   : > { %v4139_v60 = vpop.f32.mrf.mxu1  ;;  %v4187_v63 = vpop.f32.mrf.mxu0 }
 0x1d1   : > { %3127 = vst [vmem:[%s5464_s10 + $0x10] sm:$0xff] %v3095_v62  ;;  %v3093_v49 = vadd.f32 %v2966_v44, %v2787_v17  ;;  %v2790_v22 = vadd.f32 %v4139_v60, %v2484_v33  ;;  %v2488_v38 = vadd.f32 %v5349_v53, %v2181_v32  ;;  %v3196_v51 = vmul.f32 %v3095_v62, %v3095_v62 }
 0x1d2   : > { %v2663_v29 = vpop.f32.mrf.mxu1  ;;  %v2969_v56 = vpop.f32.mrf.mxu0 }
 0x1d3   : > { %3125 = vst [vmem:[%s5464_s10] sm:$0xff] %v3093_v49  ;;  %v3096_v2 = vadd.f32 %v4187_v63, %v2790_v22  ;;  %v2788_v10 = vadd.f32 %v2663_v29, %v2482_v21  ;;  %v3194_v26 = vmul.f32 %v3093_v49, %v3093_v49  ;;  %v2182_v63 = vadd.f32 %v5359_v55, %v5259_v4 }
 0x1d4   : > { %v4142_v41 = vpop.f32.mrf.mxu1  ;;  %v4190_v7 = vpop.f32.mrf.mxu0  ;;  %v2185_v21 = vadd.f32 %v5363_v16, %v5262_v61 }
 0x1d5   : > { %3128 = vst [vmem:[%s5464_s10 + $0x18] sm:$0xff] %v3096_v2  ;;  %v3094_v0 = vadd.f32 %v2969_v56, %v2788_v10  ;;  %v2793_v48 = vadd.f32 %v4142_v41, %v2487_v6  ;;  %v3197_v13 = vmul.f32 %v3096_v2, %v3096_v2  ;;  %v2183_v10 = vadd.f32 %v5367_v12, %v5265_v34 }
 0x1d6   : > { %v2676_v59 = vpop.f32.mrf.mxu1  ;;  %v2982_v29 = vpop.f32.mrf.mxu0 }
 0x1d7   : > { %3126 = vst [vmem:[%s5464_s10 + $0x8] sm:$0xff] %v3094_v0  ;;  %v3157_v44 = vadd.f32 %v3094_v0, %v3093_v49  ;;  %v3195_v50 = vmul.f32 %v3094_v0, %v3094_v0  ;;  %v3099_v46 = vadd.f32 %v4190_v7, %v2793_v48  ;;  %v2791_v33 = vadd.f32 %v2676_v59, %v2485_v45 }
 0x1d8   : > { %v4143_v43 = vpop.f32.mrf.mxu1  ;;  %v4191_v56 = vpop.f32.mrf.mxu0  ;;  %v2489_v7 = vadd.f32 %v5361_v1, %v2182_v63  ;;  %v2492_v45 = vadd.f32 %v5365_v30, %v2185_v21  ;;  %v2188_v59 = vadd.f32 %v5371_v18, %v5268_v54 }
 0x1d9   : > { %v3158_v17 = vadd.f32 %v3157_v44, %v3095_v62  ;;  %v3226_v60 = vadd.f32 %v3195_v50, %v3194_v26  ;;  %3131 = vst [vmem:[%s5464_s10 + $0x30] sm:$0xff] %v3099_v46  ;;  %v3097_v40 = vadd.f32 %v2982_v29, %v2791_v33  ;;  %v2794_v20 = vadd.f32 %v4143_v43, %v2488_v38 }
 0x1da   : > { %v2679_v53 = vpop.f32.mrf.mxu1  ;;  %v2985_v49 = vpop.f32.mrf.mxu0  ;;  %v2490_v26 = vadd.f32 %v5369_v31, %v2183_v10  ;;  %v2186_v29 = vadd.f32 %v5375_v14, %v5271_v9  ;;  %v3200_v50 = vmul.f32 %v3099_v46, %v3099_v46  ;;  %v2189_v43 = vadd.f32 %v5379_v37, %v5274_v28 }
 0x1db   : > { %v3227_v22 = vadd.f32 %v3226_v60, %v3196_v51  ;;  %3129 = vst [vmem:[%s5464_s10 + $0x20] sm:$0xff] %v3097_v40  ;;  %v3159_v6 = vadd.f32 %v3158_v17, %v3096_v2  ;;  %v2792_v62 = vadd.f32 %v2679_v53, %v2486_v19  ;;  %v3198_v52 = vmul.f32 %v3097_v40, %v3097_v40 }
 0x1dc   : > { %v3100_v32 = vadd.f32 %v4191_v56, %v2794_v20  ;;  %v4146_v27 = vpop.f32.mrf.mxu1  ;;  %v4194_v4 = vpop.f32.mrf.mxu0  ;;  %v2495_v60 = vadd.f32 %v5373_v3, %v2188_v59  ;;  %v2496_v20 = vadd.f32 %v5381_v35, %v2189_v43  ;;  %v2187_v53 = vadd.f32 %v5383_v47, %v5277_v5 }
 0x1dd   : > { %v3160_v55 = vadd.f32 %v3159_v6, %v3097_v40  ;;  %v3228_v41 = vadd.f32 %v3227_v22, %v3197_v13  ;;  %v3098_v61 = vadd.f32 %v2985_v49, %v2792_v62  ;;  %v2797_v16 = vadd.f32 %v4146_v27, %v2491_v15 }
 0x1de   : > { %3132 = vst [vmem:[%s5464_s10 + $0x38] sm:$0xff] %v3100_v32  ;;  %v2692_v0 = vpop.f32.mrf.mxu1  ;;  %v2998_v2 = vpop.f32.mrf.mxu0  ;;  %v3201_v56 = vmul.f32 %v3100_v32, %v3100_v32  ;;  %v2493_v40 = vadd.f32 %v5377_v25, %v2186_v29  ;;  %v2192_v49 = vadd.f32 %v5387_v23, %v5280_v8 }
 0x1df   : > { %v3229_v48 = vadd.f32 %v3228_v41, %v3198_v52  ;;  %3130 = vst [vmem:[%s5464_s10 + $0x28] sm:$0xff] %v3098_v61  ;;  %v3161_v42 = vadd.f32 %v3160_v55, %v3098_v61  ;;  %v3199_v34 = vmul.f32 %v3098_v61, %v3098_v61  ;;  %v3103_v12 = vadd.f32 %v4194_v4, %v2797_v16  ;;  %v5637_v61 = vld [vmem:[#allocation3_spill] sm:$0xff]  ;;  %v5638_v16 = vld [vmem:[#allocation18_spill] sm:$0xff] }
 0x1e0   : > { %v2795_v1 = vadd.f32 %v2692_v0, %v2489_v7  ;;  %v4147_v44 = vpop.f32.mrf.mxu1  ;;  %v4195_v30 = vpop.f32.mrf.mxu0  ;;  %v2190_v52 = vadd.f32 %v5391_v57, %v5283_v11  ;;  %v2494_v55 = vadd.f32 %v5385_v36, %v2187_v53  ;;  %v2499_v41 = vadd.f32 %v5389_v39, %v2192_v49  ;;  %v5648_v49 = vld [vmem:[#allocation7_spill] sm:$0xff] }
 0x1e1   : > { %v3162_v33 = vadd.f32 %v3161_v42, %v3099_v46  ;;  %v3230_v38 = vadd.f32 %v3229_v48, %v3199_v34  ;;  %3135 = vst [vmem:[%s5464_s10 + $0x50] sm:$0xff] %v3103_v12  ;;  %v2798_v19 = vadd.f32 %v4147_v44, %v2492_v45  ;;  %v2193_v7 = vadd.f32 %v5638_v16, %v5637_v61  ;;  %v5639_v42 = vld [vmem:[#allocation17_spill] sm:$0xff]  ;;  %v5652_v16 = vld [vmem:[#allocation8_spill] sm:$0xff] }
 0x1e2   : > { %v3101_v31 = vadd.f32 %v2998_v2, %v2795_v1  ;;  %v2695_v51 = vpop.f32.mrf.mxu1  ;;  %v3001_v54 = vpop.f32.mrf.mxu0  ;;  %v2497_v34 = vadd.f32 %v5639_v42, %v2190_v52  ;;  %v5650_v52 = vld [vmem:[#allocation23_spill] sm:$0xff] }
 0x1e3   : > { %v3231_v18 = vadd.f32 %v3230_v38, %v3200_v50  ;;  %v3163_v17 = vadd.f32 %v3162_v33, %v3100_v32  ;;  %v3104_v9 = vadd.f32 %v4195_v30, %v2798_v19  ;;  %v2796_v14 = vadd.f32 %v2695_v51, %v2490_v26  ;;  %v5641_v26 = vld [vmem:[#allocation20_spill] sm:$0xff]  ;;  %v5642_v33 = vld [vmem:[#allocation19_spill] sm:$0xff]  ;;  %v5644_v51 = vld [vmem:[#allocation22_spill] sm:$0xff] }
 0x1e4   : > { %3133 = vst [vmem:[%s5464_s10 + $0x40] sm:$0xff] %v3101_v31  ;;  %v4150_v46 = vpop.f32.mrf.mxu1  ;;  %v4198_v15 = vpop.f32.mrf.mxu0  ;;  %v3202_v21 = vmul.f32 %v3101_v31, %v3101_v31  ;;  %v3204_v32 = vmul.f32 %v3103_v12, %v3103_v12  ;;  %v2500_v38 = vadd.f32 %v5642_v33, %v2193_v7  ;;  %v5653_v7 = vld [vmem:[#allocation28_spill] sm:$0xff] }
 0x1e5   : > { %v3164_v63 = vadd.f32 %v3163_v17, %v3101_v31  ;;  %v3232_v28 = vadd.f32 %v3231_v18, %v3201_v56  ;;  %3136 = vst [vmem:[%s5464_s10 + $0x58] sm:$0xff] %v3104_v9  ;;  %v3102_v37 = vadd.f32 %v3001_v54, %v2796_v14  ;;  %v2801_v3 = vadd.f32 %v4150_v46, %v2495_v60  ;;  %v5643_v31 = vld [vmem:[#allocation5_spill] sm:$0xff] }
 0x1e6   : > { %v2708_v13 = vpop.f32.mrf.mxu1  ;;  %v3014_v25 = vpop.f32.mrf.mxu0  ;;  %v3205_v57 = vmul.f32 %v3104_v9, %v3104_v9  ;;  %v2196_v54 = vadd.f32 %v5644_v51, %v5643_v31 }
 0x1e7   : > { %v3233_v22 = vadd.f32 %v3232_v28, %v3202_v21  ;;  %3134 = vst [vmem:[%s5464_s10 + $0x48] sm:$0xff] %v3102_v37  ;;  %v3165_v6 = vadd.f32 %v3164_v63, %v3102_v37  ;;  %v3203_v62 = vmul.f32 %v3102_v37, %v3102_v37  ;;  %v2799_v10 = vadd.f32 %v2708_v13, %v2493_v40  ;;  %v5646_v21 = vld [vmem:[#allocation6_spill] sm:$0xff]  ;;  %v5647_v28 = vld [vmem:[#allocation24_spill] sm:$0xff] }
 0x1e8   : > { %v3107_v35 = vadd.f32 %v4198_v15, %v2801_v3  ;;  %v4151_v27 = vpop.f32.mrf.mxu1  ;;  %v4199_v5 = vpop.f32.mrf.mxu0  ;;  %v5645_v15 = vld [vmem:[#allocation21_spill] sm:$0xff]  ;;  %v2194_v37 = vadd.f32 %v5647_v28, %v5646_v21  ;;  %v5649_v3 = vld [vmem:[#allocation26_spill] sm:$0xff]  ;;  %v5662_v21 = vld [vmem:[#allocation31_spill] sm:$0xff] }
 0x1e9   : > { %v3166_v47 = vadd.f32 %v3165_v6, %v3103_v12  ;;  %v3234_v4 = vadd.f32 %v3233_v22, %v3203_v62  ;;  %v3105_v8 = vadd.f32 %v3014_v25, %v2799_v10  ;;  %v2802_v23 = vadd.f32 %v4151_v27, %v2496_v20  ;;  %v5640_v12 = vld [vmem:[#allocation4_spill] sm:$0xff] }
 0x1ea   : > { %3139 = vst [vmem:[%s5464_s10 + $0x70] sm:$0xff] %v3107_v35  ;;  %v2711_v45 = vpop.f32.mrf.mxu1  ;;  %v3017_v11 = vpop.f32.mrf.mxu0  ;;  %v2191_v59 = vadd.f32 %v5641_v26, %v5640_v12  ;;  %v2197_v13 = vadd.f32 %v5649_v3, %v5648_v49  ;;  %v3208_v25 = vmul.f32 %v3107_v35, %v3107_v35 }
 0x1eb   : > { %v3235_v0 = vadd.f32 %v3234_v4, %v3204_v32  ;;  %3137 = vst [vmem:[%s5464_s10 + $0x60] sm:$0xff] %v3105_v8  ;;  %v3167_v2 = vadd.f32 %v3166_v47, %v3104_v9  ;;  %v3108_v48 = vadd.f32 %v4199_v5, %v2802_v23  ;;  %v2800_v36 = vadd.f32 %v2711_v45, %v2494_v55 }
 0x1ec   : > { %v4154_v39 = vpop.f32.mrf.mxu1  ;;  %v4202_v29 = vpop.f32.mrf.mxu0  ;;  %v3206_v44 = vmul.f32 %v3105_v8, %v3105_v8  ;;  %v2498_v63 = vadd.f32 %v5645_v15, %v2191_v59  ;;  %v2503_v32 = vadd.f32 %v5650_v52, %v2196_v54  ;;  %v2195_v45 = vadd.f32 %v5653_v7, %v5652_v16  ;;  %v5655_v59 = vld [vmem:[#allocation9_spill] sm:$0xff] }
 0x1ed   : > { %v3168_v1 = vadd.f32 %v3167_v2, %v3105_v8  ;;  %v3236_v30 = vadd.f32 %v3235_v0, %v3205_v57  ;;  %3140 = vst [vmem:[%s5464_s10 + $0x78] sm:$0xff] %v3108_v48  ;;  %v2805_v50 = vadd.f32 %v4154_v39, %v2499_v41  ;;  %v3106_v19 = vadd.f32 %v3017_v11, %v2800_v36  ;;  %v5651_v41 = vld [vmem:[#allocation25_spill] sm:$0xff]  ;;  %v5654_v57 = vld [vmem:[#allocation27_spill] sm:$0xff] }
 0x1ee   : > { %v2724_v43 = vpop.f32.mrf.mxu1  ;;  %v3030_v56 = vpop.f32.mrf.mxu0  ;;  %v3209_v47 = vmul.f32 %v3108_v48, %v3108_v48  ;;  %v2501_v61 = vadd.f32 %v5651_v41, %v2194_v37  ;;  %v2504_v0 = vadd.f32 %v5654_v57, %v2197_v13 }
 0x1ef   : > { %v3237_v18 = vadd.f32 %v3236_v30, %v3206_v44  ;;  %v3111_v17 = vadd.f32 %v4202_v29, %v2805_v50  ;;  %v2803_v9 = vadd.f32 %v2724_v43, %v2497_v34  ;;  %3138 = vst [vmem:[%s5464_s10 + $0x68] sm:$0xff] %v3106_v19  ;;  %v3169_v14 = vadd.f32 %v3168_v1, %v3106_v19  ;;  %v5658_v43 = vld [vmem:[#allocation10_spill] sm:$0xff] }
 0x1f0   : > { %v3207_v60 = vmul.f32 %v3106_v19, %v3106_v19  ;;  %v4155_v40 = vpop.f32.mrf.mxu1  ;;  %v4203_v46 = vpop.f32.mrf.mxu0 }
 0x1f1   : > { %3143 = vst [vmem:[%s5464_s10 + $0x90] sm:$0xff] %v3111_v17  ;;  %v3109_v20 = vadd.f32 %v3030_v56, %v2803_v9  ;;  %v2806_v53 = vadd.f32 %v4155_v40, %v2500_v38  ;;  %v3170_v22 = vadd.f32 %v3169_v14, %v3107_v35  ;;  %v5657_v38 = vld [vmem:[#allocation29_spill] sm:$0xff]  ;;  %v5659_v56 = vld [vmem:[#allocation32_spill] sm:$0xff]  ;;  %v5661_v9 = vld [vmem:[#allocation34_spill] sm:$0xff] }
 0x1f2   : > { %v3238_v6 = vadd.f32 %v3237_v18, %v3207_v60  ;;  %v2727_v62 = vpop.f32.mrf.mxu1  ;;  %v3033_v10 = vpop.f32.mrf.mxu0  ;;  %v2502_v19 = vadd.f32 %v5657_v38, %v2195_v45  ;;  %v2198_v31 = vadd.f32 %v5659_v56, %v5658_v43  ;;  %v5660_v18 = vld [vmem:[#allocation11_spill] sm:$0xff]  ;;  %v3212_v60 = vmul.f32 %v3111_v17, %v3111_v17 }
 0x1f3   : > { %3141 = vst [vmem:[%s5464_s10 + $0x80] sm:$0xff] %v3109_v20  ;;  %v3112_v27 = vadd.f32 %v4203_v46, %v2806_v53  ;;  %v2804_v5 = vadd.f32 %v2727_v62, %v2498_v63  ;;  %v3171_v8 = vadd.f32 %v3170_v22, %v3108_v48  ;;  %v3210_v42 = vmul.f32 %v3109_v20, %v3109_v20  ;;  %v5656_v48 = vld [vmem:[#allocation30_spill] sm:$0xff]  ;;  %v5663_v22 = vld [vmem:[#allocation33_spill] sm:$0xff]  ;;  %v5664_v62 = vld [vmem:[#allocation12_spill] sm:$0xff] }
 0x1f4   : > { %v3239_v4 = vadd.f32 %v3238_v6, %v3208_v25  ;;  %v4158_v23 = vpop.f32.mrf.mxu1  ;;  %v4206_v55 = vpop.f32.mrf.mxu0  ;;  %v2200_v36 = vadd.f32 %v5656_v48, %v5655_v59  ;;  %v2201_v14 = vadd.f32 %v5661_v9, %v5660_v18  ;;  %v2505_v6 = vadd.f32 %v5663_v22, %v2198_v31 }
 0x1f5   : > { %3144 = vst [vmem:[%s5464_s10 + $0x98] sm:$0xff] %v3112_v27  ;;  %v3110_v35 = vadd.f32 %v3033_v10, %v2804_v5  ;;  %v2809_v11 = vadd.f32 %v4158_v23, %v2503_v32  ;;  %v3172_v2 = vadd.f32 %v3171_v8, %v3109_v20  ;;  %v3213_v53 = vmul.f32 %v3112_v27, %v3112_v27  ;;  %v5665_v10 = vld [vmem:[#allocation36_spill] sm:$0xff]  ;;  %v5666_v5 = vld [vmem:[#allocation35_spill] sm:$0xff] }
 0x1f6   : > { %v3240_v34 = vadd.f32 %v3239_v4, %v3209_v47  ;;  %v2740_v12 = vpop.f32.mrf.mxu1  ;;  %v3046_v26 = vpop.f32.mrf.mxu0  ;;  %v2507_v28 = vadd.f32 %v5662_v21, %v2200_v36  ;;  %v2199_v52 = vadd.f32 %v5665_v10, %v5664_v62  ;;  %v2508_v47 = vadd.f32 %v5666_v5, %v2201_v14  ;;  %v5677_v10 = vld [vmem:[#allocation43_spill] sm:$0xff] }
 0x1f7   : > { %3142 = vst [vmem:[%s5464_s10 + $0x88] sm:$0xff] %v3110_v35  ;;  %v3211_v39 = vmul.f32 %v3110_v35, %v3110_v35  ;;  %v3115_v29 = vadd.f32 %v4206_v55, %v2809_v11  ;;  %v2807_v1 = vadd.f32 %v2740_v12, %v2501_v61  ;;  %v3173_v30 = vadd.f32 %v3172_v2, %v3110_v35  ;;  %v5667_v61 = vld [vmem:[#allocation13_spill] sm:$0xff]  ;;  %v5670_v12 = vld [vmem:[#allocation14_spill] sm:$0xff] }
 0x1f8   : > { %v3241_v44 = vadd.f32 %v3240_v34, %v3210_v42  ;;  %v4159_v50 = vpop.f32.mrf.mxu1  ;;  %v4207_v33 = vpop.f32.mrf.mxu0  ;;  %v5669_v42 = vld [vmem:[#allocation37_spill] sm:$0xff] }
 0x1f9   : > { %3147 = vst [vmem:[%s5464_s10 + $0xb0] sm:$0xff] %v3115_v29  ;;  %v3113_v51 = vadd.f32 %v3046_v26, %v2807_v1  ;;  %v2810_v54 = vadd.f32 %v4159_v50, %v2504_v0  ;;  %v3174_v40 = vadd.f32 %v3173_v30, %v3111_v17  ;;  %v2506_v34 = vadd.f32 %v5669_v42, %v2199_v52  ;;  %v5671_v26 = vld [vmem:[#allocation40_spill] sm:$0xff] }
 0x1fa   : > { %v3242_v46 = vadd.f32 %v3241_v44, %v3211_v39  ;;  %v2743_v15 = vpop.f32.mrf.mxu1  ;;  %v3049_v63 = vpop.f32.mrf.mxu0  ;;  %v2202_v59 = vadd.f32 %v5671_v26, %v5670_v12  ;;  %v3216_v39 = vmul.f32 %v3115_v29, %v3115_v29 }
 0x1fb   : > { %3145 = vst [vmem:[%s5464_s10 + $0xa0] sm:$0xff] %v3113_v51  ;;  %v3116_v37 = vadd.f32 %v4207_v33, %v2810_v54  ;;  %v2808_v20 = vadd.f32 %v2743_v15, %v2502_v19  ;;  %v3175_v3 = vadd.f32 %v3174_v40, %v3112_v27  ;;  %v3214_v8 = vmul.f32 %v3113_v51, %v3113_v51  ;;  %v5668_v27 = vld [vmem:[#allocation38_spill] sm:$0xff]  ;;  %v5672_v33 = vld [vmem:[#allocation39_spill] sm:$0xff]  ;;  %v5675_v40 = vld [vmem:[#allocation16_spill] sm:$0xff] }
 0x1fc   : > { %v3243_v49 = vadd.f32 %v3242_v46, %v3212_v60  ;;  %v4162_v13 = vpop.f32.mrf.mxu1  ;;  %v4210_v25 = vpop.f32.mrf.mxu0  ;;  %v2204_v16 = vadd.f32 %v5668_v27, %v5667_v61  ;;  %v5673_v19 = vld [vmem:[#allocation15_spill] sm:$0xff]  ;;  %v5674_v60 = vld [vmem:[#allocation41_spill] sm:$0xff]  ;;  %v2203_v46 = vadd.f32 %v5449_v24, %v5675_v40 }
 0x1fd   : > { %3148 = vst [vmem:[%s5464_s10 + $0xb8] sm:$0xff] %v3116_v37  ;;  %v3114_v17 = vadd.f32 %v3049_v63, %v2808_v20  ;;  %v2813_v32 = vadd.f32 %v4162_v13, %v2507_v28  ;;  %v3176_v4 = vadd.f32 %v3175_v3, %v3113_v51  ;;  %v2205_v43 = vadd.f32 %v5444_v58, %v5673_v19 }
 0x1fe   : > { %v3244_v23 = vadd.f32 %v3243_v49, %v3213_v53  ;;  %v2756_v55 = vpop.f32.mrf.mxu1  ;;  %v3062_v41 = vpop.f32.mrf.mxu0  ;;  %v2511_v38 = vadd.f32 %v5672_v33, %v2204_v16  ;;  %v3217_v51 = vmul.f32 %v3116_v37, %v3116_v37  ;;  %v5676_v49 = vld [vmem:[#allocation42_spill] sm:$0xff]  ;;  %v2510_v52 = vadd.f32 %v5677_v10, %v2203_v46 }
 0x1ff   : > { %3146 = vst [vmem:[%s5464_s10 + $0xa8] sm:$0xff] %v3114_v17  ;;  %v3215_v7 = vmul.f32 %v3114_v17, %v3114_v17  ;;  %v3119_v45 = vadd.f32 %v4210_v25, %v2813_v32  ;;  %v2811_v35 = vadd.f32 %v2756_v55, %v2505_v6  ;;  %v3177_v57 = vadd.f32 %v3176_v4, %v3114_v17 }
 0x200   : > { %v3245_v11 = vadd.f32 %v3244_v23, %v3214_v8  ;;  %v4163_v0 = vpop.f32.mrf.mxu1  ;;  %v4211_v2 = vpop.f32.mrf.mxu0  ;;  %v2512_v3 = vadd.f32 %v5676_v49, %v2205_v43 }
 0x201   : > { %3151 = vst [vmem:[%s5464_s10 + $0xd0] sm:$0xff] %v3119_v45  ;;  %v3117_v48 = vadd.f32 %v3062_v41, %v2811_v35  ;;  %v2814_v36 = vadd.f32 %v4163_v0, %v2508_v47  ;;  %v3178_v1 = vadd.f32 %v3177_v57, %v3115_v29  ;;  %v2509_v29 = vadd.f32 %v5674_v60, %v2202_v59 }
 0x202   : > { %v3246_v44 = vadd.f32 %v3245_v11, %v3215_v7  ;;  %v2759_v30 = vpop.f32.mrf.mxu1  ;;  %v3065_v50 = vpop.f32.mrf.mxu0  ;;  %v3220_v5 = vmul.f32 %v3119_v45, %v3119_v45 }
 0x203   : > { %3149 = vst [vmem:[%s5464_s10 + $0xc0] sm:$0xff] %v3117_v48  ;;  %v3120_v56 = vadd.f32 %v4211_v2, %v2814_v36  ;;  %v2812_v31 = vadd.f32 %v2759_v30, %v2506_v34  ;;  %v3179_v18 = vadd.f32 %v3178_v1, %v3116_v37  ;;  %v3218_v58 = vmul.f32 %v3117_v48, %v3117_v48 }
 0x204   : > { %v3247_v54 = vadd.f32 %v3246_v44, %v3216_v39  ;;  %v4166_v9 = vpop.f32.mrf.mxu1  ;;  %v4214_v14 = vpop.f32.mrf.mxu0 }
 0x205   : > { %3152 = vst [vmem:[%s5464_s10 + $0xd8] sm:$0xff] %v3120_v56  ;;  %v3118_v15 = vadd.f32 %v3065_v50, %v2812_v31  ;;  %v2817_v63 = vadd.f32 %v4166_v9, %v2511_v38  ;;  %v3180_v21 = vadd.f32 %v3179_v18, %v3117_v48  ;;  %v3221_v41 = vmul.f32 %v3120_v56, %v3120_v56 }
 0x206   : > { %v3248_v28 = vadd.f32 %v3247_v54, %v3217_v51  ;;  %v2772_v20 = vpop.f32.mrf.mxu1  ;;  %v3078_v53 = vpop.f32.mrf.mxu0 }
 0x207   : > { %3150 = vst [vmem:[%s5464_s10 + $0xc8] sm:$0xff] %v3118_v15  ;;  %v3219_v37 = vmul.f32 %v3118_v15, %v3118_v15  ;;  %v3123_v13 = vadd.f32 %v4214_v14, %v2817_v63  ;;  %v2815_v25 = vadd.f32 %v2772_v20, %v2509_v29  ;;  %v3181_v6 = vadd.f32 %v3180_v21, %v3118_v15 }
 0x208   : > { %v3249_v22 = vadd.f32 %v3248_v28, %v3218_v58  ;;  %v4167_v62 = vpop.f32.mrf.mxu1  ;;  %v4215_v24 = vpop.f32.mrf.mxu0 }
 0x209   : > { %3155 = vst [vmem:[%s5464_s10 + $0xf0] sm:$0xff] %v3123_v13  ;;  %v3121_v17 = vadd.f32 %v3078_v53, %v2815_v25  ;;  %v2818_v32 = vadd.f32 %v4167_v62, %v2512_v3  ;;  %v3182_v47 = vadd.f32 %v3181_v6, %v3119_v45  ;;  %v3224_v34 = vmul.f32 %v3123_v13, %v3123_v13 }
 0x20a   : > { %v3250_v4 = vadd.f32 %v3249_v22, %v3219_v37  ;;  %v2775_v8 = vpop.f32.mrf.mxu1  ;;  %v3081_v16 = vpop.f32.mrf.mxu0 }
 0x20b   : > { %3153 = vst [vmem:[%s5464_s10 + $0xe0] sm:$0xff] %v3121_v17  ;;  %v3124_v23 = vadd.f32 %v4215_v24, %v2818_v32  ;;  %v2816_v55 = vadd.f32 %v2775_v8, %v2510_v52  ;;  %v3183_v27 = vadd.f32 %v3182_v47, %v3120_v56  ;;  %v3222_v11 = vmul.f32 %v3121_v17, %v3121_v17 }
 0x20c   : > { %v3251_v61 = vadd.f32 %v3250_v4, %v3220_v5 }
 0x20d   : > { %3156 = vst [vmem:[%s5464_s10 + $0xf8] sm:$0xff] %v3124_v23  ;;  %v3122_v7 = vadd.f32 %v3081_v16, %v2816_v55  ;;  %v3184_v35 = vadd.f32 %v3183_v27, %v3121_v17  ;;  %v3225_v26 = vmul.f32 %v3124_v23, %v3124_v23 }
 0x20e   : > { %v3252_v57 = vadd.f32 %v3251_v61, %v3221_v41 }
 0x20f   : > { %3154 = vst [vmem:[%s5464_s10 + $0xe8] sm:$0xff] %v3122_v7  ;;  %v3223_v0 = vmul.f32 %v3122_v7, %v3122_v7  ;;  %v3185_v42 = vadd.f32 %v3184_v35, %v3122_v7 }
 0x210   : > { %v3253_v2 = vadd.f32 %v3252_v57, %v3222_v11 }
 0x211   : > { %v3186_v45 = vadd.f32 %v3185_v42, %v3123_v13 }
 0x212   : > { %v3254_v12 = vadd.f32 %v3253_v2, %v3223_v0 }
 0x213   : > { %v3187_v59 = vadd.f32 %v3186_v45, %v3124_v23 }
 0x214   : > { %v3255_v48 = vadd.f32 %v3254_v12, %v3224_v34 }
 0x215   : > { %v3188_v36 = vrot.slane %v3187_v59, 4 }
 0x216   : > { %v3256_v39 = vadd.f32 %v3255_v48, %v3225_v26 }
 0x217   : > { %v3189_v1 = vadd.f32 %v3188_v36, %v3187_v59 }
 0x218   : > { %v3257_v44 = vrot.slane %v3256_v39, 4 }
 0x219   : > { %v3190_v30 = vrot.slane %v3189_v1, 2 }
 0x21a   : > { %v3258_v50 = vadd.f32 %v3257_v44, %v3256_v39 }
 0x21b   : > { %v3191_v33 = vadd.f32 %v3190_v30, %v3189_v1 }
 0x21c   : > { %v3259_v38 = vrot.slane %v3258_v50, 2 }
 0x21d   : > { %v3192_v19 = vrot.slane %v3191_v33, 1 }
 0x21e   : > { %v3260_v43 = vadd.f32 %v3259_v38, %v3258_v50 }
 0x21f   : > { %v3193_v31 = vadd.f32 %v3192_v19, %v3191_v33 }
 0x220   : > { %v3261_v56 = vrot.slane %v3260_v43, 1 }
 0x222   : > { %v3262_v51 = vadd.f32 %v3261_v56, %v3260_v43 }
 0x224   : > { %v3264_v54 = vsel %vm3263_vm0, %v3193_v31, %v3262_v51 }
 0x225   : > { %3265 = vst [vmem:[%s208_s13] sm:$0x3] %v3264_v54 }
 0x226 PF: > { %s15_s15 = sadd.s32 1, %s4320_s15  }
 0x227   : > { %p12_p4 = scmp.ge.s32.totalorder %s15_s15, 4  }
 0x229   :  { %14 = sbr.rel (!%p12_p4) target bundleno = 1 (0x1), region = 84 }

</bundles_post_ra>
